<compile_context>
chip_gen: v5e
topology: v5e:2x2
jax: 0.10.0
libtpu: 0.0.40
codegen_flags: <defaults>
</compile_context>

<pallas_src>
import numpy as np
import jax
import jax.numpy as jnp
from jax import lax
from jax.experimental import pallas as pl
from jax.experimental.pallas import tpu as pltpu


def _make_kernel(TB, H, W, C, K, d0, d1, p1, p2, eps=1e-5):
    WC = W * C
    M = TB * H
    f32 = jnp.float32

    def kernel(x_ref, w1_ref, w2_ref, vec_ref, sw_ref, gb_ref, o_ref, pad_ref):
        x = x_ref[...]                                           # (TB, H, WC) f32

        def conv(src, w_ref, bias, p, d):
            # Zero only the top/bottom halo rows (horizontal zero padding is
            # folded into the banded weights); interior stored as bf16.
            pad_ref[:, 0:p, :] = jnp.zeros((TB, p, WC), jnp.bfloat16)
            pad_ref[:, p + H:p + H + p, :] = jnp.zeros((TB, p, WC), jnp.bfloat16)
            pad_ref[:, p:p + H, :] = src.astype(jnp.bfloat16)
            # K depth-WC MXU matmuls accumulated in f32 (no concatenated LHS).
            acc = None
            for ky in range(K):                                  # static unroll
                slab = pad_ref[:, ky * d:ky * d + H, :].reshape(M, WC)
                part = jnp.dot(slab, w_ref[ky * WC:(ky + 1) * WC, :],
                               preferred_element_type=f32)       # (M, WC)
                acc = part if acc is None else acc + part
            return acc + bias                                    # bias added once

        def groupnorm(acc, gamma, beta):
            # Per-sample GroupNorm on the packed (TB, H, WC) slab, f32 stats.
            acc3 = acc.reshape(TB, H, WC)
            ssum = jnp.sum(acc3, axis=1)                         # (TB, WC)
            ssq = jnp.sum(acc3 * acc3, axis=1)                   # (TB, WC)
            stats = jnp.concatenate([ssum, ssq], axis=0)         # (2*TB, WC)
            chan = jnp.dot(stats, sw_ref[...],
                           preferred_element_type=f32)           # (2*TB, C)
            mom = jnp.dot(chan, gb_ref[...],
                          preferred_element_type=f32)            # (2*TB, WC)
            mean = mom[0:TB, :]
            var = jnp.maximum(mom[TB:2 * TB, :] - mean * mean, 0.0)
            scale = lax.rsqrt(var + eps) * gamma                 # (TB, WC)
            shift = beta - mean * scale
            return acc3 * scale[:, None, :] + shift[:, None, :]  # (TB, H, WC)

        b1, g1, be1 = vec_ref[0:1, :], vec_ref[1:2, :], vec_ref[2:3, :]
        b2, g2, be2 = vec_ref[3:4, :], vec_ref[4:5, :], vec_ref[5:6, :]

        y1 = jnp.maximum(groupnorm(conv(x, w1_ref, b1, p1, d0), g1, be1), 0.0)
        y2 = groupnorm(conv(y1, w2_ref, b2, p2, d1), g2, be2)
        o_ref[...] = jnp.maximum(y2 + x, 0.0).astype(o_ref.dtype)

    return kernel


def _banded_weight(w, K, d, p, W, C):
    """PyTorch conv weight (Cout, Cin, K, K) -> row-banded matrix (K*W*C, W*C).

    row index = ky*(W*C) + q*C + ci   (q = horizontal position inside a row slab)
    col index = w*C + co
    entry     = weight[co, ci, ky, kx]  iff  q == w + kx*d - p  and 0 <= q < W
    (the clipped band implements the horizontal zero padding).
    """
    wt = jnp.transpose(w, (2, 3, 1, 0)).astype(jnp.float32)      # (K, K, Ci, Co)
    sel = np.zeros((K, W, W), np.float32)
    for kx in range(K):
        for wcol in range(W):
            q = wcol + kx * d - p
            if 0 <= q < W:
                sel[kx, q, wcol] = 1.0
    B = jnp.einsum("xqw,kxio->kqiwo", jnp.asarray(sel), wt)      # (K, W, Ci, W, Co)
    return B.reshape(K * W * C, W * C).astype(jnp.bfloat16)


def _pick_tb(N, H, target_rows=256):
    """Largest divisor TB of N with TB*H <= target_rows (MXU M packing)."""
    tb = 1
    for t in range(1, N + 1):
        if N % t == 0 and t * H <= target_rows:
            tb = t
    return tb


def resnet_block_gn(x_nchw, params, kernel_size=3, dilation=(1, 2), group_channel=8):
    """Pallas implementation of ResnetBlockGn.forward.  x_nchw: (N, C, H, W) f32."""
    N, C, H, W = x_nchw.shape
    K = kernel_size
    d0, d1 = dilation
    p1 = (K - 1) // 2 * d0
    p2 = (K - 1) // 2 * d1
    G = int(max(1, C // group_channel))
    gc = C // G
    WC = W * C
    TB = _pick_tb(N, H)
    pmax = max(p1, p2)

    # TODO(synk): in a full network the activations should stay in this
    # lane-dense (N, H, W*C) layout across blocks (and output could be bf16);
    # the NCHW<->NHWC transposes here only exist to match the module interface.
    x = jnp.transpose(x_nchw, (0, 2, 3, 1)).astype(jnp.float32).reshape(N, H, WC)

    w1b = _banded_weight(params["w1"], K, d0, p1, W, C)          # (K*WC, WC) bf16
    w2b = _banded_weight(params["w2"], K, d1, p2, W, C)

    def lane_tiled(v):                                           # (C,) -> (1, W*C)
        return jnp.tile(v.astype(jnp.float32).reshape(1, C), (1, W))

    # One (8, WC) slab for the six per-lane vectors (one DMA, one aligned tile).
    vecs = jnp.concatenate(
        [lane_tiled(params["b1"]), lane_tiled(params["gamma1"]), lane_tiled(params["beta1"]),
         lane_tiled(params["b2"]), lane_tiled(params["gamma2"]), lane_tiled(params["beta2"]),
         jnp.zeros((2, WC), jnp.float32)], axis=0)

    # Factored GroupNorm averaging: sw (WC, C) sums over W; gb (C, WC) averages
    # within groups (incl. 1/(gc*H*W)) and broadcasts back to every (w, c) lane.
    sw = jnp.asarray(np.kron(np.ones((W, 1), np.float32), np.eye(C, dtype=np.float32)))
    ch = np.arange(C)
    gmask = (ch[:, None] // gc == ch[None, :] // gc).astype(np.float32)
    gb = jnp.asarray(np.kron(np.ones((1, W), np.float32), gmask) / float(gc * H * W))

    kernel = _make_kernel(TB, H, W, C, K, d0, d1, p1, p2)

    def build(single_buffer_invariants):
        def fixed(shape):
            idx = lambda b, _n=len(shape): (0,) * _n
            if single_buffer_invariants:
                return pl.BlockSpec(shape, idx, pipeline_mode=pl.Buffered(1))
            return pl.BlockSpec(shape, idx)

        grid_spec = pltpu.PrefetchScalarGridSpec(
            num_scalar_prefetch=0,
            grid=(N // TB,),
            in_specs=[
                pl.BlockSpec((TB, H, WC), lambda b: (b, 0, 0)),   # x (dense DMA)
                fixed((K * WC, WC)),                              # banded W1 (bf16)
                fixed((K * WC, WC)),                              # banded W2 (bf16)
                fixed((8, WC)),                                   # bias/gamma/beta pack
                fixed((WC, C)),                                   # GN sum-over-W
                fixed((C, WC)),                                   # GN group avg + bcast
            ],
            out_specs=pl.BlockSpec((TB, H, WC), lambda b: (b, 0, 0)),
            scratch_shapes=[pltpu.VMEM((TB, H + 2 * pmax, WC), jnp.bfloat16)],
        )
        return pl.pallas_call(
            kernel,
            out_shape=jax.ShapeDtypeStruct((N, H, WC), jnp.float32),
            grid_spec=grid_spec,
            compiler_params=pltpu.CompilerParams(
                dimension_semantics=("parallel",),
                vmem_limit_bytes=32 * 1024 * 1024),
        )

    args = (x, w1b, w2b, vecs, sw, gb)
    try:
        out = jax.block_until_ready(build(True)(*args))
    except Exception:
        # pipeline_mode=pl.Buffered(1) not supported by this jax/backend:
        # fall back to default double buffering (identical results).
        out = jax.block_until_ready(build(False)(*args))

    out = out.reshape(N, H, W, C)
    return jnp.transpose(out, (0, 3, 1, 2))                      # back to NCHW


# ------------------------- pure-JAX reference (for verification) -------------------------
def _ref_forward(x_nchw, params, kernel_size=3, dilation=(1, 2), group_channel=8):
    K = kernel_size
    N, C, H, W = x_nchw.shape
    G = int(max(1, C // group_channel))
    x = jnp.transpose(x_nchw, (0, 2, 3, 1)).astype(jnp.float32)

    def conv(xx, w, b, d):
        p = (K - 1) // 2 * d
        w_hwio = jnp.transpose(w, (2, 3, 1, 0))
        y = lax.conv_general_dilated(xx, w_hwio, window_strides=(1, 1),
                                     padding=((p, p), (p, p)),
                                     rhs_dilation=(d, d),
                                     dimension_numbers=("NHWC", "HWIO", "NHWC"))
        return y + b

    def gn(xx, gamma, beta, eps=1e-5):
        n_, h_, w_, c_ = xx.shape
        gc = c_ // G
        xg = xx.reshape(n_, h_, w_, G, gc)
        mean = xg.mean(axis=(1, 2, 4), keepdims=True)
        var = ((xg - mean) ** 2).mean(axis=(1, 2, 4), keepdims=True)
        xn = ((xg - mean) / jnp.sqrt(var + eps)).reshape(n_, h_, w_, c_)
        return xn * gamma + beta

    y = conv(x, params["w1"], params["b1"], dilation[0])
    y = gn(y, params["gamma1"], params["beta1"])
    y = jnp.maximum(y, 0.0)
    y = conv(y, params["w2"], params["b2"], dilation[1])
    y = gn(y, params["gamma2"], params["beta2"])
    out = jnp.maximum(y + x, 0.0)
    return jnp.transpose(out, (0, 3, 1, 2))


if __name__ == "__main__":
    N, C, H, W = 2, 16, 16, 16
    K = 3
    dilation = (1, 2)
    group_channel = 8            # -> 2 groups for C=16

    key = jax.random.PRNGKey(0)
    ks = jax.random.split(key, 9)
    params = {
        "w1": jax.random.normal(ks[0], (C, C, K, K), jnp.float32) * 0.1,
        "b1": jax.random.normal(ks[1], (C,), jnp.float32) * 0.1,
        "gamma1": 1.0 + 0.1 * jax.random.normal(ks[2], (C,), jnp.float32),
        "beta1": 0.1 * jax.random.normal(ks[3], (C,), jnp.float32),
        "w2": jax.random.normal(ks[4], (C, C, K, K), jnp.float32) * 0.1,
        "b2": jax.random.normal(ks[5], (C,), jnp.float32) * 0.1,
        "gamma2": 1.0 + 0.1 * jax.random.normal(ks[6], (C,), jnp.float32),
        "beta2": 0.1 * jax.random.normal(ks[7], (C,), jnp.float32),
    }
    x = jax.random.normal(ks[8], (N, C, H, W), jnp.float32)

    out = resnet_block_gn(x, params, kernel_size=K, dilation=dilation,
                          group_channel=group_channel)
    out = jax.block_until_ready(out)

    ref = _ref_forward(x, params, kernel_size=K, dilation=dilation,
                       group_channel=group_channel)
    # bf16 matmul operands -> slightly looser tolerance than a pure-f32 version.
    np.testing.assert_allclose(np.asarray(out), np.asarray(ref), rtol=5e-2, atol=5e-2)
    print("KERNEL_OK")
</pallas_src>

<mosaic_0001>
module attributes {stable_mosaic.version = 11 : i64} {
  func.func @kernel(%arg0: i32, %arg1: memref<2x16x256xf32, #tpu.memory_space<vmem>>, %arg2: memref<768x256xbf16, #tpu.memory_space<vmem>>, %arg3: memref<768x256xbf16, #tpu.memory_space<vmem>>, %arg4: memref<8x256xf32, #tpu.memory_space<vmem>>, %arg5: memref<256x16xf32, #tpu.memory_space<vmem>>, %arg6: memref<16x256xf32, #tpu.memory_space<vmem>>, %arg7: memref<2x16x256xf32, #tpu.memory_space<vmem>>, %arg8: memref<2x20x256xbf16, #tpu.memory_space<vmem>>) attributes {dimension_semantics = [#tpu.dimension_semantics<parallel>], iteration_bounds = array<i64: 1>, scalar_prefetch = 0 : i64, scratch_operands = 1 : i64, tpu.core_type = #tpu.core_type<tc>, window_params = [{transform_indices = @transform_0, window_bounds = array<i64: 2, 16, 256>}, {pipeline_mode = #tpu.pipeline_mode<synchronous>, transform_indices = @transform_1, window_bounds = array<i64: 768, 256>}, {pipeline_mode = #tpu.pipeline_mode<synchronous>, transform_indices = @transform_2, window_bounds = array<i64: 768, 256>}, {pipeline_mode = #tpu.pipeline_mode<synchronous>, transform_indices = @transform_3, window_bounds = array<i64: 8, 256>}, {pipeline_mode = #tpu.pipeline_mode<synchronous>, transform_indices = @transform_4, window_bounds = array<i64: 256, 16>}, {pipeline_mode = #tpu.pipeline_mode<synchronous>, transform_indices = @transform_5, window_bounds = array<i64: 16, 256>}, {transform_indices = @transform_6, window_bounds = array<i64: 2, 16, 256>}]} {
    %c0 = arith.constant 0 : index
    %c0_0 = arith.constant 0 : index
    %c0_1 = arith.constant 0 : index
    %0 = vector.load %arg1[%c0, %c0_0, %c0_1] : memref<2x16x256xf32, #tpu.memory_space<vmem>>, vector<2x16x256xf32>
    %c0_2 = arith.constant 0 : index
    %c0_3 = arith.constant 0 : index
    %1 = vector.load %arg4[%c0_2, %c0_3] : memref<8x256xf32, #tpu.memory_space<vmem>>, vector<1x256xf32>
    %c1 = arith.constant 1 : index
    %c0_4 = arith.constant 0 : index
    %2 = vector.load %arg4[%c1, %c0_4] : memref<8x256xf32, #tpu.memory_space<vmem>>, vector<1x256xf32>
    %c2 = arith.constant 2 : index
    %c0_5 = arith.constant 0 : index
    %3 = vector.load %arg4[%c2, %c0_5] : memref<8x256xf32, #tpu.memory_space<vmem>>, vector<1x256xf32>
    %c3 = arith.constant 3 : index
    %c0_6 = arith.constant 0 : index
    %4 = vector.load %arg4[%c3, %c0_6] : memref<8x256xf32, #tpu.memory_space<vmem>>, vector<1x256xf32>
    %c4 = arith.constant 4 : index
    %c0_7 = arith.constant 0 : index
    %5 = vector.load %arg4[%c4, %c0_7] : memref<8x256xf32, #tpu.memory_space<vmem>>, vector<1x256xf32>
    %c5 = arith.constant 5 : index
    %c0_8 = arith.constant 0 : index
    %6 = vector.load %arg4[%c5, %c0_8] : memref<8x256xf32, #tpu.memory_space<vmem>>, vector<1x256xf32>
    %cst = arith.constant 0.000000e+00 : bf16
    %7 = vector.broadcast %cst : bf16 to vector<2x1x256xbf16>
    %c0_9 = arith.constant 0 : index
    %c0_10 = arith.constant 0 : index
    %c0_11 = arith.constant 0 : index
    %8 = vector.load %arg8[%c0_9, %c0_10, %c0_11] : memref<2x20x256xbf16, #tpu.memory_space<vmem>>, vector<2x1x256xbf16>
    tpu.vector_store %arg8[%c0_9, %c0_10, %c0_11], %7 {strides = array<i32>} : memref<2x20x256xbf16, #tpu.memory_space<vmem>>, vector<2x1x256xbf16>,
    %cst_12 = arith.constant 0.000000e+00 : bf16
    %9 = vector.broadcast %cst_12 : bf16 to vector<2x1x256xbf16>
    %c0_13 = arith.constant 0 : index
    %c17 = arith.constant 17 : index
    %c0_14 = arith.constant 0 : index
    %10 = vector.load %arg8[%c0_13, %c17, %c0_14] : memref<2x20x256xbf16, #tpu.memory_space<vmem>>, vector<2x1x256xbf16>
    tpu.vector_store %arg8[%c0_13, %c17, %c0_14], %9 {strides = array<i32>} : memref<2x20x256xbf16, #tpu.memory_space<vmem>>, vector<2x1x256xbf16>,
    %11 = arith.truncf %0 : vector<2x16x256xf32> to vector<2x16x256xbf16>
    %c0_15 = arith.constant 0 : index
    %c1_16 = arith.constant 1 : index
    %c0_17 = arith.constant 0 : index
    %12 = vector.load %arg8[%c0_15, %c1_16, %c0_17] : memref<2x20x256xbf16, #tpu.memory_space<vmem>>, vector<2x16x256xbf16>
    tpu.vector_store %arg8[%c0_15, %c1_16, %c0_17], %11 {strides = array<i32>} : memref<2x20x256xbf16, #tpu.memory_space<vmem>>, vector<2x16x256xbf16>,
    %c0_18 = arith.constant 0 : index
    %c0_19 = arith.constant 0 : index
    %c0_20 = arith.constant 0 : index
    %13 = vector.load %arg8[%c0_18, %c0_19, %c0_20] : memref<2x20x256xbf16, #tpu.memory_space<vmem>>, vector<2x16x256xbf16>
    %14 = vector.shape_cast %13 : vector<2x16x256xbf16> to vector<32x256xbf16>
    %c0_21 = arith.constant 0 : index
    %c0_22 = arith.constant 0 : index
    %15 = vector.load %arg2[%c0_21, %c0_22] : memref<768x256xbf16, #tpu.memory_space<vmem>>, vector<256x256xbf16>
    %cst_23 = arith.constant dense<0.000000e+00> : vector<32x256xf32>
    %16 = tpu.matmul %14, %15, %cst_23 {dimension_numbers = #tpu.dot_dimension_numbers<[1], [0], [0], [1], [0, 0, 1, 1], [], []>} : vector<32x256xbf16>, vector<256x256xbf16>, vector<32x256xf32> -> vector<32x256xf32>
    %c0_24 = arith.constant 0 : index
    %c1_25 = arith.constant 1 : index
    %c0_26 = arith.constant 0 : index
    %17 = vector.load %arg8[%c0_24, %c1_25, %c0_26] : memref<2x20x256xbf16, #tpu.memory_space<vmem>>, vector<2x16x256xbf16>
    %18 = vector.shape_cast %17 : vector<2x16x256xbf16> to vector<32x256xbf16>
    %c256 = arith.constant 256 : index
    %c0_27 = arith.constant 0 : index
    %19 = vector.load %arg2[%c256, %c0_27] : memref<768x256xbf16, #tpu.memory_space<vmem>>, vector<256x256xbf16>
    %cst_28 = arith.constant dense<0.000000e+00> : vector<32x256xf32>
    %20 = tpu.matmul %18, %19, %cst_28 {dimension_numbers = #tpu.dot_dimension_numbers<[1], [0], [0], [1], [0, 0, 1, 1], [], []>} : vector<32x256xbf16>, vector<256x256xbf16>, vector<32x256xf32> -> vector<32x256xf32>
    %21 = arith.addf %16, %20 : vector<32x256xf32>
    %c0_29 = arith.constant 0 : index
    %c2_30 = arith.constant 2 : index
    %c0_31 = arith.constant 0 : index
    %22 = vector.load %arg8[%c0_29, %c2_30, %c0_31] : memref<2x20x256xbf16, #tpu.memory_space<vmem>>, vector<2x16x256xbf16>
    %23 = vector.shape_cast %22 : vector<2x16x256xbf16> to vector<32x256xbf16>
    %c512 = arith.constant 512 : index
    %c0_32 = arith.constant 0 : index
    %24 = vector.load %arg2[%c512, %c0_32] : memref<768x256xbf16, #tpu.memory_space<vmem>>, vector<256x256xbf16>
    %cst_33 = arith.constant dense<0.000000e+00> : vector<32x256xf32>
    %25 = tpu.matmul %23, %24, %cst_33 {dimension_numbers = #tpu.dot_dimension_numbers<[1], [0], [0], [1], [0, 0, 1, 1], [], []>} : vector<32x256xbf16>, vector<256x256xbf16>, vector<32x256xf32> -> vector<32x256xf32>
    %26 = arith.addf %21, %25 : vector<32x256xf32>
    %27 = vector.broadcast %1 : vector<1x256xf32> to vector<32x256xf32>
    %28 = arith.addf %26, %27 : vector<32x256xf32>
    %29 = vector.shape_cast %28 : vector<32x256xf32> to vector<2x16x256xf32>
    %cst_34 = arith.constant dense<0.000000e+00> : vector<2x256xf32>
    %30 = vector.multi_reduction <add>, %29, %cst_34 [1] : vector<2x16x256xf32> to vector<2x256xf32>
    %31 = arith.mulf %29, %29 : vector<2x16x256xf32>
    %cst_35 = arith.constant dense<0.000000e+00> : vector<2x256xf32>
    %32 = vector.multi_reduction <add>, %31, %cst_35 [1] : vector<2x16x256xf32> to vector<2x256xf32>
    %33 = tpu.concatenate %30, %32 in 0 : vector<2x256xf32>, vector<2x256xf32> -> vector<4x256xf32>
    %c0_36 = arith.constant 0 : index
    %c0_37 = arith.constant 0 : index
    %34 = vector.load %arg5[%c0_36, %c0_37] : memref<256x16xf32, #tpu.memory_space<vmem>>, vector<256x16xf32>
    %cst_38 = arith.constant dense<0.000000e+00> : vector<4x16xf32>
    %35 = tpu.matmul %33, %34, %cst_38 {dimension_numbers = #tpu.dot_dimension_numbers<[1], [0], [0], [1], [0, 0, 1, 1], [], []>} : vector<4x256xf32>, vector<256x16xf32>, vector<4x16xf32> -> vector<4x16xf32>
    %c0_39 = arith.constant 0 : index
    %c0_40 = arith.constant 0 : index
    %36 = vector.load %arg6[%c0_39, %c0_40] : memref<16x256xf32, #tpu.memory_space<vmem>>, vector<16x256xf32>
    %cst_41 = arith.constant dense<0.000000e+00> : vector<4x256xf32>
    %37 = tpu.matmul %35, %36, %cst_41 {dimension_numbers = #tpu.dot_dimension_numbers<[1], [0], [0], [1], [0, 0, 1, 1], [], []>} : vector<4x16xf32>, vector<16x256xf32>, vector<4x256xf32> -> vector<4x256xf32>
    %38 = vector.extract_strided_slice %37 {offsets = [0, 0], sizes = [2, 256], strides = [1, 1]} : vector<4x256xf32> to vector<2x256xf32>
    %39 = vector.extract_strided_slice %37 {offsets = [2, 0], sizes = [2, 256], strides = [1, 1]} : vector<4x256xf32> to vector<2x256xf32>
    %40 = arith.mulf %38, %38 : vector<2x256xf32>
    %41 = arith.subf %39, %40 : vector<2x256xf32>
    %cst_42 = arith.constant 0.000000e+00 : f32
    %42 = vector.broadcast %cst_42 : f32 to vector<2x256xf32>
    %43 = arith.maximumf %41, %42 : vector<2x256xf32>
    %cst_43 = arith.constant 9.99999974E-6 : f32
    %44 = vector.broadcast %cst_43 : f32 to vector<2x256xf32>
    %45 = arith.addf %43, %44 : vector<2x256xf32>
    %46 = math.rsqrt %45 : vector<2x256xf32>
    %47 = vector.broadcast %2 : vector<1x256xf32> to vector<2x256xf32>
    %48 = arith.mulf %46, %47 : vector<2x256xf32>
    %49 = arith.mulf %38, %48 : vector<2x256xf32>
    %50 = vector.broadcast %3 : vector<1x256xf32> to vector<2x256xf32>
    %51 = arith.subf %50, %49 : vector<2x256xf32>
    %52 = vector.shape_cast %48 : vector<2x256xf32> to vector<2x1x256xf32>
    %53 = vector.broadcast %52 : vector<2x1x256xf32> to vector<2x16x256xf32>
    %54 = arith.mulf %29, %53 : vector<2x16x256xf32>
    %55 = vector.shape_cast %51 : vector<2x256xf32> to vector<2x1x256xf32>
    %56 = vector.broadcast %55 : vector<2x1x256xf32> to vector<2x16x256xf32>
    %57 = arith.addf %54, %56 : vector<2x16x256xf32>
    %cst_44 = arith.constant 0.000000e+00 : f32
    %58 = vector.broadcast %cst_44 : f32 to vector<2x16x256xf32>
    %59 = arith.maximumf %57, %58 : vector<2x16x256xf32>
    %cst_45 = arith.constant 0.000000e+00 : bf16
    %60 = vector.broadcast %cst_45 : bf16 to vector<2x2x256xbf16>
    %c0_46 = arith.constant 0 : index
    %c0_47 = arith.constant 0 : index
    %c0_48 = arith.constant 0 : index
    %61 = vector.load %arg8[%c0_46, %c0_47, %c0_48] : memref<2x20x256xbf16, #tpu.memory_space<vmem>>, vector<2x2x256xbf16>
    tpu.vector_store %arg8[%c0_46, %c0_47, %c0_48], %60 {strides = array<i32>} : memref<2x20x256xbf16, #tpu.memory_space<vmem>>, vector<2x2x256xbf16>,
    %cst_49 = arith.constant 0.000000e+00 : bf16
    %62 = vector.broadcast %cst_49 : bf16 to vector<2x2x256xbf16>
    %c0_50 = arith.constant 0 : index
    %c18 = arith.constant 18 : index
    %c0_51 = arith.constant 0 : index
    %63 = vector.load %arg8[%c0_50, %c18, %c0_51] : memref<2x20x256xbf16, #tpu.memory_space<vmem>>, vector<2x2x256xbf16>
    tpu.vector_store %arg8[%c0_50, %c18, %c0_51], %62 {strides = array<i32>} : memref<2x20x256xbf16, #tpu.memory_space<vmem>>, vector<2x2x256xbf16>,
    %64 = arith.truncf %59 : vector<2x16x256xf32> to vector<2x16x256xbf16>
    %c0_52 = arith.constant 0 : index
    %c2_53 = arith.constant 2 : index
    %c0_54 = arith.constant 0 : index
    %65 = vector.load %arg8[%c0_52, %c2_53, %c0_54] : memref<2x20x256xbf16, #tpu.memory_space<vmem>>, vector<2x16x256xbf16>
    tpu.vector_store %arg8[%c0_52, %c2_53, %c0_54], %64 {strides = array<i32>} : memref<2x20x256xbf16, #tpu.memory_space<vmem>>, vector<2x16x256xbf16>,
    %c0_55 = arith.constant 0 : index
    %c0_56 = arith.constant 0 : index
    %c0_57 = arith.constant 0 : index
    %66 = vector.load %arg8[%c0_55, %c0_56, %c0_57] : memref<2x20x256xbf16, #tpu.memory_space<vmem>>, vector<2x16x256xbf16>
    %67 = vector.shape_cast %66 : vector<2x16x256xbf16> to vector<32x256xbf16>
    %c0_58 = arith.constant 0 : index
    %c0_59 = arith.constant 0 : index
    %68 = vector.load %arg3[%c0_58, %c0_59] : memref<768x256xbf16, #tpu.memory_space<vmem>>, vector<256x256xbf16>
    %cst_60 = arith.constant dense<0.000000e+00> : vector<32x256xf32>
    %69 = tpu.matmul %67, %68, %cst_60 {dimension_numbers = #tpu.dot_dimension_numbers<[1], [0], [0], [1], [0, 0, 1, 1], [], []>} : vector<32x256xbf16>, vector<256x256xbf16>, vector<32x256xf32> -> vector<32x256xf32>
    %c0_61 = arith.constant 0 : index
    %c2_62 = arith.constant 2 : index
    %c0_63 = arith.constant 0 : index
    %70 = vector.load %arg8[%c0_61, %c2_62, %c0_63] : memref<2x20x256xbf16, #tpu.memory_space<vmem>>, vector<2x16x256xbf16>
    %71 = vector.shape_cast %70 : vector<2x16x256xbf16> to vector<32x256xbf16>
    %c256_64 = arith.constant 256 : index
    %c0_65 = arith.constant 0 : index
    %72 = vector.load %arg3[%c256_64, %c0_65] : memref<768x256xbf16, #tpu.memory_space<vmem>>, vector<256x256xbf16>
    %cst_66 = arith.constant dense<0.000000e+00> : vector<32x256xf32>
    %73 = tpu.matmul %71, %72, %cst_66 {dimension_numbers = #tpu.dot_dimension_numbers<[1], [0], [0], [1], [0, 0, 1, 1], [], []>} : vector<32x256xbf16>, vector<256x256xbf16>, vector<32x256xf32> -> vector<32x256xf32>
    %74 = arith.addf %69, %73 : vector<32x256xf32>
    %c0_67 = arith.constant 0 : index
    %c4_68 = arith.constant 4 : index
    %c0_69 = arith.constant 0 : index
    %75 = vector.load %arg8[%c0_67, %c4_68, %c0_69] : memref<2x20x256xbf16, #tpu.memory_space<vmem>>, vector<2x16x256xbf16>
    %76 = vector.shape_cast %75 : vector<2x16x256xbf16> to vector<32x256xbf16>
    %c512_70 = arith.constant 512 : index
    %c0_71 = arith.constant 0 : index
    %77 = vector.load %arg3[%c512_70, %c0_71] : memref<768x256xbf16, #tpu.memory_space<vmem>>, vector<256x256xbf16>
    %cst_72 = arith.constant dense<0.000000e+00> : vector<32x256xf32>
    %78 = tpu.matmul %76, %77, %cst_72 {dimension_numbers = #tpu.dot_dimension_numbers<[1], [0], [0], [1], [0, 0, 1, 1], [], []>} : vector<32x256xbf16>, vector<256x256xbf16>, vector<32x256xf32> -> vector<32x256xf32>
    %79 = arith.addf %74, %78 : vector<32x256xf32>
    %80 = vector.broadcast %4 : vector<1x256xf32> to vector<32x256xf32>
    %81 = arith.addf %79, %80 : vector<32x256xf32>
    %82 = vector.shape_cast %81 : vector<32x256xf32> to vector<2x16x256xf32>
    %cst_73 = arith.constant dense<0.000000e+00> : vector<2x256xf32>
    %83 = vector.multi_reduction <add>, %82, %cst_73 [1] : vector<2x16x256xf32> to vector<2x256xf32>
    %84 = arith.mulf %82, %82 : vector<2x16x256xf32>
    %cst_74 = arith.constant dense<0.000000e+00> : vector<2x256xf32>
    %85 = vector.multi_reduction <add>, %84, %cst_74 [1] : vector<2x16x256xf32> to vector<2x256xf32>
    %86 = tpu.concatenate %83, %85 in 0 : vector<2x256xf32>, vector<2x256xf32> -> vector<4x256xf32>
    %c0_75 = arith.constant 0 : index
    %c0_76 = arith.constant 0 : index
    %87 = vector.load %arg5[%c0_75, %c0_76] : memref<256x16xf32, #tpu.memory_space<vmem>>, vector<256x16xf32>
    %cst_77 = arith.constant dense<0.000000e+00> : vector<4x16xf32>
    %88 = tpu.matmul %86, %87, %cst_77 {dimension_numbers = #tpu.dot_dimension_numbers<[1], [0], [0], [1], [0, 0, 1, 1], [], []>} : vector<4x256xf32>, vector<256x16xf32>, vector<4x16xf32> -> vector<4x16xf32>
    %c0_78 = arith.constant 0 : index
    %c0_79 = arith.constant 0 : index
    %89 = vector.load %arg6[%c0_78, %c0_79] : memref<16x256xf32, #tpu.memory_space<vmem>>, vector<16x256xf32>
    %cst_80 = arith.constant dense<0.000000e+00> : vector<4x256xf32>
    %90 = tpu.matmul %88, %89, %cst_80 {dimension_numbers = #tpu.dot_dimension_numbers<[1], [0], [0], [1], [0, 0, 1, 1], [], []>} : vector<4x16xf32>, vector<16x256xf32>, vector<4x256xf32> -> vector<4x256xf32>
    %91 = vector.extract_strided_slice %90 {offsets = [0, 0], sizes = [2, 256], strides = [1, 1]} : vector<4x256xf32> to vector<2x256xf32>
    %92 = vector.extract_strided_slice %90 {offsets = [2, 0], sizes = [2, 256], strides = [1, 1]} : vector<4x256xf32> to vector<2x256xf32>
    %93 = arith.mulf %91, %91 : vector<2x256xf32>
    %94 = arith.subf %92, %93 : vector<2x256xf32>
    %cst_81 = arith.constant 0.000000e+00 : f32
    %95 = vector.broadcast %cst_81 : f32 to vector<2x256xf32>
    %96 = arith.maximumf %94, %95 : vector<2x256xf32>
    %cst_82 = arith.constant 9.99999974E-6 : f32
    %97 = vector.broadcast %cst_82 : f32 to vector<2x256xf32>
    %98 = arith.addf %96, %97 : vector<2x256xf32>
    %99 = math.rsqrt %98 : vector<2x256xf32>
    %100 = vector.broadcast %5 : vector<1x256xf32> to vector<2x256xf32>
    %101 = arith.mulf %99, %100 : vector<2x256xf32>
    %102 = arith.mulf %91, %101 : vector<2x256xf32>
    %103 = vector.broadcast %6 : vector<1x256xf32> to vector<2x256xf32>
    %104 = arith.subf %103, %102 : vector<2x256xf32>
    %105 = vector.shape_cast %101 : vector<2x256xf32> to vector<2x1x256xf32>
    %106 = vector.broadcast %105 : vector<2x1x256xf32> to vector<2x16x256xf32>
    %107 = arith.mulf %82, %106 : vector<2x16x256xf32>
    %108 = vector.shape_cast %104 : vector<2x256xf32> to vector<2x1x256xf32>
    %109 = vector.broadcast %108 : vector<2x1x256xf32> to vector<2x16x256xf32>
    %110 = arith.addf %107, %109 : vector<2x16x256xf32>
    %111 = arith.addf %110, %0 : vector<2x16x256xf32>
    %cst_83 = arith.constant 0.000000e+00 : f32
    %112 = vector.broadcast %cst_83 : f32 to vector<2x16x256xf32>
    %113 = arith.maximumf %111, %112 : vector<2x16x256xf32>
    %c0_84 = arith.constant 0 : index
    %c0_85 = arith.constant 0 : index
    %c0_86 = arith.constant 0 : index
    %114 = vector.load %arg7[%c0_84, %c0_85, %c0_86] : memref<2x16x256xf32, #tpu.memory_space<vmem>>, vector<2x16x256xf32>
    tpu.vector_store %arg7[%c0_84, %c0_85, %c0_86], %113 {strides = array<i32>} : memref<2x16x256xf32, #tpu.memory_space<vmem>>, vector<2x16x256xf32>,
    return
  }
  func.func @transform_0(%arg0: i32) -> (i32, i32, i32) {
    %c0_i32 = arith.constant 0 : i32
    %c0_i32_0 = arith.constant 0 : i32
    %c0_i32_1 = arith.constant 0 : i32
    return %arg0, %c0_i32, %c0_i32_0 : i32, i32, i32
  }
  func.func @transform_1(%arg0: i32) -> (i32, i32) {
    %c0_i32 = arith.constant 0 : i32
    %c0_i32_0 = arith.constant 0 : i32
    %c0_i32_1 = arith.constant 0 : i32
    return %c0_i32, %c0_i32_0 : i32, i32
  }
  func.func @transform_2(%arg0: i32) -> (i32, i32) {
    %c0_i32 = arith.constant 0 : i32
    %c0_i32_0 = arith.constant 0 : i32
    %c0_i32_1 = arith.constant 0 : i32
    return %c0_i32, %c0_i32_0 : i32, i32
  }
  func.func @transform_3(%arg0: i32) -> (i32, i32) {
    %c0_i32 = arith.constant 0 : i32
    %c0_i32_0 = arith.constant 0 : i32
    %c0_i32_1 = arith.constant 0 : i32
    return %c0_i32, %c0_i32_0 : i32, i32
  }
  func.func @transform_4(%arg0: i32) -> (i32, i32) {
    %c0_i32 = arith.constant 0 : i32
    %c0_i32_0 = arith.constant 0 : i32
    %c0_i32_1 = arith.constant 0 : i32
    return %c0_i32, %c0_i32_0 : i32, i32
  }
  func.func @transform_5(%arg0: i32) -> (i32, i32) {
    %c0_i32 = arith.constant 0 : i32
    %c0_i32_0 = arith.constant 0 : i32
    %c0_i32_1 = arith.constant 0 : i32
    return %c0_i32, %c0_i32_0 : i32, i32
  }
  func.func @transform_6(%arg0: i32) -> (i32, i32, i32) {
    %c0_i32 = arith.constant 0 : i32
    %c0_i32_0 = arith.constant 0 : i32
    %c0_i32_1 = arith.constant 0 : i32
    return %arg0, %c0_i32, %c0_i32_0 : i32, i32, i32
  }
}

module attributes {stable_mosaic.version = 11 : i64} {
  func.func @kernel(%arg0: i32, %arg1: memref<2x16x256xf32, #tpu.memory_space<vmem>>, %arg2: memref<768x256xbf16, #tpu.memory_space<vmem>>, %arg3: memref<768x256xbf16, #tpu.memory_space<vmem>>, %arg4: memref<8x256xf32, #tpu.memory_space<vmem>>, %arg5: memref<256x16xf32, #tpu.memory_space<vmem>>, %arg6: memref<16x256xf32, #tpu.memory_space<vmem>>, %arg7: memref<2x16x256xf32, #tpu.memory_space<vmem>>, %arg8: memref<2x20x256xbf16, #tpu.memory_space<vmem>>) attributes {dimension_semantics = [#tpu.dimension_semantics<parallel>], iteration_bounds = array<i64: 1>, scalar_prefetch = 0 : i64, scratch_operands = 1 : i64, tpu.core_type = #tpu.core_type<tc>, window_params = [{transform_indices = @transform_0, window_bounds = array<i64: 2, 16, 256>}, {pipeline_mode = #tpu.pipeline_mode<synchronous>, transform_indices = @transform_1, window_bounds = array<i64: 768, 256>}, {pipeline_mode = #tpu.pipeline_mode<synchronous>, transform_indices = @transform_2, window_bounds = array<i64: 768, 256>}, {pipeline_mode = #tpu.pipeline_mode<synchronous>, transform_indices = @transform_3, window_bounds = array<i64: 8, 256>}, {pipeline_mode = #tpu.pipeline_mode<synchronous>, transform_indices = @transform_4, window_bounds = array<i64: 256, 16>}, {pipeline_mode = #tpu.pipeline_mode<synchronous>, transform_indices = @transform_5, window_bounds = array<i64: 16, 256>}, {transform_indices = @transform_6, window_bounds = array<i64: 2, 16, 256>}]} {
    %c0 = arith.constant 0 : index
    %c0_0 = arith.constant 0 : index
    %c0_1 = arith.constant 0 : index
    %0 = vector.load %arg1[%c0, %c0_0, %c0_1] : memref<2x16x256xf32, #tpu.memory_space<vmem>>, vector<2x16x256xf32>
    %c0_2 = arith.constant 0 : index
    %c0_3 = arith.constant 0 : index
    %1 = vector.load %arg4[%c0_2, %c0_3] : memref<8x256xf32, #tpu.memory_space<vmem>>, vector<1x256xf32>
    %c1 = arith.constant 1 : index
    %c0_4 = arith.constant 0 : index
    %2 = vector.load %arg4[%c1, %c0_4] : memref<8x256xf32, #tpu.memory_space<vmem>>, vector<1x256xf32>
    %c2 = arith.constant 2 : index
    %c0_5 = arith.constant 0 : index
    %3 = vector.load %arg4[%c2, %c0_5] : memref<8x256xf32, #tpu.memory_space<vmem>>, vector<1x256xf32>
    %c3 = arith.constant 3 : index
    %c0_6 = arith.constant 0 : index
    %4 = vector.load %arg4[%c3, %c0_6] : memref<8x256xf32, #tpu.memory_space<vmem>>, vector<1x256xf32>
    %c4 = arith.constant 4 : index
    %c0_7 = arith.constant 0 : index
    %5 = vector.load %arg4[%c4, %c0_7] : memref<8x256xf32, #tpu.memory_space<vmem>>, vector<1x256xf32>
    %c5 = arith.constant 5 : index
    %c0_8 = arith.constant 0 : index
    %6 = vector.load %arg4[%c5, %c0_8] : memref<8x256xf32, #tpu.memory_space<vmem>>, vector<1x256xf32>
    %cst = arith.constant 0.000000e+00 : bf16
    %7 = vector.broadcast %cst : bf16 to vector<2x1x256xbf16>
    %c0_9 = arith.constant 0 : index
    %c0_10 = arith.constant 0 : index
    %c0_11 = arith.constant 0 : index
    %8 = vector.load %arg8[%c0_9, %c0_10, %c0_11] : memref<2x20x256xbf16, #tpu.memory_space<vmem>>, vector<2x1x256xbf16>
    tpu.vector_store %arg8[%c0_9, %c0_10, %c0_11], %7 {strides = array<i32>} : memref<2x20x256xbf16, #tpu.memory_space<vmem>>, vector<2x1x256xbf16>,
    %cst_12 = arith.constant 0.000000e+00 : bf16
    %9 = vector.broadcast %cst_12 : bf16 to vector<2x1x256xbf16>
    %c0_13 = arith.constant 0 : index
    %c17 = arith.constant 17 : index
    %c0_14 = arith.constant 0 : index
    %10 = vector.load %arg8[%c0_13, %c17, %c0_14] : memref<2x20x256xbf16, #tpu.memory_space<vmem>>, vector<2x1x256xbf16>
    tpu.vector_store %arg8[%c0_13, %c17, %c0_14], %9 {strides = array<i32>} : memref<2x20x256xbf16, #tpu.memory_space<vmem>>, vector<2x1x256xbf16>,
    %11 = arith.truncf %0 : vector<2x16x256xf32> to vector<2x16x256xbf16>
    %c0_15 = arith.constant 0 : index
    %c1_16 = arith.constant 1 : index
    %c0_17 = arith.constant 0 : index
    %12 = vector.load %arg8[%c0_15, %c1_16, %c0_17] : memref<2x20x256xbf16, #tpu.memory_space<vmem>>, vector<2x16x256xbf16>
    tpu.vector_store %arg8[%c0_15, %c1_16, %c0_17], %11 {strides = array<i32>} : memref<2x20x256xbf16, #tpu.memory_space<vmem>>, vector<2x16x256xbf16>,
    %c0_18 = arith.constant 0 : index
    %c0_19 = arith.constant 0 : index
    %c0_20 = arith.constant 0 : index
    %13 = vector.load %arg8[%c0_18, %c0_19, %c0_20] : memref<2x20x256xbf16, #tpu.memory_space<vmem>>, vector<2x16x256xbf16>
    %14 = vector.shape_cast %13 : vector<2x16x256xbf16> to vector<32x256xbf16>
    %c0_21 = arith.constant 0 : index
    %c0_22 = arith.constant 0 : index
    %15 = vector.load %arg2[%c0_21, %c0_22] : memref<768x256xbf16, #tpu.memory_space<vmem>>, vector<256x256xbf16>
    %cst_23 = arith.constant dense<0.000000e+00> : vector<32x256xf32>
    %16 = tpu.matmul %14, %15, %cst_23 {dimension_numbers = #tpu.dot_dimension_numbers<[1], [0], [0], [1], [0, 0, 1, 1], [], []>} : vector<32x256xbf16>, vector<256x256xbf16>, vector<32x256xf32> -> vector<32x256xf32>
    %c0_24 = arith.constant 0 : index
    %c1_25 = arith.constant 1 : index
    %c0_26 = arith.constant 0 : index
    %17 = vector.load %arg8[%c0_24, %c1_25, %c0_26] : memref<2x20x256xbf16, #tpu.memory_space<vmem>>, vector<2x16x256xbf16>
    %18 = vector.shape_cast %17 : vector<2x16x256xbf16> to vector<32x256xbf16>
    %c256 = arith.constant 256 : index
    %c0_27 = arith.constant 0 : index
    %19 = vector.load %arg2[%c256, %c0_27] : memref<768x256xbf16, #tpu.memory_space<vmem>>, vector<256x256xbf16>
    %cst_28 = arith.constant dense<0.000000e+00> : vector<32x256xf32>
    %20 = tpu.matmul %18, %19, %cst_28 {dimension_numbers = #tpu.dot_dimension_numbers<[1], [0], [0], [1], [0, 0, 1, 1], [], []>} : vector<32x256xbf16>, vector<256x256xbf16>, vector<32x256xf32> -> vector<32x256xf32>
    %21 = arith.addf %16, %20 : vector<32x256xf32>
    %c0_29 = arith.constant 0 : index
    %c2_30 = arith.constant 2 : index
    %c0_31 = arith.constant 0 : index
    %22 = vector.load %arg8[%c0_29, %c2_30, %c0_31] : memref<2x20x256xbf16, #tpu.memory_space<vmem>>, vector<2x16x256xbf16>
    %23 = vector.shape_cast %22 : vector<2x16x256xbf16> to vector<32x256xbf16>
    %c512 = arith.constant 512 : index
    %c0_32 = arith.constant 0 : index
    %24 = vector.load %arg2[%c512, %c0_32] : memref<768x256xbf16, #tpu.memory_space<vmem>>, vector<256x256xbf16>
    %cst_33 = arith.constant dense<0.000000e+00> : vector<32x256xf32>
    %25 = tpu.matmul %23, %24, %cst_33 {dimension_numbers = #tpu.dot_dimension_numbers<[1], [0], [0], [1], [0, 0, 1, 1], [], []>} : vector<32x256xbf16>, vector<256x256xbf16>, vector<32x256xf32> -> vector<32x256xf32>
    %26 = arith.addf %21, %25 : vector<32x256xf32>
    %27 = vector.broadcast %1 : vector<1x256xf32> to vector<32x256xf32>
    %28 = arith.addf %26, %27 : vector<32x256xf32>
    %29 = vector.shape_cast %28 : vector<32x256xf32> to vector<2x16x256xf32>
    %cst_34 = arith.constant dense<0.000000e+00> : vector<2x256xf32>
    %30 = vector.multi_reduction <add>, %29, %cst_34 [1] : vector<2x16x256xf32> to vector<2x256xf32>
    %31 = arith.mulf %29, %29 : vector<2x16x256xf32>
    %cst_35 = arith.constant dense<0.000000e+00> : vector<2x256xf32>
    %32 = vector.multi_reduction <add>, %31, %cst_35 [1] : vector<2x16x256xf32> to vector<2x256xf32>
    %33 = tpu.concatenate %30, %32 in 0 : vector<2x256xf32>, vector<2x256xf32> -> vector<4x256xf32>
    %c0_36 = arith.constant 0 : index
    %c0_37 = arith.constant 0 : index
    %34 = vector.load %arg5[%c0_36, %c0_37] : memref<256x16xf32, #tpu.memory_space<vmem>>, vector<256x16xf32>
    %cst_38 = arith.constant dense<0.000000e+00> : vector<4x16xf32>
    %35 = tpu.matmul %33, %34, %cst_38 {dimension_numbers = #tpu.dot_dimension_numbers<[1], [0], [0], [1], [0, 0, 1, 1], [], []>} : vector<4x256xf32>, vector<256x16xf32>, vector<4x16xf32> -> vector<4x16xf32>
    %c0_39 = arith.constant 0 : index
    %c0_40 = arith.constant 0 : index
    %36 = vector.load %arg6[%c0_39, %c0_40] : memref<16x256xf32, #tpu.memory_space<vmem>>, vector<16x256xf32>
    %cst_41 = arith.constant dense<0.000000e+00> : vector<4x256xf32>
    %37 = tpu.matmul %35, %36, %cst_41 {dimension_numbers = #tpu.dot_dimension_numbers<[1], [0], [0], [1], [0, 0, 1, 1], [], []>} : vector<4x16xf32>, vector<16x256xf32>, vector<4x256xf32> -> vector<4x256xf32>
    %38 = vector.extract_strided_slice %37 {offsets = [0, 0], sizes = [2, 256], strides = [1, 1]} : vector<4x256xf32> to vector<2x256xf32>
    %39 = vector.extract_strided_slice %37 {offsets = [2, 0], sizes = [2, 256], strides = [1, 1]} : vector<4x256xf32> to vector<2x256xf32>
    %40 = arith.mulf %38, %38 : vector<2x256xf32>
    %41 = arith.subf %39, %40 : vector<2x256xf32>
    %cst_42 = arith.constant 0.000000e+00 : f32
    %42 = vector.broadcast %cst_42 : f32 to vector<2x256xf32>
    %43 = arith.maximumf %41, %42 : vector<2x256xf32>
    %cst_43 = arith.constant 9.99999974E-6 : f32
    %44 = vector.broadcast %cst_43 : f32 to vector<2x256xf32>
    %45 = arith.addf %43, %44 : vector<2x256xf32>
    %46 = math.rsqrt %45 : vector<2x256xf32>
    %47 = vector.broadcast %2 : vector<1x256xf32> to vector<2x256xf32>
    %48 = arith.mulf %46, %47 : vector<2x256xf32>
    %49 = arith.mulf %38, %48 : vector<2x256xf32>
    %50 = vector.broadcast %3 : vector<1x256xf32> to vector<2x256xf32>
    %51 = arith.subf %50, %49 : vector<2x256xf32>
    %52 = vector.shape_cast %48 : vector<2x256xf32> to vector<2x1x256xf32>
    %53 = vector.broadcast %52 : vector<2x1x256xf32> to vector<2x16x256xf32>
    %54 = arith.mulf %29, %53 : vector<2x16x256xf32>
    %55 = vector.shape_cast %51 : vector<2x256xf32> to vector<2x1x256xf32>
    %56 = vector.broadcast %55 : vector<2x1x256xf32> to vector<2x16x256xf32>
    %57 = arith.addf %54, %56 : vector<2x16x256xf32>
    %cst_44 = arith.constant 0.000000e+00 : f32
    %58 = vector.broadcast %cst_44 : f32 to vector<2x16x256xf32>
    %59 = arith.maximumf %57, %58 : vector<2x16x256xf32>
    %cst_45 = arith.constant 0.000000e+00 : bf16
    %60 = vector.broadcast %cst_45 : bf16 to vector<2x2x256xbf16>
    %c0_46 = arith.constant 0 : index
    %c0_47 = arith.constant 0 : index
    %c0_48 = arith.constant 0 : index
    %61 = vector.load %arg8[%c0_46, %c0_47, %c0_48] : memref<2x20x256xbf16, #tpu.memory_space<vmem>>, vector<2x2x256xbf16>
    tpu.vector_store %arg8[%c0_46, %c0_47, %c0_48], %60 {strides = array<i32>} : memref<2x20x256xbf16, #tpu.memory_space<vmem>>, vector<2x2x256xbf16>,
    %cst_49 = arith.constant 0.000000e+00 : bf16
    %62 = vector.broadcast %cst_49 : bf16 to vector<2x2x256xbf16>
    %c0_50 = arith.constant 0 : index
    %c18 = arith.constant 18 : index
    %c0_51 = arith.constant 0 : index
    %63 = vector.load %arg8[%c0_50, %c18, %c0_51] : memref<2x20x256xbf16, #tpu.memory_space<vmem>>, vector<2x2x256xbf16>
    tpu.vector_store %arg8[%c0_50, %c18, %c0_51], %62 {strides = array<i32>} : memref<2x20x256xbf16, #tpu.memory_space<vmem>>, vector<2x2x256xbf16>,
    %64 = arith.truncf %59 : vector<2x16x256xf32> to vector<2x16x256xbf16>
    %c0_52 = arith.constant 0 : index
    %c2_53 = arith.constant 2 : index
    %c0_54 = arith.constant 0 : index
    %65 = vector.load %arg8[%c0_52, %c2_53, %c0_54] : memref<2x20x256xbf16, #tpu.memory_space<vmem>>, vector<2x16x256xbf16>
    tpu.vector_store %arg8[%c0_52, %c2_53, %c0_54], %64 {strides = array<i32>} : memref<2x20x256xbf16, #tpu.memory_space<vmem>>, vector<2x16x256xbf16>,
    %c0_55 = arith.constant 0 : index
    %c0_56 = arith.constant 0 : index
    %c0_57 = arith.constant 0 : index
    %66 = vector.load %arg8[%c0_55, %c0_56, %c0_57] : memref<2x20x256xbf16, #tpu.memory_space<vmem>>, vector<2x16x256xbf16>
    %67 = vector.shape_cast %66 : vector<2x16x256xbf16> to vector<32x256xbf16>
    %c0_58 = arith.constant 0 : index
    %c0_59 = arith.constant 0 : index
    %68 = vector.load %arg3[%c0_58, %c0_59] : memref<768x256xbf16, #tpu.memory_space<vmem>>, vector<256x256xbf16>
    %cst_60 = arith.constant dense<0.000000e+00> : vector<32x256xf32>
    %69 = tpu.matmul %67, %68, %cst_60 {dimension_numbers = #tpu.dot_dimension_numbers<[1], [0], [0], [1], [0, 0, 1, 1], [], []>} : vector<32x256xbf16>, vector<256x256xbf16>, vector<32x256xf32> -> vector<32x256xf32>
    %c0_61 = arith.constant 0 : index
    %c2_62 = arith.constant 2 : index
    %c0_63 = arith.constant 0 : index
    %70 = vector.load %arg8[%c0_61, %c2_62, %c0_63] : memref<2x20x256xbf16, #tpu.memory_space<vmem>>, vector<2x16x256xbf16>
    %71 = vector.shape_cast %70 : vector<2x16x256xbf16> to vector<32x256xbf16>
    %c256_64 = arith.constant 256 : index
    %c0_65 = arith.constant 0 : index
    %72 = vector.load %arg3[%c256_64, %c0_65] : memref<768x256xbf16, #tpu.memory_space<vmem>>, vector<256x256xbf16>
    %cst_66 = arith.constant dense<0.000000e+00> : vector<32x256xf32>
    %73 = tpu.matmul %71, %72, %cst_66 {dimension_numbers = #tpu.dot_dimension_numbers<[1], [0], [0], [1], [0, 0, 1, 1], [], []>} : vector<32x256xbf16>, vector<256x256xbf16>, vector<32x256xf32> -> vector<32x256xf32>
    %74 = arith.addf %69, %73 : vector<32x256xf32>
    %c0_67 = arith.constant 0 : index
    %c4_68 = arith.constant 4 : index
    %c0_69 = arith.constant 0 : index
    %75 = vector.load %arg8[%c0_67, %c4_68, %c0_69] : memref<2x20x256xbf16, #tpu.memory_space<vmem>>, vector<2x16x256xbf16>
    %76 = vector.shape_cast %75 : vector<2x16x256xbf16> to vector<32x256xbf16>
    %c512_70 = arith.constant 512 : index
    %c0_71 = arith.constant 0 : index
    %77 = vector.load %arg3[%c512_70, %c0_71] : memref<768x256xbf16, #tpu.memory_space<vmem>>, vector<256x256xbf16>
    %cst_72 = arith.constant dense<0.000000e+00> : vector<32x256xf32>
    %78 = tpu.matmul %76, %77, %cst_72 {dimension_numbers = #tpu.dot_dimension_numbers<[1], [0], [0], [1], [0, 0, 1, 1], [], []>} : vector<32x256xbf16>, vector<256x256xbf16>, vector<32x256xf32> -> vector<32x256xf32>
    %79 = arith.addf %74, %78 : vector<32x256xf32>
    %80 = vector.broadcast %4 : vector<1x256xf32> to vector<32x256xf32>
    %81 = arith.addf %79, %80 : vector<32x256xf32>
    %82 = vector.shape_cast %81 : vector<32x256xf32> to vector<2x16x256xf32>
    %cst_73 = arith.constant dense<0.000000e+00> : vector<2x256xf32>
    %83 = vector.multi_reduction <add>, %82, %cst_73 [1] : vector<2x16x256xf32> to vector<2x256xf32>
    %84 = arith.mulf %82, %82 : vector<2x16x256xf32>
    %cst_74 = arith.constant dense<0.000000e+00> : vector<2x256xf32>
    %85 = vector.multi_reduction <add>, %84, %cst_74 [1] : vector<2x16x256xf32> to vector<2x256xf32>
    %86 = tpu.concatenate %83, %85 in 0 : vector<2x256xf32>, vector<2x256xf32> -> vector<4x256xf32>
    %c0_75 = arith.constant 0 : index
    %c0_76 = arith.constant 0 : index
    %87 = vector.load %arg5[%c0_75, %c0_76] : memref<256x16xf32, #tpu.memory_space<vmem>>, vector<256x16xf32>
    %cst_77 = arith.constant dense<0.000000e+00> : vector<4x16xf32>
    %88 = tpu.matmul %86, %87, %cst_77 {dimension_numbers = #tpu.dot_dimension_numbers<[1], [0], [0], [1], [0, 0, 1, 1], [], []>} : vector<4x256xf32>, vector<256x16xf32>, vector<4x16xf32> -> vector<4x16xf32>
    %c0_78 = arith.constant 0 : index
    %c0_79 = arith.constant 0 : index
    %89 = vector.load %arg6[%c0_78, %c0_79] : memref<16x256xf32, #tpu.memory_space<vmem>>, vector<16x256xf32>
    %cst_80 = arith.constant dense<0.000000e+00> : vector<4x256xf32>
    %90 = tpu.matmul %88, %89, %cst_80 {dimension_numbers = #tpu.dot_dimension_numbers<[1], [0], [0], [1], [0, 0, 1, 1], [], []>} : vector<4x16xf32>, vector<16x256xf32>, vector<4x256xf32> -> vector<4x256xf32>
    %91 = vector.extract_strided_slice %90 {offsets = [0, 0], sizes = [2, 256], strides = [1, 1]} : vector<4x256xf32> to vector<2x256xf32>
    %92 = vector.extract_strided_slice %90 {offsets = [2, 0], sizes = [2, 256], strides = [1, 1]} : vector<4x256xf32> to vector<2x256xf32>
    %93 = arith.mulf %91, %91 : vector<2x256xf32>
    %94 = arith.subf %92, %93 : vector<2x256xf32>
    %cst_81 = arith.constant 0.000000e+00 : f32
    %95 = vector.broadcast %cst_81 : f32 to vector<2x256xf32>
    %96 = arith.maximumf %94, %95 : vector<2x256xf32>
    %cst_82 = arith.constant 9.99999974E-6 : f32
    %97 = vector.broadcast %cst_82 : f32 to vector<2x256xf32>
    %98 = arith.addf %96, %97 : vector<2x256xf32>
    %99 = math.rsqrt %98 : vector<2x256xf32>
    %100 = vector.broadcast %5 : vector<1x256xf32> to vector<2x256xf32>
    %101 = arith.mulf %99, %100 : vector<2x256xf32>
    %102 = arith.mulf %91, %101 : vector<2x256xf32>
    %103 = vector.broadcast %6 : vector<1x256xf32> to vector<2x256xf32>
    %104 = arith.subf %103, %102 : vector<2x256xf32>
    %105 = vector.shape_cast %101 : vector<2x256xf32> to vector<2x1x256xf32>
    %106 = vector.broadcast %105 : vector<2x1x256xf32> to vector<2x16x256xf32>
    %107 = arith.mulf %82, %106 : vector<2x16x256xf32>
    %108 = vector.shape_cast %104 : vector<2x256xf32> to vector<2x1x256xf32>
    %109 = vector.broadcast %108 : vector<2x1x256xf32> to vector<2x16x256xf32>
    %110 = arith.addf %107, %109 : vector<2x16x256xf32>
    %111 = arith.addf %110, %0 : vector<2x16x256xf32>
    %cst_83 = arith.constant 0.000000e+00 : f32
    %112 = vector.broadcast %cst_83 : f32 to vector<2x16x256xf32>
    %113 = arith.maximumf %111, %112 : vector<2x16x256xf32>
    %c0_84 = arith.constant 0 : index
    %c0_85 = arith.constant 0 : index
    %c0_86 = arith.constant 0 : index
    %114 = vector.load %arg7[%c0_84, %c0_85, %c0_86] : memref<2x16x256xf32, #tpu.memory_space<vmem>>, vector<2x16x256xf32>
    tpu.vector_store %arg7[%c0_84, %c0_85, %c0_86], %113 {strides = array<i32>} : memref<2x16x256xf32, #tpu.memory_space<vmem>>, vector<2x16x256xf32>,
    return
  }
  func.func @transform_0(%arg0: i32) -> (i32, i32, i32) {
    %c0_i32 = arith.constant 0 : i32
    %c0_i32_0 = arith.constant 0 : i32
    %c0_i32_1 = arith.constant 0 : i32
    return %arg0, %c0_i32, %c0_i32_0 : i32, i32, i32
  }
  func.func @transform_1(%arg0: i32) -> (i32, i32) {
    %c0_i32 = arith.constant 0 : i32
    %c0_i32_0 = arith.constant 0 : i32
    %c0_i32_1 = arith.constant 0 : i32
    return %c0_i32, %c0_i32_0 : i32, i32
  }
  func.func @transform_2(%arg0: i32) -> (i32, i32) {
    %c0_i32 = arith.constant 0 : i32
    %c0_i32_0 = arith.constant 0 : i32
    %c0_i32_1 = arith.constant 0 : i32
    return %c0_i32, %c0_i32_0 : i32, i32
  }
  func.func @transform_3(%arg0: i32) -> (i32, i32) {
    %c0_i32 = arith.constant 0 : i32
    %c0_i32_0 = arith.constant 0 : i32
    %c0_i32_1 = arith.constant 0 : i32
    return %c0_i32, %c0_i32_0 : i32, i32
  }
  func.func @transform_4(%arg0: i32) -> (i32, i32) {
    %c0_i32 = arith.constant 0 : i32
    %c0_i32_0 = arith.constant 0 : i32
    %c0_i32_1 = arith.constant 0 : i32
    return %c0_i32, %c0_i32_0 : i32, i32
  }
  func.func @transform_5(%arg0: i32) -> (i32, i32) {
    %c0_i32 = arith.constant 0 : i32
    %c0_i32_0 = arith.constant 0 : i32
    %c0_i32_1 = arith.constant 0 : i32
    return %c0_i32, %c0_i32_0 : i32, i32
  }
  func.func @transform_6(%arg0: i32) -> (i32, i32, i32) {
    %c0_i32 = arith.constant 0 : i32
    %c0_i32_0 = arith.constant 0 : i32
    %c0_i32_1 = arith.constant 0 : i32
    return %arg0, %c0_i32, %c0_i32_0 : i32, i32, i32
  }
}

</mosaic_0001>

<bundles_post_ra>
// kernel: tpu_custom_call.1
= control target key start
LH: loop header
LB: loop body
LE: loop exit
PB: predicated region body
PF: predicated region fallthrough
CT: control target
= control target key end

     0   :  { %11 = vsyncpa [#allocation4], 0  ;;  %s4765_s0 = inlined_call_operand.vmem [shape: f32[2,16,256], index: 0, kind: input, shape index: {}]   ;;  %s4766_s1 = inlined_call_operand.hbm [shape: bf16[768,256], index: 1, kind: input, shape index: {}]   ;;  %s4767_s2 = inlined_call_operand.hbm [shape: bf16[768,256], index: 2, kind: input, shape index: {}]   ;;  %s4768_s3 = inlined_call_operand.vmem [shape: f32[8,256], index: 3, kind: input, shape index: {}]   ;;  %s4769_s4 = inlined_call_operand.vmem [shape: f32[256,16], index: 4, kind: input, shape index: {}]   ;;  %s4770_s5 = inlined_call_operand.vmem [shape: f32[16,256], index: 5, kind: input, shape index: {}]   ;;  %s4771_s6 = inlined_call_operand.hbm [shape: f32[2,16,256], index: 6, kind: output, shape index: {}]  }
   0x1   :  { %12 = vsyncpa [#allocation7], 0 }
   0x2   :  { %13 = vsyncpa [#allocation5], 0  ;;  %s20_s23 = sshll.u32 %s4766_s1, 4  ;;  %s3861_s24 = smov [#allocation3]   ;;  %s21_s23 = int_to_ptr.hbm [resolvable:$true] %s20_s23 }
   0x3   :  { %s22_s25 = sshll.u32 %s3861_s24, 4  ;;  %s33_s28 = sshll.u32 %s4767_s2, 4  ;;  %s23_s25 = int_to_ptr.vmem [resolvable:$true] %s22_s25  ;;  %s34_s28 = int_to_ptr.hbm [resolvable:$true] %s33_s28 }
   0x4   :  { %s3862_s29 = smov 128   ;;  %s3863_s30 = smov 8  }
   0x5   :  { %28 = dma.hbm_to_vmem [thread:$0]  %s21_s23, 12288, %s23_s25, [#allocation4], %s3862_s29, %s3862_s29, %s3863_s30  }
   0x6   :  { %s3864_s7 = smov [#allocation6]  }
   0x7   :  { %s35_s8 = sshll.u32 %s3864_s7, 4  ;;  %s36_s8 = int_to_ptr.vmem [resolvable:$true] %s35_s8 }
   0x8   :  { %41 = dma.hbm_to_vmem [thread:$0]  %s34_s28, 12288, %s36_s8, [#allocation7], %s3862_s29, %s3862_s29, %s3863_s30  }
   0x9   :  { %3855 = dma.done.wait [#allocation4], 12288  }
   0xa   :  { %3856 = vsyncadd [#allocation4], 4294955008 }
   0xb   :  { %3857 = dma.done.wait [#allocation7], 12288  }
   0xc   :  { %3858 = vsyncadd [#allocation7], 4294955008  ;;  %vm77_vm0 = vsmask.f32 256  ;;  %vm76_vm1 = vcmask 1040384   ;;  %vm79_vm2 = vcmask 1044484  }
   0xd   :  { %vm80_vm3 = vsmask.f32 4352  ;;  %vm89_vm4 = vsmask.f32 7938  ;;  %v2807_v0 = vld [vmem:[#allocation3 + $0x170] sm:$0xf]  ;;  %vm3912_vm6 = vmand %vm76_vm1, %vm77_vm0 }
   0xe   :  { %v3610_v1 = vld [vmem:[#allocation3 + $0x174] sm:$0xf0]  ;;  %v2871_v2 = vld [vmem:[#allocation3 + $0x1f0] sm:$0xf]  ;;  %vm91_vm5 = vsmask.f32 7954  ;;  %vm3918_vm7 = vmand %vm79_vm2, %vm80_vm3 }
   0xf   :  { %v2808_v3 = vor.u32 %v3610_v1, %v2807_v0  ;;  %v3626_v4 = vld [vmem:[#allocation3 + $0x1f4] sm:$0xf0]  ;;  %v3609_v5 = vld [vmem:[#allocation3 + $0x174] sm:$0xf]  ;;  %v2809_v6 = vld [vmem:[#allocation3 + $0x178] sm:$0xf0] }
  0x10   :  { %v2872_v7 = vor.u32 %v3626_v4, %v2871_v2  ;;  %v2812_v8 = vor.u32 %v3609_v5, %v2809_v6  ;;  %v3625_v9 = vld [vmem:[#allocation3 + $0x1f4] sm:$0xf]  ;;  %v2873_v10 = vld [vmem:[#allocation3 + $0x1f8] sm:$0xf0]  ;;  %v2799_v11 = vld [vmem:[#allocation3 + $0x160] sm:$0xf] }
  0x11   :  { %462 = vmatpush.bf16.msra.mxu0 %v2808_v3  ;;  %v2876_v12 = vor.u32 %v3625_v9, %v2873_v10  ;;  %v3608_v13 = vld [vmem:[#allocation3 + $0x164] sm:$0xf0]  ;;  %v2863_v14 = vld [vmem:[#allocation3 + $0x1e0] sm:$0xf]  ;;  %v3607_v20 = vld [vmem:[#allocation3 + $0x164] sm:$0xf] }
  0x12   :  { %v3624_v15 = vld [vmem:[#allocation3 + $0x1e4] sm:$0xf0]  ;;  %481 = vmatpush.bf16.msra.mxu1 %v2872_v7  ;;  %500 = vmatpush.bf16.msra.mxu2 %v2812_v8  ;;  %v2800_v18 = vor.u32 %v3608_v13, %v2799_v11  ;;  %v2801_v21 = vld [vmem:[#allocation3 + $0x168] sm:$0xf0]  ;;  %v3623_v22 = vld [vmem:[#allocation3 + $0x1e4] sm:$0xf] }
  0x13   :  { %v2864_v19 = vor.u32 %v3624_v15, %v2863_v14  ;;  %519 = vmatpush.bf16.msra.mxu3 %v2876_v12  ;;  %v2804_v23 = vor.u32 %v3607_v20, %v2801_v21  ;;  %v2865_v24 = vld [vmem:[#allocation3 + $0x1e8] sm:$0xf0]  ;;  %v2791_v25 = vld [vmem:[#allocation3 + $0x150] sm:$0xf]  ;;  %v3606_v26 = vld [vmem:[#allocation3 + $0x154] sm:$0xf0] }
  0x14   :  { %v2868_v27 = vor.u32 %v3623_v22, %v2865_v24  ;;  %v2855_v28 = vld [vmem:[#allocation3 + $0x1d0] sm:$0xf]  ;;  %v3622_v29 = vld [vmem:[#allocation3 + $0x1d4] sm:$0xf0]  ;;  %v3605_v30 = vld [vmem:[#allocation3 + $0x154] sm:$0xf]  ;;  %v2792_v31 = vor.u32 %v3606_v26, %v2791_v25 }
  0x15   :  { %463 = vmatpush.bf16.msra.mxu0 %v2800_v18  ;;  %v2793_v32 = vld [vmem:[#allocation3 + $0x158] sm:$0xf0]  ;;  %v3621_v33 = vld [vmem:[#allocation3 + $0x1d4] sm:$0xf]  ;;  %v2856_v35 = vor.u32 %v3622_v29, %v2855_v28  ;;  %v2783_v37 = vld [vmem:[#allocation3 + $0x140] sm:$0xf] }
  0x16   :  { %v2857_v34 = vld [vmem:[#allocation3 + $0x1d8] sm:$0xf0]  ;;  %482 = vmatpush.bf16.msra.mxu1 %v2864_v19  ;;  %501 = vmatpush.bf16.msra.mxu2 %v2804_v23  ;;  %v2796_v36 = vor.u32 %v3605_v30, %v2793_v32  ;;  %v3604_v38 = vld [vmem:[#allocation3 + $0x144] sm:$0xf0]  ;;  %v2847_v39 = vld [vmem:[#allocation3 + $0x1c0] sm:$0xf] }
  0x17   :  { %520 = vmatpush.bf16.msra.mxu3 %v2868_v27  ;;  %v2860_v40 = vor.u32 %v3621_v33, %v2857_v34  ;;  %v3620_v41 = vld [vmem:[#allocation3 + $0x1c4] sm:$0xf0]  ;;  %v3603_v42 = vld [vmem:[#allocation3 + $0x144] sm:$0xf]  ;;  %v2785_v43 = vld [vmem:[#allocation3 + $0x148] sm:$0xf0]  ;;  %v2784_v47 = vor.u32 %v3604_v38, %v2783_v37 }
  0x18   :  { %v3619_v44 = vld [vmem:[#allocation3 + $0x1c4] sm:$0xf]  ;;  %v2849_v45 = vld [vmem:[#allocation3 + $0x1c8] sm:$0xf0]  ;;  %vm3924_vm8 = vmand %vm76_vm1, %vm89_vm4  ;;  %v2848_v49 = vor.u32 %v3620_v41, %v2847_v39  ;;  %v2788_v50 = vor.u32 %v3603_v42, %v2785_v43  ;;  %vm146_vm12 = vcmask 1043456   ;;  %vm148_vm13 = vcmask 1047556  }
  0x19   :  { %464 = vmatpush.bf16.msra.mxu0 %v2792_v31  ;;  %vm3930_vm9 = vmand %vm79_vm2, %vm91_vm5  ;;  %v2775_v51 = vld [vmem:[#allocation3 + $0x130] sm:$0xf]  ;;  %v3602_v52 = vld [vmem:[#allocation3 + $0x134] sm:$0xf0]  ;;  %v2852_v54 = vor.u32 %v3619_v44, %v2849_v45  ;;  %vm104_vm14 = vsmask.f32 4368 }
  0x1a   :  { %483 = vmatpush.bf16.msra.mxu1 %v2856_v35  ;;  %502 = vmatpush.bf16.msra.mxu2 %v2796_v36  ;;  %v2839_v53 = vld [vmem:[#allocation3 + $0x1b0] sm:$0xf]  ;;  %v3618_v55 = vld [vmem:[#allocation3 + $0x1b4] sm:$0xf0]  ;;  %v3601_v56 = vld [vmem:[#allocation3 + $0x134] sm:$0xf]  ;;  %v2776_v61 = vor.u32 %v3602_v52, %v2775_v51 }
  0x1b   :  { %521 = vmatpush.bf16.msra.mxu3 %v2860_v40  ;;  %v2777_v57 = vld [vmem:[#allocation3 + $0x138] sm:$0xf0]  ;;  %v3617_v58 = vld [vmem:[#allocation3 + $0x1b4] sm:$0xf]  ;;  %vm3938_vm10 = vmor %vm3918_vm7, %vm3912_vm6  ;;  %v2840_v62 = vor.u32 %v3618_v55, %v2839_v53  ;;  %vm204_vm6 = vsmask.f32 7440 }
  0x1c   :  { %v2841_v59 = vld [vmem:[#allocation3 + $0x1b8] sm:$0xf0]  ;;  %vm93_vm11 = vmor %vm3930_vm9, %vm3924_vm8  ;;  %v2780_v63 = vor.u32 %v3601_v56, %v2777_v57  ;;  %v2767_v0 = vld [vmem:[#allocation3 + $0x120] sm:$0xf]  ;;  %vm800_vm8 = vcmask 1042432   ;;  %vm801_vm9 = vcmask 1046532  }
  0x1d   :  { %465 = vmatpush.bf16.msra.mxu0 %v2784_v47  ;;  %v3600_v1 = vld [vmem:[#allocation3 + $0x124] sm:$0xf0]  ;;  %v2831_v2 = vld [vmem:[#allocation3 + $0x1a0] sm:$0xf]  ;;  %v2844_v3 = vor.u32 %v3617_v58, %v2841_v59  ;;  %v3599_v5 = vld [vmem:[#allocation3 + $0x124] sm:$0xf] }
  0x1e   :  { %484 = vmatpush.bf16.msra.mxu1 %v2848_v49  ;;  %503 = vmatpush.bf16.msra.mxu2 %v2788_v50  ;;  %v3616_v4 = vld [vmem:[#allocation3 + $0x1a4] sm:$0xf0]  ;;  %v2769_v6 = vld [vmem:[#allocation3 + $0x128] sm:$0xf0]  ;;  %v3615_v7 = vld [vmem:[#allocation3 + $0x1a4] sm:$0xf]  ;;  %v2768_v10 = vor.u32 %v3600_v1, %v2767_v0 }
  0x1f   :  { %522 = vmatpush.bf16.msra.mxu3 %v2852_v54  ;;  %v2833_v8 = vld [vmem:[#allocation3 + $0x1a8] sm:$0xf0]  ;;  %v2759_v9 = vld [vmem:[#allocation3 + $0x110] sm:$0xf]  ;;  %v3598_v11 = vld [vmem:[#allocation3 + $0x114] sm:$0xf0]  ;;  %v2832_v14 = vor.u32 %v3616_v4, %v2831_v2  ;;  %v2772_v15 = vor.u32 %v3599_v5, %v2769_v6 }
  0x20   :  { %v2823_v12 = vld [vmem:[#allocation3 + $0x190] sm:$0xf]  ;;  %v3614_v13 = vld [vmem:[#allocation3 + $0x194] sm:$0xf0]  ;;  %v3597_v16 = vld [vmem:[#allocation3 + $0x114] sm:$0xf]  ;;  %v2836_v19 = vor.u32 %v3615_v7, %v2833_v8  ;;  %v2760_v23 = vor.u32 %v3598_v11, %v2759_v9 }
  0x21   :  { %466 = vmatpush.bf16.msra.mxu0 %v2776_v61  ;;  %v2761_v17 = vld [vmem:[#allocation3 + $0x118] sm:$0xf0]  ;;  %v3946_v18 = vld [vmem:[#allocation3 + $0x194] sm:$0xf]  ;;  %v57_v21 = vld [vmem:[%s4765_s0] sm:$0xff]  ;;  %v2824_v24 = vor.u32 %v3614_v13, %v2823_v12  ;;  %s3866_s9 = smov [#allocation8]  }
  0x22   :  { %485 = vmatpush.bf16.msra.mxu1 %v2840_v62  ;;  %504 = vmatpush.bf16.msra.mxu2 %v2780_v63  ;;  %v2825_v20 = vld [vmem:[#allocation3 + $0x198] sm:$0xf0]  ;;  %v58_v22 = vld [vmem:[%s4765_s0 + $0x8] sm:$0xff]  ;;  %v3954_v25 = vld [vmem:[#allocation3 + $0x100] sm:$0xf]  ;;  %v2764_v33 = vor.u32 %v3597_v16, %v2761_v17  ;;  %s2728_s10 = sshll.u32 %s3866_s9, 4  ;;  %s2729_s10 = int_to_ptr.vmem [resolvable:$true] %s2728_s10 }
  0x23   :  { %523 = vmatpush.bf16.msra.mxu3 %v2844_v3  ;;  %v3956_v26 = vld [vmem:[#allocation3 + $0x104] sm:$0xf0]  ;;  %v3958_v27 = vld [vmem:[#allocation3 + $0x180] sm:$0xf]  ;;  %v59_v29 = vld [vmem:[%s4765_s0 + $0x10] sm:$0xff]  ;;  %v100_v32 = vpack.c.bf16 %v58_v22, %v57_v21  ;;  %v2828_v40 = vor.u32 %v3946_v18, %v2825_v20  ;;  %s2730_s13 = sshll.u32 %s4771_s6, 4  ;;  %s2731_s13 = int_to_ptr.hbm [resolvable:$true] %s2730_s13 }
  0x24   :  { %v3960_v28 = vld [vmem:[#allocation3 + $0x184] sm:$0xf0]  ;;  %v60_v30 = vld [vmem:[%s4765_s0 + $0x18] sm:$0xff]  ;;  %v83_v31 = vld [vmem:[#allocation2] sm:$0x11]  ;;  %v2752_v57 = vor.u32 %v3956_v26, %v3954_v25  ;;  %s3868_s14 = smov 16  }
  0x25   :  { %467 = vmatpush.bf16.msra.mxu0 %v2768_v10  ;;  %v3968_v34 = vld [vmem:[#allocation3 + $0x104] sm:$0xf]  ;;  %v3970_v35 = vld [vmem:[#allocation3 + $0x108] sm:$0xf0]  ;;  %v84_v36 = vsel %vm3938_vm10, 0, %v83_v31  ;;  %v101_v38 = vpack.c.bf16 %v60_v30, %v59_v29  ;;  %v107_v44 = vshrl.u32 %v100_v32, 16  ;;  %vm3992_vm15 = vmand %vm146_vm12, %vm89_vm4  ;;  %v2816_v58 = vor.u32 %v3960_v28, %v3958_v27 }
  0x26   :  { %v94_v37 = vld [vmem:[#allocation2 + $0x10] sm:$0x11]  ;;  %v61_v39 = vld [vmem:[%s4765_s0 + $0x20] sm:$0xff]  ;;  %486 = vmatpush.bf16.msra.mxu1 %v2832_v14  ;;  %505 = vmatpush.bf16.msra.mxu2 %v2772_v15  ;;  %85 = vst [vmem:[#allocation2] sm:$0x11] %v84_v36  ;;  %v110_v45 = vshll.u32 %v100_v32, 16  ;;  %vm4000_vm3 = vmand %vm148_vm13, %vm91_vm5  ;;  %v2756_v63 = vor.u32 %v3968_v34, %v3970_v35 }
  0x27   :  { %v3978_v41 = vld [vmem:[#allocation3 + $0x184] sm:$0xf]  ;;  %v3980_v42 = vld [vmem:[#allocation3 + $0x188] sm:$0xf0]  ;;  %v95_v43 = vsel %vm93_vm11, 0, %v94_v37  ;;  %v62_v47 = vld [vmem:[%s4765_s0 + $0x28] sm:$0xff]  ;;  %524 = vmatpush.bf16.msra.mxu3 %v2836_v19 }
  0x28   :  { %96 = vst [vmem:[#allocation2 + $0x10] sm:$0x11] %v95_v43  ;;  %v115_v49 = vshrl.u32 %v101_v38, 16  ;;  %v118_v50 = vshll.u32 %v101_v38, 16  ;;  %v3996_v52 = vpack.c.bf16 %v62_v47, %v61_v39  ;;  %v109_v53 = vrot.slane %v107_v44, 7  ;;  %vm4012_vm4 = vmor %vm77_vm0, %vm104_vm14  ;;  %v63_v17 = vld [vmem:[%s4765_s0 + $0x30] sm:$0xff] }
  0x29   :  { %v3577_v55 = vld [vmem:[#allocation3 + $0x74] sm:$0xf]  ;;  %v2953_v56 = vld [vmem:[#allocation3 + $0x78] sm:$0xf0]  ;;  %468 = vmatpush.bf16.msra.mxu0 %v2760_v23  ;;  %vm203_vm5 = vsmask.f32 3328  ;;  %v2820_v6 = vor.u32 %v3978_v41, %v3980_v42  ;;  %vm150_vm0 = vmor %vm4000_vm3, %vm3992_vm15 }
  0x2a   :  { %v117_v59 = vrot.slane %v115_v49, 7  ;;  %v3593_v61 = vld [vmem:[#allocation3 + $0xf4] sm:$0xf]  ;;  %v3017_v62 = vld [vmem:[#allocation3 + $0xf8] sm:$0xf0]  ;;  %487 = vmatpush.bf16.msra.mxu1 %v2824_v24  ;;  %506 = vmatpush.bf16.msra.mxu2 %v2764_v33  ;;  %v112_v1 = vor.u32 %v110_v45, %v109_v53  ;;  %v113_v2 = vrot.slane %v109_v53, 4  ;;  %v2956_v9 = vor.u32 %v3577_v55, %v2953_v56  ;;  %vm4051_vm7 = vmor %vm203_vm5, %vm204_vm6 }
  0x2b   :  { %v2951_v3 = vld [vmem:[#allocation3 + $0x70] sm:$0xf]  ;;  %v3578_v4 = vld [vmem:[#allocation3 + $0x74] sm:$0xf0]  ;;  %v124_v5 = vshrl.u32 %v3996_v52, 16  ;;  %525 = vmatpush.bf16.msra.mxu3 %v2828_v40  ;;  %v3020_v12 = vor.u32 %v3593_v61, %v3017_v62  ;;  %v64_v18 = vld [vmem:[%s4765_s0 + $0x38] sm:$0xff] }
  0x2c   :  { %v120_v7 = vor.u32 %v118_v50, %v117_v59  ;;  %v122_v8 = vrot.slane %v117_v59, 4  ;;  %v3015_v10 = vld [vmem:[#allocation3 + $0xf0] sm:$0xf]  ;;  %v3594_v11 = vld [vmem:[#allocation3 + $0xf4] sm:$0xf0]  ;;  %v2952_v13 = vor.u32 %v3578_v4, %v2951_v3  ;;  %v127_v34 = vshll.u32 %v3996_v52, 16 }
  0x2d   :  { %v3575_v14 = vld [vmem:[#allocation3 + $0x64] sm:$0xf]  ;;  %v2945_v15 = vld [vmem:[#allocation3 + $0x68] sm:$0xf0]  ;;  %469 = vmatpush.bf16.msra.mxu0 %v2752_v57  ;;  %v151_v20 = vld [vmem:[#allocation2] sm:$0xff]  ;;  %v3016_v21 = vor.u32 %v3594_v11, %v3015_v10  ;;  %v4041_v29 = vrot.slane %v124_v5, 7  ;;  %v4046_v44 = vpack.c.bf16 %v64_v18, %v63_v17 }
  0x2e   :  { %v3591_v16 = vld [vmem:[#allocation3 + $0xe4] sm:$0xf]  ;;  %v4031_v19 = vsel %vm4012_vm4, %v113_v2, %v120_v7  ;;  %v2948_v22 = vor.u32 %v3575_v14, %v2945_v15  ;;  %v3009_v23 = vld [vmem:[#allocation3 + $0xe8] sm:$0xf0]  ;;  %v2943_v24 = vld [vmem:[#allocation3 + $0x60] sm:$0xf]  ;;  %488 = vmatpush.bf16.msra.mxu1 %v2816_v58  ;;  %507 = vmatpush.bf16.msra.mxu2 %v2756_v63  ;;  %v152_v25 = vsel %vm150_vm0, %v112_v1, %v151_v20 }
  0x2f   :  { %154 = vst [vmem:[#allocation2 + $0x8] sm:$0xff] %v4031_v19  ;;  %v155_v26 = vld [vmem:[#allocation2 + $0x10] sm:$0x11]  ;;  %v216_v27 = vshll.u32 %v4031_v19, 16  ;;  %v220_v28 = vshrl.u32 %v4031_v19, 16  ;;  %526 = vmatpush.bf16.msra.mxu3 %v2820_v6  ;;  %v207_v31 = vshrl.u32 %v152_v25, 16  ;;  %v3012_v37 = vor.u32 %v3591_v16, %v3009_v23 }
  0x30   :  { %153 = vst [vmem:[#allocation2] sm:$0xff] %v152_v25  ;;  %v156_v30 = vsel %vm3938_vm10, %v122_v8, %v155_v26  ;;  %v210_v32 = vshll.u32 %v152_v25, 16  ;;  %v3576_v33 = vld [vmem:[#allocation3 + $0x64] sm:$0xf0]  ;;  %v3007_v39 = vld [vmem:[#allocation3 + $0xe0] sm:$0xf] }
  0x31   :  { %157 = vst [vmem:[#allocation2 + $0x10] sm:$0x11] %v156_v30  ;;  %v218_v35 = vrot.slane %v216_v27, 5  ;;  %v222_v36 = vrot.slane %v220_v28, 4  ;;  %718 = vmatpush.bf16.msrb.mxu0 %v2952_v13  ;;  %v2944_v38 = vor.u32 %v3576_v33, %v2943_v24  ;;  %v209_v40 = vrot.slane %v207_v31, 4 }
  0x32   :  { %756 = vmatpush.bf16.msrb.mxu2 %v2956_v9  ;;  %v212_v41 = vrot.slane %v210_v32, 5  ;;  %737 = vmatpush.bf16.msrb.mxu1 %v3016_v21  ;;  %v3592_v42 = vld [vmem:[#allocation3 + $0xe4] sm:$0xf0]  ;;  %v3573_v43 = vld [vmem:[#allocation3 + $0x54] sm:$0xf]  ;;  %v130_v3 = vrot.slane %v4041_v29, 4 }
  0x33   :  { %775 = vmatpush.bf16.msrb.mxu3 %v3020_v12  ;;  %v223_v45 = vor.u32 %v222_v36, %v218_v35  ;;  %v3008_v47 = vor.u32 %v3592_v42, %v3007_v39  ;;  %v2937_v49 = vld [vmem:[#allocation3 + $0x58] sm:$0xf0]  ;;  %v3589_v50 = vld [vmem:[#allocation3 + $0xd4] sm:$0xf]  ;;  %v2935_v57 = vld [vmem:[#allocation3 + $0x50] sm:$0xf] }
  0x34   :  { %v3001_v53 = vld [vmem:[#allocation3 + $0xd8] sm:$0xf0]  ;;  %v213_v55 = vor.u32 %v212_v41, %v209_v40  ;;  %v2940_v56 = vor.u32 %v3573_v43, %v2937_v49  ;;  %v3574_v58 = vld [vmem:[#allocation3 + $0x54] sm:$0xf0]  ;;  %v2999_v59 = vld [vmem:[#allocation3 + $0xd0] sm:$0xf] }
  0x35   :  { %v224_v61 = vrot.slane %v223_v45, 4  ;;  %719 = vmatpush.bf16.msrb.mxu0 %v2944_v38  ;;  %v3004_v62 = vor.u32 %v3589_v50, %v3001_v53  ;;  %v2936_v63 = vor.u32 %v3574_v58, %v2935_v57  ;;  %v3590_v1 = vld [vmem:[#allocation3 + $0xd4] sm:$0xf0]  ;;  %v3571_v2 = vld [vmem:[#allocation3 + $0x44] sm:$0xf]  ;;  %v132_v9 = vshrl.u32 %v4046_v44, 16 }
  0x36   :  { %757 = vmatpush.bf16.msrb.mxu2 %v2948_v22  ;;  %v214_v5 = vrot.slane %v213_v55, 4  ;;  %738 = vmatpush.bf16.msrb.mxu1 %v3008_v47  ;;  %v3000_v6 = vor.u32 %v3590_v1, %v2999_v59  ;;  %v2929_v7 = vld [vmem:[#allocation3 + $0x48] sm:$0xf0]  ;;  %v3587_v8 = vld [vmem:[#allocation3 + $0xc4] sm:$0xf]  ;;  %v135_v31 = vshll.u32 %v4046_v44, 16  ;;  %v129_v53 = vor.u32 %v127_v34, %v4041_v29 }
  0x37   :  { %776 = vmatpush.bf16.msrb.mxu3 %v3012_v37  ;;  %v2993_v10 = vld [vmem:[#allocation3 + $0xc8] sm:$0xf0]  ;;  %v2927_v11 = vld [vmem:[#allocation3 + $0x40] sm:$0xf]  ;;  %v3572_v12 = vld [vmem:[#allocation3 + $0x44] sm:$0xf0]  ;;  %v2932_v14 = vor.u32 %v3571_v2, %v2929_v7 }
  0x38   :  { %v4056_v13 = vld [vmem:[#allocation2 + $0x10] sm:$0x11]  ;;  %v3588_v16 = vld [vmem:[#allocation3 + $0xc4] sm:$0xf0]  ;;  %v219_v17 = vsel %vm4051_vm7, %v214_v5, %v218_v35  ;;  %v2996_v20 = vor.u32 %v3587_v8, %v2993_v10  ;;  %v2928_v21 = vor.u32 %v3572_v12, %v2927_v11  ;;  %v97_v23 = vld [vmem:[#allocation2 + $0x28] sm:$0x11] }
  0x39   :  { %v2991_v15 = vld [vmem:[#allocation3 + $0xc0] sm:$0xf]  ;;  %v226_v18 = vshll.u32 %v4056_v13, 16  ;;  %720 = vmatpush.bf16.msrb.mxu0 %v2936_v63  ;;  %v86_v22 = vld [vmem:[#allocation2 + $0x18] sm:$0x11]  ;;  %v98_v26 = vsel %vm93_vm11, 0, %v97_v23  ;;  %v286_v33 = vunpack.c.l.b16 %v219_v17  ;;  %v287_v35 = vunpack.c.h.b16 %v219_v17 }
  0x3a   :  { %758 = vmatpush.bf16.msrb.mxu2 %v2940_v56  ;;  %739 = vmatpush.bf16.msrb.mxu1 %v3000_v6  ;;  %v2992_v24 = vor.u32 %v3588_v16, %v2991_v15  ;;  %v87_v25 = vsel %vm3938_vm10, 0, %v86_v22  ;;  %v4068_v27 = vrot.slane %v132_v9, 7  ;;  %v3569_v28 = vld [vmem:[#allocation3 + $0x34] sm:$0xf]  ;;  %v2921_v32 = vld [vmem:[#allocation3 + $0x38] sm:$0xf0] }
  0x3b   :  { %777 = vmatpush.bf16.msrb.mxu3 %v3004_v62  ;;  %v228_v30 = vrot.slane %v226_v18, 5  ;;  %88 = vst [vmem:[#allocation2 + $0x18] sm:$0x11] %v87_v25  ;;  %v2924_v37 = vor.u32 %v3569_v28, %v2921_v32  ;;  %v3585_v48 = vld [vmem:[#allocation3 + $0xb4] sm:$0xf]  ;;  %vm1190_vm11 = vcmask 1041409  }
  0x3c   :  { %99 = vst [vmem:[#allocation2 + $0x28] sm:$0x11] %v98_v26  ;;  %v139_v36 = vrot.slane %v4068_v27, 4  ;;  %v137_v38 = vor.u32 %v135_v31, %v4068_v27  ;;  %v2985_v39 = vld [vmem:[#allocation3 + $0xb8] sm:$0xf0]  ;;  %vm1199_vm12 = vcmask 1043459  }
  0x3d   :  { %v229_v46 = vsel %vm4051_vm7, %v224_v61, %v228_v30  ;;  %721 = vmatpush.bf16.msrb.mxu0 %v2928_v21  ;;  %v2919_v40 = vld [vmem:[#allocation3 + $0x30] sm:$0xf]  ;;  %v3570_v41 = vld [vmem:[#allocation3 + $0x34] sm:$0xf0]  ;;  %v2988_v44 = vor.u32 %v3585_v48, %v2985_v39  ;;  %v3567_v50 = vld [vmem:[#allocation3 + $0x24] sm:$0xf] }
  0x3e   :  { %759 = vmatpush.bf16.msrb.mxu2 %v2932_v14  ;;  %v288_v42 = vunpack.c.l.b16 %v229_v46  ;;  %v289_v43 = vunpack.c.h.b16 %v229_v46  ;;  %740 = vmatpush.bf16.msrb.mxu1 %v2992_v24  ;;  %v2920_v45 = vor.u32 %v3570_v41, %v2919_v40  ;;  %v2983_v47 = vld [vmem:[#allocation3 + $0xb0] sm:$0xf]  ;;  %v3586_v49 = vld [vmem:[#allocation3 + $0xb4] sm:$0xf0]  ;;  %v4080_v55 = vsel %vm4012_vm4, %v130_v3, %v137_v38  ;;  %v2913_v57 = vld [vmem:[#allocation3 + $0x28] sm:$0xf0] }
  0x3f   :  { %778 = vmatpush.bf16.msrb.mxu3 %v2996_v20  ;;  %v2984_v56 = vor.u32 %v3586_v49, %v2983_v47  ;;  %v3583_v58 = vld [vmem:[#allocation3 + $0xa4] sm:$0xf]  ;;  %v2977_v59 = vld [vmem:[#allocation3 + $0xa8] sm:$0xf0]  ;;  %161 = vst [vmem:[#allocation2 + $0x20] sm:$0xff] %v4080_v55  ;;  %v240_v63 = vshll.u32 %v4080_v55, 16  ;;  %v2916_v52 = vor.u32 %v3567_v50, %v2913_v57 }
  0x40   :  { %v294_v61 = vpack.c.b16 %v288_v42, %v286_v33  ;;  %v295_v62 = vpack.c.b16 %v289_v43, %v287_v35  ;;  %v244_v1 = vshrl.u32 %v4080_v55, 16  ;;  %v2911_v2 = vld [vmem:[#allocation3 + $0x20] sm:$0xf]  ;;  %v2980_v0 = vor.u32 %v3583_v58, %v2977_v59  ;;  %v3568_v29 = vld [vmem:[#allocation3 + $0x24] sm:$0xf0] }
  0x41   :  { %722 = vmatpush.bf16.msrb.mxu0 %v2920_v45  ;;  %v2975_v34 = vld [vmem:[#allocation3 + $0xa0] sm:$0xf]  ;;  %v3584_v3 = vld [vmem:[#allocation3 + $0xa4] sm:$0xf0]  ;;  %v242_v6 = vrot.slane %v240_v63, 5  ;;  %v2912_v8 = vor.u32 %v3568_v29, %v2911_v2  ;;  %vm1204_vm13 = vcmask 1041408  }
  0x42   :  { %760 = vmatpush.bf16.msrb.mxu2 %v2924_v37  ;;  %470 = vmatmul.bf16.vlgmr.msra.gmra.mxu0 %v294_v61  ;;  %v158_v5 = vld [vmem:[#allocation2 + $0x18] sm:$0xff]  ;;  %v246_v7 = vrot.slane %v244_v1, 4  ;;  %v3565_v9 = vld [vmem:[#allocation3 + $0x14] sm:$0xf]  ;;  %v2905_v12 = vld [vmem:[#allocation3 + $0x18] sm:$0xf0]  ;;  %v2976_v18 = vor.u32 %v3584_v3, %v2975_v34 }
  0x43   :  { %779 = vmatpush.bf16.msrb.mxu3 %v2988_v44  ;;  %489 = vmatmul.bf16.vlgmr.msra.gmra.mxu1 %v295_v62  ;;  %v159_v10 = vsel %vm150_vm0, %v129_v53, %v158_v5  ;;  %v162_v11 = vld [vmem:[#allocation2 + $0x28] sm:$0x11]  ;;  %v3581_v14 = vld [vmem:[#allocation3 + $0x94] sm:$0xf]  ;;  %v2908_v54 = vor.u32 %v3565_v9, %v2905_v12  ;;  %v2903_v21 = vld [vmem:[#allocation3 + $0x10] sm:$0xf] }
  0x44   :  { %508 = vmatmul.bf16.vlgmr.msra.gmra.mxu2 %v294_v61  ;;  %527 = vmatmul.bf16.vlgmr.msra.gmra.mxu3 %v295_v62  ;;  %160 = vst [vmem:[#allocation2 + $0x18] sm:$0xff] %v159_v10  ;;  %v163_v15 = vsel %vm3938_vm10, %v139_v36, %v162_v11  ;;  %v231_v16 = vshrl.u32 %v159_v10, 16  ;;  %v234_v17 = vshll.u32 %v159_v10, 16  ;;  %v2969_v20 = vld [vmem:[#allocation3 + $0x98] sm:$0xf0]  ;;  %v247_v37 = vor.u32 %v246_v7, %v242_v6  ;;  %vm4117_vm10 = vmor %vm800_vm8, %vm801_vm9 }
  0x45   :  { %741 = vmatpush.bf16.msrb.mxu1 %v2984_v56  ;;  %164 = vst [vmem:[#allocation2 + $0x28] sm:$0x11] %v163_v15  ;;  %723 = vmatpush.bf16.msrb.mxu0 %v2912_v8  ;;  %v2972_v51 = vor.u32 %v3581_v14, %v2969_v20  ;;  %v3566_v22 = vld [vmem:[#allocation3 + $0x14] sm:$0xf0]  ;;  %v2967_v26 = vld [vmem:[#allocation3 + $0x90] sm:$0xf] }
  0x46   :  { %761 = vmatpush.bf16.msrb.mxu2 %v2916_v52  ;;  %v233_v23 = vrot.slane %v231_v16, 4  ;;  %v236_v24 = vrot.slane %v234_v17, 5  ;;  %v2904_v25 = vor.u32 %v3566_v22, %v2903_v21  ;;  %v3582_v27 = vld [vmem:[#allocation3 + $0x94] sm:$0xf0]  ;;  %v3563_v60 = vld [vmem:[#allocation3 + $0x4] sm:$0xf] }
  0x47   :  { %780 = vmatpush.bf16.msrb.mxu3 %v2980_v0  ;;  %v2897_v28 = vld [vmem:[#allocation3 + $0x8] sm:$0xf0]  ;;  %v2968_v31 = vor.u32 %v3582_v27, %v2967_v26  ;;  %v3579_v33 = vld [vmem:[#allocation3 + $0x84] sm:$0xf]  ;;  %v2895_v36 = vld [vmem:[#allocation3] sm:$0xf] }
  0x48   :  { %v237_v30 = vor.u32 %v236_v24, %v233_v23  ;;  %v2900_v32 = vor.u32 %v3563_v60, %v2897_v28  ;;  %v2961_v35 = vld [vmem:[#allocation3 + $0x88] sm:$0xf0]  ;;  %v3564_v46 = vld [vmem:[#allocation3 + $0x4] sm:$0xf0]  ;;  %v2959_v38 = vld [vmem:[#allocation3 + $0x80] sm:$0xf] }
  0x49   :  { %742 = vmatpush.bf16.msrb.mxu1 %v2976_v18  ;;  %724 = vmatpush.bf16.msrb.mxu0 %v2904_v25  ;;  %v2964_v48 = vor.u32 %v3579_v33, %v2961_v35  ;;  %v3580_v39 = vld [vmem:[#allocation3 + $0x84] sm:$0xf0]  ;;  %v2896_v41 = vor.u32 %v3564_v46, %v2895_v36  ;;  %v4092_v42 = vld [vmem:[#allocation2] sm:$0xf]  ;;  %v4094_v43 = vld [vmem:[#allocation2 + $0x4] sm:$0xf] }
  0x4a   :  { %762 = vmatpush.bf16.msrb.mxu2 %v2908_v54  ;;  %v238_v40 = vrot.slane %v237_v30, 4  ;;  %v3865_v44 = vmov 0   ;;  %v2960_v47 = vor.u32 %v3580_v39, %v2959_v38  ;;  %v3641_v49 = vld [vmem:[#allocation3 + $0x274] sm:$0xf]  ;;  %v248_v53 = vrot.slane %v247_v37, 4 }
  0x4b   :  { %781 = vmatpush.bf16.msrb.mxu3 %v2972_v51  ;;  %1438 = vst [vmem:[#allocation2 + $0x10] sm:$0x22] %v3865_v44  ;;  %v3083_v57 = vld [vmem:[#allocation3 + $0x278] sm:$0xf0]  ;;  %v3657_v59 = vld [vmem:[#allocation3 + $0x2f4] sm:$0xf] }
  0x4c   :  { %v4097_v45 = vld [vmem:[#allocation2 + $0x28] sm:$0x11]  ;;  %1436 = vst [vmem:[#allocation2] sm:$0x11] %v3865_v44  ;;  %v243_v50 = vsel %vm4051_vm7, %v238_v40, %v242_v6  ;;  %v3086_v58 = vor.u32 %v3641_v49, %v3083_v57  ;;  %v3081_v62 = vld [vmem:[#allocation3 + $0x270] sm:$0xf] }
  0x4d   :  { %743 = vmatpush.bf16.msrb.mxu1 %v2968_v31  ;;  %v250_v56 = vshll.u32 %v4097_v45, 16  ;;  %725 = vmatpush.bf16.msrb.mxu0 %v2896_v41  ;;  %1439 = vst [vmem:[#allocation2 + $0x28] sm:$0x22] %v3865_v44  ;;  %v3147_v61 = vld [vmem:[#allocation3 + $0x2f8] sm:$0xf0]  ;;  %v290_v0 = vunpack.c.l.b16 %v243_v50  ;;  %v291_v29 = vunpack.c.h.b16 %v243_v50  ;;  %vm1283_vm14 = vcmask 130048  }
  0x4e   :  { %763 = vmatpush.bf16.msrb.mxu2 %v2900_v32  ;;  %v3150_v1 = vor.u32 %v3657_v59, %v3147_v61  ;;  %v3642_v2 = vld [vmem:[#allocation3 + $0x274] sm:$0xf0]  ;;  %v3145_v52 = vld [vmem:[#allocation3 + $0x2f0] sm:$0xf]  ;;  %v3639_v5 = vld [vmem:[#allocation3 + $0x264] sm:$0xf] }
  0x4f   :  { %782 = vmatpush.bf16.msrb.mxu3 %v2964_v48  ;;  %v252_v63 = vrot.slane %v250_v56, 5  ;;  %v3082_v34 = vor.u32 %v3642_v2, %v3081_v62  ;;  %v3658_v3 = vld [vmem:[#allocation3 + $0x2f4] sm:$0xf0]  ;;  %v3075_v6 = vld [vmem:[#allocation3 + $0x268] sm:$0xf0] }
  0x50   :  { %v3146_v8 = vor.u32 %v3658_v3, %v3145_v52  ;;  %v3078_v9 = vor.u32 %v3639_v5, %v3075_v6  ;;  %v3655_v10 = vld [vmem:[#allocation3 + $0x2e4] sm:$0xf]  ;;  %v3139_v11 = vld [vmem:[#allocation3 + $0x2e8] sm:$0xf0]  ;;  %v3073_v12 = vld [vmem:[#allocation3 + $0x260] sm:$0xf] }
  0x51   :  { %744 = vmatpush.bf16.msrb.mxu1 %v2960_v47  ;;  %v253_v7 = vsel %vm4051_vm7, %v248_v53, %v252_v63  ;;  %1025 = vmatpush.bf16.msra.mxu0 %v3082_v34  ;;  %v3142_v16 = vor.u32 %v3655_v10, %v3139_v11  ;;  %v3640_v17 = vld [vmem:[#allocation3 + $0x264] sm:$0xf0]  ;;  %v3137_v18 = vld [vmem:[#allocation3 + $0x2e0] sm:$0xf]  ;;  %v3637_v54 = vld [vmem:[#allocation3 + $0x254] sm:$0xf] }
  0x52   :  { %1063 = vmatpush.bf16.msra.mxu2 %v3086_v58  ;;  %v292_v14 = vunpack.c.l.b16 %v253_v7  ;;  %v293_v15 = vunpack.c.h.b16 %v253_v7  ;;  %v3656_v20 = vld [vmem:[#allocation3 + $0x2e4] sm:$0xf0]  ;;  %v3067_v51 = vld [vmem:[#allocation3 + $0x258] sm:$0xf0]  ;;  %v3653_v21 = vld [vmem:[#allocation3 + $0x2d4] sm:$0xf]  ;;  %v3074_v23 = vor.u32 %v3640_v17, %v3073_v12 }
  0x53   :  { %1082 = vmatpush.bf16.msra.mxu3 %v3150_v1  ;;  %v3138_v24 = vor.u32 %v3656_v20, %v3137_v18  ;;  %v3131_v25 = vld [vmem:[#allocation3 + $0x2d8] sm:$0xf0]  ;;  %v3065_v26 = vld [vmem:[#allocation3 + $0x250] sm:$0xf]  ;;  %v3638_v27 = vld [vmem:[#allocation3 + $0x254] sm:$0xf0]  ;;  %v3070_v60 = vor.u32 %v3637_v54, %v3067_v51 }
  0x54   :  { %v296_v22 = vpack.c.b16 %v292_v14, %v290_v0  ;;  %v297_v4 = vpack.c.b16 %v293_v15, %v291_v29  ;;  %v3134_v28 = vor.u32 %v3653_v21, %v3131_v25  ;;  %v3129_v30 = vld [vmem:[#allocation3 + $0x2d0] sm:$0xf]  ;;  %v3654_v31 = vld [vmem:[#allocation3 + $0x2d4] sm:$0xf0]  ;;  %v3635_v32 = vld [vmem:[#allocation3 + $0x244] sm:$0xf]  ;;  %v3066_v48 = vor.u32 %v3638_v27, %v3065_v26 }
  0x55   :  { %1044 = vmatpush.bf16.msra.mxu1 %v3146_v8  ;;  %v3059_v33 = vld [vmem:[#allocation3 + $0x248] sm:$0xf0]  ;;  %v3651_v35 = vld [vmem:[#allocation3 + $0x2c4] sm:$0xf]  ;;  %v3057_v37 = vld [vmem:[#allocation3 + $0x240] sm:$0xf]  ;;  %1026 = vmatpush.bf16.msra.mxu0 %v3074_v23  ;;  %v3130_v46 = vor.u32 %v3654_v31, %v3129_v30 }
  0x56   :  { %1064 = vmatpush.bf16.msra.mxu2 %v3078_v9  ;;  %475 = vmatmul.bf16.gmra.mxu0 %v296_v22  ;;  %v3123_v36 = vld [vmem:[#allocation3 + $0x2c8] sm:$0xf0]  ;;  %v3636_v38 = vld [vmem:[#allocation3 + $0x244] sm:$0xf0]  ;;  %v3121_v39 = vld [vmem:[#allocation3 + $0x2c0] sm:$0xf]  ;;  %v3062_v41 = vor.u32 %v3635_v32, %v3059_v33 }
  0x57   :  { %1083 = vmatpush.bf16.msra.mxu3 %v3142_v16  ;;  %494 = vmatmul.bf16.gmra.mxu1 %v297_v4  ;;  %v3652_v40 = vld [vmem:[#allocation3 + $0x2c4] sm:$0xf0]  ;;  %v3126_v47 = vor.u32 %v3651_v35, %v3123_v36  ;;  %v4108_v50 = vld [vmem:[#allocation2 + $0x1c] sm:$0xf]  ;;  %v3633_v53 = vld [vmem:[#allocation3 + $0x234] sm:$0xf]  ;;  %v3058_v59 = vor.u32 %v3636_v38, %v3057_v37 }
  0x58   :  { %513 = vmatmul.bf16.gmra.mxu2 %v296_v22  ;;  %532 = vmatmul.bf16.gmra.mxu3 %v297_v4  ;;  %v4106_v49 = vld [vmem:[#allocation2 + $0x18] sm:$0xf]  ;;  %v3051_v56 = vld [vmem:[#allocation3 + $0x238] sm:$0xf0]  ;;  %v3649_v57 = vld [vmem:[#allocation3 + $0x2b4] sm:$0xf]  ;;  %v3122_v61 = vor.u32 %v3652_v40, %v3121_v39 }
  0x59   :  { %1045 = vmatpush.bf16.msra.mxu1 %v3138_v24  ;;  %1437 = vst [vmem:[#allocation2 + $0x18] sm:$0x11] %v3865_v44  ;;  %v3115_v58 = vld [vmem:[#allocation3 + $0x2b8] sm:$0xf0]  ;;  %1027 = vmatpush.bf16.msra.mxu0 %v3066_v48  ;;  %v3049_v62 = vld [vmem:[#allocation3 + $0x230] sm:$0xf]  ;;  %v3054_v1 = vor.u32 %v3633_v53, %v3051_v56  ;;  %vm4460_vm7 = vmor %vm76_vm1, %vm79_vm2 }
  0x5a   :  { %1065 = vmatpush.bf16.msra.mxu2 %v3070_v60  ;;  %v3634_v63 = vld [vmem:[#allocation3 + $0x234] sm:$0xf0]  ;;  %v3118_v2 = vor.u32 %v3649_v57, %v3115_v58  ;;  %v3113_v52 = vld [vmem:[#allocation3 + $0x2b0] sm:$0xf]  ;;  %v3631_v29 = vld [vmem:[#allocation3 + $0x224] sm:$0xf] }
  0x5b   :  { %1084 = vmatpush.bf16.msra.mxu3 %v3134_v28  ;;  %v3650_v0 = vld [vmem:[#allocation3 + $0x2b4] sm:$0xf0]  ;;  %v3043_v34 = vld [vmem:[#allocation3 + $0x228] sm:$0xf0]  ;;  %v3647_v3 = vld [vmem:[#allocation3 + $0x2a4] sm:$0xf]  ;;  %v3050_v7 = vor.u32 %v3634_v63, %v3049_v62 }
  0x5c   :  { %v3107_v5 = vld [vmem:[#allocation3 + $0x2a8] sm:$0xf0]  ;;  %v3560_v44 = vld [vmem:[#allocation2 + $0x4] sm:$0xf0]  ;;  %v2881_v6 = vld [vmem:[#allocation2 + $0x8] sm:$0xf0]  ;;  %v3114_v8 = vor.u32 %v3650_v0, %v3113_v52  ;;  %v3046_v11 = vor.u32 %v3631_v29, %v3043_v34 }
  0x5d   :  { %1046 = vmatpush.bf16.msra.mxu1 %v3130_v46  ;;  %1028 = vmatpush.bf16.msra.mxu0 %v3058_v59  ;;  %v3041_v9 = vld [vmem:[#allocation3 + $0x220] sm:$0xf]  ;;  %v3632_v10 = vld [vmem:[#allocation3 + $0x224] sm:$0xf0]  ;;  %v3110_v12 = vor.u32 %v3647_v3, %v3107_v5  ;;  %v3629_v16 = vld [vmem:[#allocation3 + $0x214] sm:$0xf]  ;;  %v2880_v17 = vor.u32 %v3560_v44, %v4092_v42  ;;  %v2884_v18 = vor.u32 %v4094_v43, %v2881_v6 }
  0x5e   :  { %1066 = vmatpush.bf16.msra.mxu2 %v3062_v41  ;;  %v3105_v14 = vld [vmem:[#allocation3 + $0x2a0] sm:$0xf]  ;;  %v3648_v15 = vld [vmem:[#allocation3 + $0x2a4] sm:$0xf0]  ;;  %v3035_v20 = vld [vmem:[#allocation3 + $0x218] sm:$0xf0]  ;;  %v3042_v21 = vor.u32 %v3632_v10, %v3041_v9 }
  0x5f   :  { %1085 = vmatpush.bf16.msra.mxu3 %v3126_v47  ;;  %v3645_v54 = vld [vmem:[#allocation3 + $0x294] sm:$0xf]  ;;  %v3099_v51 = vld [vmem:[#allocation3 + $0x298] sm:$0xf0]  ;;  %v3106_v22 = vor.u32 %v3648_v15, %v3105_v14  ;;  %v3033_v4 = vld [vmem:[#allocation3 + $0x210] sm:$0xf]  ;;  %v3038_v24 = vor.u32 %v3629_v16, %v3035_v20 }
  0x60   :  { %v3630_v23 = vld [vmem:[#allocation3 + $0x214] sm:$0xf0]  ;;  %v3102_v25 = vor.u32 %v3645_v54, %v3099_v51  ;;  %v3097_v26 = vld [vmem:[#allocation3 + $0x290] sm:$0xf]  ;;  %v3627_v60 = vld [vmem:[#allocation3 + $0x204] sm:$0xf] }
  0x61   :  { %1047 = vmatpush.bf16.msra.mxu1 %v3122_v61  ;;  %1029 = vmatpush.bf16.msra.mxu0 %v3050_v7  ;;  %v3646_v27 = vld [vmem:[#allocation3 + $0x294] sm:$0xf0]  ;;  %v3027_v42 = vld [vmem:[#allocation3 + $0x208] sm:$0xf0]  ;;  %v3643_v43 = vld [vmem:[#allocation3 + $0x284] sm:$0xf]  ;;  %v3034_v30 = vor.u32 %v3630_v23, %v3033_v4 }
  0x62   :  { %1067 = vmatpush.bf16.msra.mxu2 %v3054_v1  ;;  %v3091_v28 = vld [vmem:[#allocation3 + $0x288] sm:$0xf0]  ;;  %v3098_v31 = vor.u32 %v3646_v27, %v3097_v26  ;;  %v3025_v32 = vld [vmem:[#allocation3 + $0x200] sm:$0xf]  ;;  %v3030_v33 = vor.u32 %v3627_v60, %v3027_v42  ;;  %v3628_v36 = vld [vmem:[#allocation3 + $0x204] sm:$0xf0] }
  0x63   :  { %1086 = vmatpush.bf16.msra.mxu3 %v3118_v2  ;;  %v3094_v35 = vor.u32 %v3643_v43, %v3091_v28  ;;  %v3089_v37 = vld [vmem:[#allocation3 + $0x280] sm:$0xf]  ;;  %v3644_v48 = vld [vmem:[#allocation3 + $0x284] sm:$0xf0]  ;;  %v3026_v46 = vor.u32 %v3628_v36, %v3025_v32  ;;  %v3562_v39 = vld [vmem:[#allocation2 + $0x1c] sm:$0xf0] }
  0x64   :  { %v3090_v38 = vor.u32 %v3644_v48, %v3089_v37  ;;  %v2889_v40 = vld [vmem:[#allocation2 + $0x20] sm:$0xf0]  ;;  %v2888_v41 = vor.u32 %v3562_v39, %v4106_v49  ;;  %v805_v53 = vrot.slane %v4031_v19, 5  ;;  %v808_v57 = vrot.slane %v4056_v13, 5  ;;  %v795_v0 = vld [vmem:[#allocation2 + $0x18] sm:$0xee] }
  0x65   :  { %1048 = vmatpush.bf16.msra.mxu1 %v3114_v8  ;;  %1030 = vmatpush.bf16.msra.mxu0 %v3042_v21  ;;  %v2892_v47 = vor.u32 %v4108_v50, %v2889_v40  ;;  %v794_v56 = vld [vmem:[#allocation2] sm:$0xee]  ;;  %v812_v52 = vrot.slane %v4080_v55, 5  ;;  %v3022_v29 = vrot.slane %v795_v0, 9  ;;  %v815_v3 = vrot.slane %v4097_v45, 5  ;;  %v1222_v36 = vld [vmem:[%s4769_s4 + $0x78] sm:$0xff] }
  0x66   :  { %1068 = vmatpush.bf16.msra.mxu2 %v3046_v11  ;;  %726 = vmatmul.bf16.vlgmr.msrb.gmra.mxu0 %v2880_v17  ;;  %v3021_v58 = vrot.slane %v794_v56, 9  ;;  %v807_v59 = vrot.slane %v805_v53, 4  ;;  %v1221_v37 = vld [vmem:[%s4769_s4 + $0x70] sm:$0xff]  ;;  %v1220_v48 = vld [vmem:[%s4769_s4 + $0x68] sm:$0xff]  ;;  %v1218_v56 = vld [vmem:[%s4769_s4 + $0x58] sm:$0xff]  ;;  %vm2078_vm2 = vcmask 1045508  }
  0x67   :  { %1087 = vmatpush.bf16.msra.mxu3 %v3110_v12  ;;  %745 = vmatmul.bf16.vlgmr.msrb.gmra.mxu1 %v2884_v18  ;;  %v814_v34 = vrot.slane %v812_v52, 4  ;;  %v813_v5 = vsel %vm4117_vm10, %v3022_v29, %v812_v52  ;;  %v1214_v52 = vld [vmem:[%s4769_s4 + $0x38] sm:$0xff]  ;;  %vm4496_vm8 = vmor %vm1204_vm13, %vm2078_vm2 }
  0x68   :  { %764 = vmatmul.bf16.vlgmr.msrb.gmra.mxu2 %v2880_v17  ;;  %783 = vmatmul.bf16.vlgmr.msrb.gmra.mxu3 %v2884_v18  ;;  %v806_v49 = vsel %vm4117_vm10, %v3021_v58, %v805_v53  ;;  %v809_v19 = vsel %vm4117_vm10, %v807_v59, %v808_v57  ;;  %v853_v6 = vunpack.c.l.b16 %v813_v5  ;;  %v854_v8 = vunpack.c.h.b16 %v813_v5  ;;  %v1237_v53 = vld [vmem:[%s4769_s4 + $0xf0] sm:$0xff]  ;;  %v1236_v57 = vld [vmem:[%s4769_s4 + $0xe8] sm:$0xff]  ;;  %v1235_v59 = vld [vmem:[%s4769_s4 + $0xe0] sm:$0xff] }
  0x69   :  { %1049 = vmatpush.bf16.msra.mxu1 %v3106_v22  ;;  %1031 = vmatpush.bf16.msra.mxu0 %v3034_v30  ;;  %v849_v50 = vunpack.c.l.b16 %v806_v49  ;;  %v851_v62 = vunpack.c.l.b16 %v809_v19  ;;  %v850_v63 = vunpack.c.h.b16 %v806_v49  ;;  %v852_v1 = vunpack.c.h.b16 %v809_v19  ;;  %v1217_v58 = vld [vmem:[%s4769_s4 + $0x50] sm:$0xff]  ;;  %v1216_v49 = vld [vmem:[%s4769_s4 + $0x48] sm:$0xff] }
  0x6a   :  { %1069 = vmatpush.bf16.msra.mxu2 %v3038_v24  ;;  %v816_v44 = vsel %vm4117_vm10, %v814_v34, %v815_v3  ;;  %v1232_v34 = vld [vmem:[%s4769_s4 + $0xc8] sm:$0xff]  ;;  %v1213_v3 = vld [vmem:[%s4769_s4 + $0x30] sm:$0xff] }
  0x6b   :  { %1088 = vmatpush.bf16.msra.mxu3 %v3102_v25  ;;  %v857_v2 = vpack.c.b16 %v851_v62, %v849_v50  ;;  %v858_v13 = vpack.c.b16 %v852_v1, %v850_v63  ;;  %v855_v7 = vunpack.c.l.b16 %v816_v44  ;;  %v856_v9 = vunpack.c.h.b16 %v816_v44  ;;  %v1234_v1 = vld [vmem:[%s4769_s4 + $0xd8] sm:$0xff] }
  0x6d   :  { %1050 = vmatpush.bf16.msra.mxu1 %v3098_v31  ;;  %1032 = vmatpush.bf16.msra.mxu0 %v3026_v46  ;;  %v859_v55 = vpack.c.b16 %v855_v7, %v853_v6  ;;  %v860_v10 = vpack.c.b16 %v856_v9, %v854_v8  ;;  %v1231_v6 = vld [vmem:[%s4769_s4 + $0xc0] sm:$0xff]  ;;  %v1212_v7 = vld [vmem:[%s4769_s4 + $0x28] sm:$0xff] }
  0x6e   :  { %1070 = vmatpush.bf16.msra.mxu2 %v3030_v33 }
  0x6f   :  { %1089 = vmatpush.bf16.msra.mxu3 %v3094_v35 }
  0x71   :  { %1051 = vmatpush.bf16.msra.mxu1 %v3090_v38  ;;  %1239 = vmatpush.msrb.mxu0 %v1222_v36  ;;  %v1210_v36 = vld [vmem:[%s4769_s4 + $0x18] sm:$0xff] }
  0x73   :  { %1240 = vmatpush.msrb.mxu0 %v1221_v37 }
  0x75   :  { %1241 = vmatpush.msrb.mxu0 %v1220_v48 }
  0x76   :  { %731 = vmatmul.bf16.gmra.mxu0 %v2888_v41 }
  0x77   :  { %750 = vmatmul.bf16.gmra.mxu1 %v2892_v47 }
  0x78   :  { %769 = vmatmul.bf16.gmra.mxu2 %v2888_v41  ;;  %788 = vmatmul.bf16.gmra.mxu3 %v2892_v47  ;;  %v1238_v41 = vld [vmem:[%s4769_s4 + $0xf8] sm:$0xff]  ;;  %v1219_v47 = vld [vmem:[%s4769_s4 + $0x60] sm:$0xff] }
  0x79   :  { %1259 = vmatpush.msrb.mxu1 %v1238_v41  ;;  %1242 = vmatpush.msrb.mxu0 %v1219_v47  ;;  %v1226_v47 = vld [vmem:[%s4769_s4 + $0x98] sm:$0xff] }
  0x7b   :  { %1260 = vmatpush.msrb.mxu1 %v1237_v53  ;;  %1243 = vmatpush.msrb.mxu0 %v1218_v56  ;;  %v1207_v53 = vld [vmem:[%s4769_s4] sm:$0xff] }
  0x7d   :  { %1261 = vmatpush.msrb.mxu1 %v1236_v57  ;;  %1244 = vmatpush.msrb.mxu0 %v1217_v58 }
  0x7f   :  { %1262 = vmatpush.msrb.mxu1 %v1235_v59  ;;  %1245 = vmatpush.msrb.mxu0 %v1216_v49 }
  0x81   :  { %1263 = vmatpush.msrb.mxu1 %v1234_v1 }
  0x86   :  { %1033 = vmatmul.bf16.vlgmr.msra.gmra.mxu0 %v857_v2 }
  0x87   :  { %1052 = vmatmul.bf16.vlgmr.msra.gmra.mxu1 %v858_v13 }
  0x88   :  { %1071 = vmatmul.bf16.vlgmr.msra.gmra.mxu2 %v857_v2  ;;  %1090 = vmatmul.bf16.vlgmr.msra.gmra.mxu3 %v858_v13  ;;  %v1215_v2 = vld [vmem:[%s4769_s4 + $0x40] sm:$0xff]  ;;  %v1233_v13 = vld [vmem:[%s4769_s4 + $0xd0] sm:$0xff] }
  0x89   :  { %1246 = vmatpush.msrb.mxu0 %v1215_v2  ;;  %1264 = vmatpush.msrb.mxu1 %v1233_v13 }
  0x8b   :  { %1247 = vmatpush.msrb.mxu0 %v1214_v52  ;;  %1265 = vmatpush.msrb.mxu1 %v1232_v34  ;;  %v1225_v52 = vld [vmem:[%s4769_s4 + $0x90] sm:$0xff] }
  0x8d   :  { %1248 = vmatpush.msrb.mxu0 %v1213_v3  ;;  %1266 = vmatpush.msrb.mxu1 %v1231_v6 }
  0x8f   :  { %1249 = vmatpush.msrb.mxu0 %v1212_v7 }
  0x96   :  { %1038 = vmatmul.bf16.gmra.mxu0 %v859_v55 }
  0x97   :  { %1057 = vmatmul.bf16.gmra.mxu1 %v860_v10 }
  0x98   :  { %1076 = vmatmul.bf16.gmra.mxu2 %v859_v55  ;;  %1095 = vmatmul.bf16.gmra.mxu3 %v860_v10  ;;  %v65_v10 = vld [vmem:[%s4768_s3] ss:$8 sm:$0x3] }
  0x99   :  { %v4263_v37 = vperm.slane %v65_v10, 0 }
  0xbf   :  { %v4131_v11 = vpop.f32.mrf.mxu0 }
  0xc0   :  { %v4133_v12 = vpop.f32.mrf.mxu1 }
  0xc1   :  { %v491_v0 = vadd.f32 %v4133_v12, %v4131_v11 }
  0xc7   :  { %v4135_v45 = vpop.f32.mrf.mxu2  ;;  %v4137_v14 = vpop.f32.mrf.mxu3 }
  0xc8   :  { %v473_v15 = vpop.f32.mrf.mxu0  ;;  %v492_v16 = vpop.f32.mrf.mxu1 }
  0xc9   :  { %v493_v29 = vadd.f32 %v492_v16, %v473_v15  ;;  %v1230_v15 = vld [vmem:[%s4769_s4 + $0xb8] sm:$0xff]  ;;  %v1211_v16 = vld [vmem:[%s4769_s4 + $0x20] sm:$0xff] }
  0xca   :  { %1267 = vmatpush.msrb.mxu1 %v1230_v15  ;;  %1250 = vmatpush.msrb.mxu0 %v1211_v16  ;;  %v1282_v15 = vld [vmem:[%s4770_s5 + $0x18] sm:$0xff]  ;;  %v1279_v16 = vld [vmem:[%s4770_s5] sm:$0xff] }
  0xcb   :  { %1321 = vmatpush.msrb.mxu3 %v1282_v15 }
  0xcc   :  { %1251 = vmatpush.msrb.mxu0 %v1210_v36 }
  0xcf   :  { %v4139_v17 = vpop.f32.mrf.mxu2  ;;  %v4141_v18 = vpop.f32.mrf.mxu3 }
  0xd3   :  { %v476_v20 = vpop.f32.mrf.mxu0 }
  0xd4   :  { %v495_v54 = vpop.f32.mrf.mxu1 }
  0xd5   :  { %v4143_v51 = vadd.f32 %v495_v54, %v476_v20 }
  0xdb   :  { %v514_v21 = vpop.f32.mrf.mxu2  ;;  %v533_v22 = vpop.f32.mrf.mxu3 }
  0xdc   :  { %v4145_v4 = vadd.f32 %v533_v22, %v514_v21  ;;  %v4147_v23 = vpop.f32.mrf.mxu0  ;;  %v4149_v24 = vpop.f32.mrf.mxu1  ;;  %v529_v22 = vadd.f32 %v4137_v14, %v4135_v45  ;;  %v1228_v14 = vld [vmem:[%s4769_s4 + $0xa8] sm:$0xff] }
  0xe3   :  { %v4151_v25 = vpop.f32.mrf.mxu2  ;;  %v4153_v26 = vpop.f32.mrf.mxu3 }
  0xe4   :  { %v727_v27 = vpop.f32.mrf.mxu0  ;;  %v4155_v60 = vpop.f32.mrf.mxu1 }
  0xe5   :  { %v728_v5 = vadd.f32 %v727_v27, %v491_v0  ;;  %v531_v27 = vadd.f32 %v4141_v18, %v4139_v17  ;;  %v1209_v17 = vld [vmem:[%s4769_s4 + $0x10] sm:$0xff]  ;;  %v1227_v18 = vld [vmem:[%s4769_s4 + $0xa0] sm:$0xff] }
  0xe6   :  { %1252 = vmatpush.msrb.mxu0 %v1209_v17 }
  0xe7   :  { %v747_v20 = vadd.f32 %v4155_v60, %v728_v5  ;;  %v1223_v5 = vld [vmem:[%s4769_s4 + $0x80] sm:$0xff] }
  0xeb   :  { %v4157_v42 = vpop.f32.mrf.mxu2  ;;  %v4159_v43 = vpop.f32.mrf.mxu3 }
  0xec   :  { %v729_v28 = vpop.f32.mrf.mxu0  ;;  %v4161_v30 = vpop.f32.mrf.mxu1  ;;  %v766_v48 = vadd.f32 %v4157_v42, %v529_v22  ;;  %v1208_v42 = vld [vmem:[%s4769_s4 + $0x8] sm:$0xff]  ;;  %v536_v22 = vadd.f32 %v4153_v26, %v4151_v25 }
  0xed   :  { %v730_v44 = vadd.f32 %v729_v28, %v493_v29  ;;  %v1229_v28 = vld [vmem:[%s4769_s4 + $0xb0] sm:$0xff]  ;;  %1253 = vmatpush.msrb.mxu0 %v1208_v42  ;;  %v4300_v29 = vperm.slane %v65_v10, 1 }
  0xee   :  { %1268 = vmatpush.msrb.mxu1 %v1229_v28  ;;  %v785_v59 = vadd.f32 %v4159_v43, %v766_v48 }
  0xef   :  { %v749_v54 = vadd.f32 %v4161_v30, %v730_v44  ;;  %1254 = vmatpush.msrb.mxu0 %v1207_v53 }
  0xf0   :  { %1269 = vmatpush.msrb.mxu1 %v1228_v14 }
  0xf2   :  { %1270 = vmatpush.msrb.mxu1 %v1227_v18 }
  0xf3   :  { %v4163_v31 = vpop.f32.mrf.mxu2  ;;  %v4165_v32 = vpop.f32.mrf.mxu3 }
  0xf4   :  { %v4167_v33 = vpop.f32.mrf.mxu0  ;;  %v4169_v35 = vpop.f32.mrf.mxu1  ;;  %v768_v45 = vadd.f32 %v4163_v31, %v531_v27  ;;  %1271 = vmatpush.msrb.mxu1 %v1226_v47 }
  0xf5   :  { %v733_v2 = vadd.f32 %v4167_v33, %v4143_v51  ;;  %v498_v51 = vadd.f32 %v4149_v24, %v4147_v23 }
  0xf6   :  { %v787_v49 = vadd.f32 %v4165_v32, %v768_v45  ;;  %v1224_v32 = vld [vmem:[%s4769_s4 + $0x88] sm:$0xff]  ;;  %1272 = vmatpush.msrb.mxu1 %v1225_v52 }
  0xf7   :  { %v752_v44 = vadd.f32 %v4169_v35, %v733_v2 }
  0xf8   :  { %1273 = vmatpush.msrb.mxu1 %v1224_v32 }
  0xfa   :  { %1274 = vmatpush.msrb.mxu1 %v1223_v5 }
  0xfb   :  { %v4180_v46 = vpop.f32.mrf.mxu2  ;;  %v4182_v38 = vpop.f32.mrf.mxu3 }
  0xfc   :  { %v4184_v39 = vpop.f32.mrf.mxu0  ;;  %v4186_v40 = vpop.f32.mrf.mxu1  ;;  %v771_v10 = vadd.f32 %v4180_v46, %v4145_v4 }
  0xfd   :  { %v735_v6 = vadd.f32 %v4184_v39, %v498_v51 }
 0x103   :  { %v4212_v19 = vpop.f32.mrf.mxu2  ;;  %v4214_v50 = vpop.f32.mrf.mxu3 }
 0x104   :  { %v1034_v62 = vpop.f32.mrf.mxu0  ;;  %v1053_v63 = vpop.f32.mrf.mxu1  ;;  %v773_v48 = vadd.f32 %v4212_v19, %v536_v22 }
 0x105   :  { %v1054_v8 = vadd.f32 %v1053_v63, %v1034_v62 }
 0x106   :  { %v792_v19 = vadd.f32 %v4214_v50, %v773_v48 }
 0x107   :  { %v1101_v60 = vadd.f32 %v1054_v8, %v747_v20  ;;  %v754_v20 = vadd.f32 %v4186_v40, %v735_v6 }
 0x109   :  { %v4289_v56 = vadd.f32 %v4263_v37, %v1101_v60 }
 0x10b   :  { %v1072_v9 = vpop.f32.mrf.mxu2  ;;  %v1091_v55 = vpop.f32.mrf.mxu3  ;;  %v1150_v33 = vmul.f32 %v4289_v56, %v4289_v56 }
 0x10c   :  { %v1036_v11 = vpop.f32.mrf.mxu0  ;;  %v1055_v12 = vpop.f32.mrf.mxu1  ;;  %v1092_v31 = vadd.f32 %v1091_v55, %v1072_v9 }
 0x10d   :  { %v1056_v21 = vadd.f32 %v1055_v12, %v1036_v11  ;;  %v1281_v12 = vld [vmem:[%s4770_s5 + $0x10] sm:$0xff] }
 0x10e   :  { %v1102_v0 = vadd.f32 %v1092_v31, %v785_v59  ;;  %1301 = vmatpush.msrb.mxu2 %v1281_v12 }
 0x10f   :  { %v1103_v30 = vadd.f32 %v1056_v21, %v749_v54  ;;  %v1280_v21 = vld [vmem:[%s4770_s5 + $0x8] sm:$0xff] }
 0x110   :  { %v4320_v24 = vadd.f32 %v4300_v29, %v1102_v0  ;;  %1302 = vmatpush.msrb.mxu2 %v1279_v16  ;;  %1322 = vmatpush.msrb.mxu3 %v1280_v21 }
 0x111   :  { %v4277_v41 = vadd.f32 %v4263_v37, %v1103_v30  ;;  %v790_v30 = vadd.f32 %v4182_v38, %v771_v10 }
 0x112   :  { %v1151_v27 = vmul.f32 %v4320_v24, %v4320_v24 }
 0x113   :  { %v1074_v57 = vpop.f32.mrf.mxu2  ;;  %v1093_v58 = vpop.f32.mrf.mxu3  ;;  %v1152_v13 = vmul.f32 %v4277_v41, %v4277_v41  ;;  %v1122_v7 = vadd.f32 %v4277_v41, %v4289_v56 }
 0x114   :  { %v1094_v62 = vadd.f32 %v1093_v58, %v1074_v57  ;;  %v1039_v63 = vpop.f32.mrf.mxu0  ;;  %v1058_v1 = vpop.f32.mrf.mxu1 }
 0x115   :  { %v1059_v34 = vadd.f32 %v1058_v1, %v1039_v63  ;;  %v1158_v23 = vadd.f32 %v1152_v13, %v1150_v33  ;;  %v1123_v4 = vrot.slane %v1122_v7, 4 }
 0x116   :  { %v1104_v43 = vadd.f32 %v1094_v62, %v787_v49 }
 0x117   :  { %v1105_v8 = vadd.f32 %v1059_v34, %v752_v44  ;;  %v1159_v46 = vrot.slane %v1158_v23, 4  ;;  %v1124_v14 = vadd.f32 %v1123_v4, %v1122_v7 }
 0x118   :  { %v4310_v3 = vadd.f32 %v4300_v29, %v1104_v43 }
 0x119   :  { %v4346_v40 = vadd.f32 %v4263_v37, %v1105_v8  ;;  %v1160_v25 = vadd.f32 %v1159_v46, %v1158_v23  ;;  %v1125_v59 = vrot.slane %v1124_v14, 2 }
 0x11a   :  { %v1153_v35 = vmul.f32 %v4310_v3, %v4310_v3  ;;  %v1129_v36 = vadd.f32 %v4310_v3, %v4320_v24 }
 0x11b   :  { %v1077_v9 = vpop.f32.mrf.mxu2  ;;  %v1096_v55 = vpop.f32.mrf.mxu3  ;;  %v1154_v42 = vmul.f32 %v4346_v40, %v4346_v40  ;;  %v1161_v62 = vrot.slane %v1160_v25, 2  ;;  %v1126_v50 = vadd.f32 %v1125_v59, %v1124_v14 }
 0x11c   :  { %v1041_v11 = vpop.f32.mrf.mxu0  ;;  %v1060_v39 = vpop.f32.mrf.mxu1  ;;  %v1097_v28 = vadd.f32 %v1096_v55, %v1077_v9  ;;  %v1165_v45 = vadd.f32 %v1153_v35, %v1151_v27  ;;  %v1130_v18 = vrot.slane %v1129_v36, 4 }
 0x11d   :  { %v1061_v54 = vadd.f32 %v1060_v39, %v1041_v11  ;;  %v1162_v33 = vadd.f32 %v1161_v62, %v1160_v25  ;;  %v1127_v55 = vrot.slane %v1126_v50, 1 }
 0x11e   :  { %v1106_v17 = vadd.f32 %v1097_v28, %v790_v30  ;;  %v1166_v57 = vrot.slane %v1165_v45, 4  ;;  %v1131_v2 = vadd.f32 %v1130_v18, %v1129_v36 }
 0x11f   :  { %v1107_v60 = vadd.f32 %v1061_v54, %v754_v20  ;;  %v1163_v35 = vrot.slane %v1162_v33, 1  ;;  %v1128_v21 = vadd.f32 %v1127_v55, %v1126_v50  ;;  %v3725_v55 = vld [vmem:[#allocation6 + $0x1f4] sm:$0xf] }
 0x120   :  { %v4361_v63 = vadd.f32 %v4300_v29, %v1106_v17  ;;  %v1167_v0 = vadd.f32 %v1166_v57, %v1165_v45  ;;  %v1132_v6 = vrot.slane %v1131_v2, 2 }
 0x121   :  { %v4351_v26 = vadd.f32 %v4263_v37, %v1107_v60  ;;  %v1164_v22 = vadd.f32 %v1163_v35, %v1162_v33  ;;  %v3213_v33 = vld [vmem:[#allocation6 + $0x170] sm:$0xf]  ;;  %v3279_v35 = vld [vmem:[#allocation6 + $0x1f8] sm:$0xf0] }
 0x122   :  { %v1155_v34 = vmul.f32 %v4361_v63, %v4361_v63  ;;  %v1133_v20 = vadd.f32 %v1132_v6, %v1131_v2 }
 0x123   :  { %v1136_v31 = vadd.f32 %v4351_v26, %v4346_v40  ;;  %v1156_v47 = vmul.f32 %v4351_v26, %v4351_v26  ;;  %v1079_v38 = vpop.f32.mrf.mxu2  ;;  %v1098_v53 = vpop.f32.mrf.mxu3 }
 0x124   :  { %v1099_v58 = vadd.f32 %v1098_v53, %v1079_v38  ;;  %v1134_v48 = vrot.slane %v1133_v20, 1 }
 0x125   :  { %v1137_v37 = vrot.slane %v1136_v31, 4  ;;  %v1172_v49 = vadd.f32 %v1156_v47, %v1154_v42 }
 0x126   :  { %v1108_v1 = vadd.f32 %v1099_v58, %v792_v19 }
 0x127   :  { %v1138_v13 = vadd.f32 %v1137_v37, %v1136_v31  ;;  %v1173_v52 = vrot.slane %v1172_v49, 4  ;;  %v1135_v31 = vadd.f32 %v1134_v48, %v1133_v20  ;;  %v3724_v20 = vld [vmem:[#allocation6 + $0x1e4] sm:$0xf0] }
 0x128   :  { %v4364_v43 = vadd.f32 %v4300_v29, %v1108_v1  ;;  %v1168_v29 = vrot.slane %v1167_v0, 2 }
 0x129   :  { %v1139_v32 = vrot.slane %v1138_v13, 2  ;;  %v1174_v51 = vadd.f32 %v1173_v52, %v1172_v49 }
 0x12a   :  { %v1143_v5 = vadd.f32 %v4364_v43, %v4361_v63  ;;  %v1157_v44 = vmul.f32 %v4364_v43, %v4364_v43  ;;  %v1169_v54 = vadd.f32 %v1168_v29, %v1167_v0  ;;  %v3215_v29 = vld [vmem:[#allocation6 + $0x178] sm:$0xf0] }
 0x12b   :  { %v1140_v7 = vadd.f32 %v1139_v32, %v1138_v13  ;;  %v1175_v23 = vrot.slane %v1174_v51, 2 }
 0x12c   :  { %v1144_v8 = vrot.slane %v1143_v5, 4  ;;  %v1179_v9 = vadd.f32 %v1157_v44, %v1155_v34  ;;  %v1170_v25 = vrot.slane %v1169_v54, 1  ;;  %v3710_v34 = vld [vmem:[#allocation6 + $0x174] sm:$0xf0] }
 0x12d   :  { %v1141_v10 = vrot.slane %v1140_v7, 1  ;;  %v1176_v11 = vadd.f32 %v1175_v23, %v1174_v51  ;;  %v3726_v23 = vld [vmem:[#allocation6 + $0x1f4] sm:$0xf0] }
 0x12e   :  { %v1145_v39 = vadd.f32 %v1144_v8, %v1143_v5  ;;  %v1180_v12 = vrot.slane %v1179_v9, 4  ;;  %v1171_v47 = vadd.f32 %v1170_v25, %v1169_v54  ;;  %v3277_v5 = vld [vmem:[#allocation6 + $0x1f0] sm:$0xf]  ;;  %v3705_v25 = vld [vmem:[#allocation6 + $0x154] sm:$0xf] }
 0x12f   :  { %v1142_v15 = vadd.f32 %v1141_v10, %v1140_v7  ;;  %v1177_v16 = vrot.slane %v1176_v11, 1  ;;  %v3214_v7 = vor.u32 %v3710_v34, %v3213_v33  ;;  %v3278_v8 = vor.u32 %v3726_v23, %v3277_v5  ;;  %v3703_v33 = vld [vmem:[#allocation6 + $0x144] sm:$0xf]  ;;  %v3191_v34 = vld [vmem:[#allocation6 + $0x148] sm:$0xf0] }
 0x130   :  { %v1146_v4 = vrot.slane %v1145_v39, 2  ;;  %v1181_v46 = vadd.f32 %v1180_v12, %v1179_v9  ;;  %v3709_v9 = vld [vmem:[#allocation6 + $0x174] sm:$0xf]  ;;  %v3708_v12 = vld [vmem:[#allocation6 + $0x164] sm:$0xf0]  ;;  %v3194_v23 = vor.u32 %v3703_v33, %v3191_v34 }
 0x131   :  { %v1178_v27 = vadd.f32 %v1177_v16, %v1176_v11  ;;  %v1191_v60 = vsel %vm1190_vm11, %v1142_v15, %v1128_v21  ;;  %1739 = vmatpush.bf16.msra.mxu0 %v3214_v7  ;;  %v3218_v10 = vor.u32 %v3709_v9, %v3215_v29  ;;  %1758 = vmatpush.bf16.msra.mxu1 %v3278_v8  ;;  %v3269_v15 = vld [vmem:[#allocation6 + $0x1e0] sm:$0xf]  ;;  %v3719_v8 = vld [vmem:[#allocation6 + $0x1c4] sm:$0xf]  ;;  %v3255_v9 = vld [vmem:[#allocation6 + $0x1c8] sm:$0xf0] }
 0x132   :  { %v1147_v28 = vadd.f32 %v1146_v4, %v1145_v39  ;;  %v1182_v36 = vrot.slane %v1181_v46, 2  ;;  %v3282_v11 = vor.u32 %v3725_v55, %v3279_v35  ;;  %v3205_v39 = vld [vmem:[#allocation6 + $0x160] sm:$0xf]  ;;  %v3707_v4 = vld [vmem:[#allocation6 + $0x164] sm:$0xf]  ;;  %v3270_v54 = vor.u32 %v3724_v20, %v3269_v15 }
 0x133   :  { %v1200_v30 = vsel %vm1199_vm12, %v1178_v27, %v1164_v22  ;;  %1777 = vmatpush.bf16.msra.mxu2 %v3218_v10  ;;  %v3206_v16 = vor.u32 %v3708_v12, %v3205_v39  ;;  %v3723_v22 = vld [vmem:[#allocation6 + $0x1e4] sm:$0xf]  ;;  %v3271_v27 = vld [vmem:[#allocation6 + $0x1e8] sm:$0xf0]  ;;  %v3258_v55 = vor.u32 %v3719_v8, %v3255_v9  ;;  %v3181_v10 = vld [vmem:[#allocation6 + $0x130] sm:$0xf] }
 0x134   :  { %v1205_v45 = vsel %vm1204_vm13, %v1191_v60, %v1200_v30  ;;  %v1148_v14 = vrot.slane %v1147_v28, 1  ;;  %v1183_v17 = vadd.f32 %v1182_v36, %v1181_v46  ;;  %v3207_v46 = vld [vmem:[#allocation6 + $0x168] sm:$0xf0]  ;;  %1796 = vmatpush.bf16.msra.mxu3 %v3282_v11  ;;  %v3197_v36 = vld [vmem:[#allocation6 + $0x150] sm:$0xf] }
 0x135   :  { %1255 = vmatmul.f32.vlgmr.msrb.gmra.mxu0 %v1205_v45  ;;  %v3210_v21 = vor.u32 %v3707_v4, %v3207_v46  ;;  %1759 = vmatpush.bf16.msra.mxu1 %v3270_v54  ;;  %v3706_v60 = vld [vmem:[#allocation6 + $0x154] sm:$0xf0]  ;;  %v3261_v30 = vld [vmem:[#allocation6 + $0x1d0] sm:$0xf]  ;;  %v3701_v46 = vld [vmem:[#allocation6 + $0x134] sm:$0xf] }
 0x136   :  { %v1149_v18 = vadd.f32 %v1148_v14, %v1147_v28  ;;  %v1184_v42 = vrot.slane %v1183_v17, 1  ;;  %1740 = vmatpush.bf16.msra.mxu0 %v3206_v16  ;;  %v3274_v28 = vor.u32 %v3723_v22, %v3271_v27  ;;  %v3198_v45 = vor.u32 %v3706_v60, %v3197_v36  ;;  %v3722_v14 = vld [vmem:[#allocation6 + $0x1d4] sm:$0xf0]  ;;  %v3245_v16 = vld [vmem:[#allocation6 + $0x1b0] sm:$0xf] }
 0x137   :  { %1778 = vmatpush.bf16.msra.mxu2 %v3210_v21  ;;  %v3702_v35 = vld [vmem:[#allocation6 + $0x134] sm:$0xf0]  ;;  %v3183_v54 = vld [vmem:[#allocation6 + $0x138] sm:$0xf0]  ;;  %v3717_v21 = vld [vmem:[#allocation6 + $0x1b4] sm:$0xf] }
 0x138   :  { %v1185_v38 = vadd.f32 %v1184_v42, %v1183_v17  ;;  %v1192_v53 = vsel %vm1190_vm11, %v1149_v18, %v1135_v31  ;;  %v3199_v17 = vld [vmem:[#allocation6 + $0x158] sm:$0xf0]  ;;  %1797 = vmatpush.bf16.msra.mxu3 %v3274_v28  ;;  %v3262_v31 = vor.u32 %v3722_v14, %v3261_v30  ;;  %v3182_v15 = vor.u32 %v3702_v35, %v3181_v10  ;;  %v3718_v20 = vld [vmem:[#allocation6 + $0x1b4] sm:$0xf0]  ;;  %v3173_v14 = vld [vmem:[#allocation6 + $0x120] sm:$0xf] }
 0x139   :  { %v3246_v4 = vor.u32 %v3718_v20, %v3245_v16  ;;  %v3186_v60 = vor.u32 %v3701_v46, %v3183_v54  ;;  %v3697_v33 = vld [vmem:[#allocation6 + $0x114] sm:$0xf]  ;;  %v3696_v10 = vld [vmem:[#allocation6 + $0x104] sm:$0xf0]  ;;  %v3221_v35 = vld [vmem:[#allocation6 + $0x180] sm:$0xf] }
 0x13a   :  { %v1201_v19 = vsel %vm1199_vm12, %v1185_v38, %v1171_v47  ;;  %v3202_v47 = vor.u32 %v3705_v25, %v3199_v17  ;;  %v3721_v38 = vld [vmem:[#allocation6 + $0x1d4] sm:$0xf]  ;;  %1741 = vmatpush.bf16.msra.mxu0 %v3198_v45  ;;  %1760 = vmatpush.bf16.msra.mxu1 %v3262_v31  ;;  %v3700_v25 = vld [vmem:[#allocation6 + $0x124] sm:$0xf0]  ;;  %v3237_v17 = vld [vmem:[#allocation6 + $0x1a0] sm:$0xf] }
 0x13b   :  { %v1206_v57 = vsel %vm1204_vm13, %v1192_v53, %v1201_v19  ;;  %v3263_v53 = vld [vmem:[#allocation6 + $0x1d8] sm:$0xf0]  ;;  %v4405_v19 = vld [vmem:[%s4768_s3 + $0x1] ss:$8 sm:$0x3] }
 0x13c   :  { %1275 = vmatmul.f32.vlgmr.msrb.gmra.mxu1 %v1206_v57  ;;  %1779 = vmatpush.bf16.msra.mxu2 %v3202_v47  ;;  %v1362_v5 = vperm.slane %v4405_v19, 0  ;;  %v1363_v12 = vperm.slane %v4405_v19, 1  ;;  %v3174_v47 = vor.u32 %v3700_v25, %v3173_v14  ;;  %v3175_v19 = vld [vmem:[#allocation6 + $0x128] sm:$0xf0] }
 0x13d   :  { %v3159_v16 = vld [vmem:[#allocation6 + $0x108] sm:$0xf0] }
 0x13e   :  { %v3223_v46 = vld [vmem:[#allocation6 + $0x188] sm:$0xf0] }
 0x140   :  { %1780 = vmatpush.bf16.msra.mxu2 %v3194_v23  ;;  %v3231_v23 = vld [vmem:[#allocation6 + $0x198] sm:$0xf0] }
 0x144   :  { %1781 = vmatpush.bf16.msra.mxu2 %v3186_v60 }
 0x1b2   :  { %v1256_v58 = vpop.f32.mrf.mxu0 }
 0x1b9   :  { %v1276_v59 = vpop.f32.mrf.mxu1 }
 0x1ba   :  { %v1277_v37 = vadd.f32 %v1276_v59, %v1256_v58  ;;  %v3266_v58 = vor.u32 %v3721_v38, %v3263_v53  ;;  %v3716_v38 = vld [vmem:[#allocation6 + $0x1a4] sm:$0xf0]  ;;  %v3699_v53 = vld [vmem:[#allocation6 + $0x124] sm:$0xf] }
 0x1bc   :  { %3151 = vmatmul.msk.f32.vlgmr.msrb.gmra.mxu2 %vm1283_vm14, %v1277_v37  ;;  %3152 = vmatmul.msk.f32.vlgmr.msrb.gmra.mxu3 %vm1283_vm14, %v1277_v37  ;;  %v3189_v37 = vld [vmem:[#allocation6 + $0x140] sm:$0xf] }
 0x1bd   :  { %1798 = vmatpush.bf16.msra.mxu3 %v3266_v58  ;;  %v3238_v58 = vor.u32 %v3716_v38, %v3237_v17  ;;  %v3359_v17 = vld [vmem:[#allocation6 + $0x78] sm:$0xf0] }
 0x1c1   :  { %1799 = vmatpush.bf16.msra.mxu3 %v3258_v55  ;;  %v3157_v55 = vld [vmem:[#allocation6 + $0x100] sm:$0xf] }
 0x23f   :  { %v4380_v49 = vpop.f32.mrf.mxu2  ;;  %v4382_v62 = vpop.f32.mrf.mxu3 }
 0x240   :  { %v1327_v1 = vmul.f32 %v4380_v49, %v4380_v49  ;;  %v1328_v2 = vmul.f32 %v4382_v62, %v4382_v62 }
 0x242   :  { %v1331_v13 = vrot.slane %v1327_v1, 6  ;;  %v1332_v52 = vrot.slane %v1328_v2, 6  ;;  %v3704_v1 = vld [vmem:[#allocation6 + $0x144] sm:$0xf0] }
 0x244   :  { %v1335_v0 = vsub.f32 %v4380_v49, %v1331_v13  ;;  %v1336_v32 = vsub.f32 %v4382_v62, %v1332_v52  ;;  %v3190_v13 = vor.u32 %v3704_v1, %v3189_v37  ;;  %v3253_v52 = vld [vmem:[#allocation6 + $0x1c0] sm:$0xf]  ;;  %v3239_v37 = vld [vmem:[#allocation6 + $0x1a8] sm:$0xf0]  ;;  %v3165_v1 = vld [vmem:[#allocation6 + $0x110] sm:$0xf] }
 0x246   :  { %v1337_v51 = vmax.f32 %v1335_v0, 0.0  ;;  %v1338_v50 = vmax.f32 %v1336_v32, 0.0  ;;  %v3720_v0 = vld [vmem:[#allocation6 + $0x1c4] sm:$0xf0]  ;;  %1742 = vmatpush.bf16.msra.mxu0 %v3190_v13 }
 0x247   :  { %v4414_v32 = vld [vmem:[%s4768_s3 + $0x2] ss:$8 sm:$0x3] }
 0x248   :  { %v4390_v44 = vadd.f32 1e-05, %v1337_v51  ;;  %v4392_v6 = vadd.f32 1e-05, %v1338_v50  ;;  %v3254_v50 = vor.u32 %v3720_v0, %v3253_v52  ;;  %v1377_v22 = vperm.slane %v4414_v32, 0 }
 0x249   :  { %v1378_v36 = vperm.slane %v4414_v32, 1  ;;  %v3698_v52 = vld [vmem:[#allocation6 + $0x114] sm:$0xf0]  ;;  %v3229_v0 = vld [vmem:[#allocation6 + $0x190] sm:$0xf] }
 0x24a   :  { %3767 = vrsqrt.f32 %v4390_v44  ;;  %vm1347_vm3 = vweird.f32 %v4390_v44  ;;  %1761 = vmatpush.bf16.msra.mxu1 %v3254_v50  ;;  %vm1357_vm6 = vweird.f32 %v4392_v6  ;;  %1743 = vmatpush.bf16.msra.mxu0 %v3182_v15  ;;  %v3714_v50 = vld [vmem:[#allocation6 + $0x194] sm:$0xf0]  ;;  %v3695_v15 = vld [vmem:[#allocation6 + $0x104] sm:$0xf] }
 0x24b   :  { %3769 = vrsqrt.f32 %v4392_v6  ;;  %v3230_v34 = vor.u32 %v3714_v50, %v3229_v0 }
 0x24e   :  { %1762 = vmatpush.bf16.msra.mxu1 %v3246_v4  ;;  %1744 = vmatpush.bf16.msra.mxu0 %v3174_v47  ;;  %v3711_v4 = vld [vmem:[#allocation6 + $0x184] sm:$0xf] }
 0x250   :  { %v4396_v48 = vpop.eup %3767 }
 0x251   :  { %v4398_v18 = vpop.eup %3769  ;;  %v1342_v42 = vmul.f32 %v4396_v48, %v4390_v44  ;;  %vm1348_vm15 = vweird.f32 %v4396_v48 }
 0x252   :  { %v1352_v57 = vmul.f32 %v4398_v18, %v4392_v6  ;;  %vm1358_vm4 = vweird.f32 %v4398_v18  ;;  %vm4422_vm5 = vmor %vm1347_vm3, %vm1348_vm15  ;;  %v3247_v6 = vld [vmem:[#allocation6 + $0x1b8] sm:$0xf0]  ;;  %1763 = vmatpush.bf16.msra.mxu1 %v3238_v58 }
 0x253   :  { %v1343_v59 = vmul.f32 %v4396_v48, %v1342_v42  ;;  %vm4433_vm0 = vmor %vm1357_vm6, %vm1358_vm4  ;;  %v3250_v45 = vor.u32 %v3717_v21, %v3247_v6  ;;  %v3226_v21 = vor.u32 %v3711_v4, %v3223_v46 }
 0x254   :  { %v1353_v2 = vmul.f32 %v4398_v18, %v1352_v57 }
 0x255   :  { %v1344_v51 = vmul.f32 0.5, %v1343_v59  ;;  %1800 = vmatpush.bf16.msra.mxu3 %v3250_v45  ;;  %v3178_v59 = vor.u32 %v3699_v53, %v3175_v19  ;;  %v3357_v53 = vld [vmem:[#allocation6 + $0x70] sm:$0xf]  ;;  %v3678_v19 = vld [vmem:[#allocation6 + $0x74] sm:$0xf0] }
 0x256   :  { %v1354_v7 = vmul.f32 0.5, %v1353_v2  ;;  %1764 = vmatpush.bf16.msra.mxu1 %v3230_v34 }
 0x257   :  { %v1345_v29 = vsub.f32 1.5, %v1344_v51  ;;  %1782 = vmatpush.bf16.msra.mxu2 %v3178_v59 }
 0x258   :  { %v1355_v39 = vsub.f32 1.5, %v1354_v7  ;;  %v3713_v7 = vld [vmem:[#allocation6 + $0x194] sm:$0xf] }
 0x259   :  { %v1346_v44 = vmul.f32 %v4396_v48, %v1345_v29  ;;  %v3234_v29 = vor.u32 %v3713_v7, %v3231_v23  ;;  %v3413_v7 = vld [vmem:[#allocation6 + $0xe0] sm:$0xf]  ;;  %v3692_v23 = vld [vmem:[#allocation6 + $0xe4] sm:$0xf0] }
 0x25a   :  { %v1356_v27 = vmul.f32 %v4398_v18, %v1355_v39  ;;  %v3158_v39 = vor.u32 %v3696_v10, %v3157_v55  ;;  %v3673_v55 = vld [vmem:[#allocation6 + $0x54] sm:$0xf]  ;;  %v3343_v10 = vld [vmem:[#allocation6 + $0x58] sm:$0xf0] }
 0x25b   :  { %v1350_v30 = vsel %vm4422_vm5, %v4396_v48, %v1346_v44  ;;  %v3715_v48 = vld [vmem:[#allocation6 + $0x1a4] sm:$0xf] }
 0x25c   :  { %v1366_v42 = vmul.f32 %v1362_v5, %v1350_v30  ;;  %v1360_v31 = vsel %vm4433_vm0, %v4398_v18, %v1356_v27  ;;  %v3242_v13 = vor.u32 %v3715_v48, %v3239_v37  ;;  %v3166_v18 = vor.u32 %v3698_v52, %v3165_v1  ;;  %v3167_v5 = vld [vmem:[#allocation6 + $0x118] sm:$0xf0]  ;;  %v3694_v1 = vld [vmem:[#allocation6 + $0xf4] sm:$0xf0] }
 0x25d   :  { %v1367_v57 = vmul.f32 %v1363_v12, %v1360_v31  ;;  %v3170_v9 = vor.u32 %v3697_v33, %v3167_v5  ;;  %v3712_v12 = vld [vmem:[#allocation6 + $0x184] sm:$0xf0]  ;;  %v3423_v31 = vld [vmem:[#allocation6 + $0xf8] sm:$0xf0]  ;;  %v3415_v33 = vld [vmem:[#allocation6 + $0xe8] sm:$0xf0] }
 0x25e   :  { %v1370_v2 = vrot.slane %v1366_v42, 2  ;;  %1383 = vst [vmem:[#allocation1] sm:$0xff] %v1366_v42  ;;  %1801 = vmatpush.bf16.msra.mxu3 %v3242_v13  ;;  %1745 = vmatpush.bf16.msra.mxu0 %v3166_v18  ;;  %v3222_v44 = vor.u32 %v3712_v12, %v3221_v35  ;;  %v3693_v42 = vld [vmem:[#allocation6 + $0xf4] sm:$0xf] }
 0x25f   :  { %v1371_v51 = vrot.slane %v1367_v57, 2  ;;  %1384 = vst [vmem:[#allocation1 + $0x9] sm:$0xff] %v1367_v57  ;;  %1783 = vmatpush.bf16.msra.mxu2 %v3170_v9  ;;  %v3421_v57 = vld [vmem:[#allocation6 + $0xf0] sm:$0xf]  ;;  %v3426_v0 = vor.u32 %v3693_v42, %v3423_v31  ;;  %v3689_v35 = vld [vmem:[#allocation6 + $0xd4] sm:$0xf] }
 0x260   :  { %v1374_v11 = vmul.f32 %v1370_v2, %v4380_v49  ;;  %1765 = vmatpush.bf16.msra.mxu1 %v3222_v44  ;;  %v3351_v2 = vld [vmem:[#allocation6 + $0x68] sm:$0xf0]  ;;  %v3422_v18 = vor.u32 %v3694_v1, %v3421_v57  ;;  %v3674_v44 = vld [vmem:[#allocation6 + $0x54] sm:$0xf0] }
 0x261   :  { %v1375_v8 = vmul.f32 %v1371_v51, %v4382_v62  ;;  %v3162_v62 = vor.u32 %v3695_v15, %v3159_v16  ;;  %v3358_v51 = vor.u32 %v3678_v19, %v3357_v53  ;;  %v3407_v16 = vld [vmem:[#allocation6 + $0xd8] sm:$0xf0] }
 0x262   :  { %1802 = vmatpush.bf16.msra.mxu3 %v3234_v29  ;;  %v1381_v27 = vsub.f32 %v1377_v22, %v1374_v11  ;;  %1746 = vmatpush.bf16.msra.mxu0 %v3158_v39 }
 0x263   :  { %v1382_v20 = vsub.f32 %v1378_v36, %v1375_v8  ;;  %v3677_v36 = vld [vmem:[#allocation6 + $0x74] sm:$0xf]  ;;  %1784 = vmatpush.bf16.msra.mxu2 %v3162_v62 }
 0x264   :  { %v3362_v52 = vor.u32 %v3677_v36, %v3359_v17  ;;  %2012 = vmatpush.bf16.msrb.mxu1 %v3422_v18  ;;  %v3335_v17 = vld [vmem:[#allocation6 + $0x48] sm:$0xf0]  ;;  %v3669_v18 = vld [vmem:[#allocation6 + $0x34] sm:$0xf] }
 0x265   :  { %v1407_v54 = vrot.slane %v1382_v20, 7  ;;  %v3341_v20 = vld [vmem:[#allocation6 + $0x50] sm:$0xf] }
 0x266   :  { %v1386_v28 = vld [vmem:[#allocation1 + $0x2] ss:$9 sm:$0xff]  ;;  %1803 = vmatpush.bf16.msra.mxu3 %v3226_v21  ;;  %1993 = vmatpush.bf16.msrb.mxu0 %v3358_v51  ;;  %v3342_v57 = vor.u32 %v3674_v44, %v3341_v20 }
 0x267   :  { %v1388_v49 = vld [vmem:[#allocation1 + $0x3] ss:$9 sm:$0xff]  ;;  %v1389_v60 = vperm.slane %v1386_v28, 0  ;;  %v1390_v6 = vperm.slane %v1386_v28, 1  ;;  %v1409_v14 = vsel %vm76_vm1, %v1381_v27, %v1407_v54  ;;  %v1410_v25 = vsel %vm1190_vm11, %v1381_v27, %v1407_v54  ;;  %2031 = vmatpush.bf16.msrb.mxu2 %v3362_v52  ;;  %v3405_v21 = vld [vmem:[#allocation6 + $0xd0] sm:$0xf] }
 0x268   :  { %v1391_v30 = vperm.slane %v1388_v49, 0  ;;  %v1392_v45 = vperm.slane %v1388_v49, 1  ;;  %v1412_v13 = vperm.slane %v1409_v14, 0  ;;  %v3383_v44 = vld [vmem:[#allocation6 + $0xa8] sm:$0xf0] }
 0x269   :  { %v1397_v32 = vmul.f32 %v1389_v60, %v4289_v56  ;;  %v1398_v22 = vmul.f32 %v1390_v6, %v4320_v24  ;;  %v1399_v47 = vmul.f32 %v1389_v60, %v4277_v41  ;;  %v1400_v38 = vmul.f32 %v1390_v6, %v4310_v3  ;;  %v3675_v56 = vld [vmem:[#allocation6 + $0x64] sm:$0xf]  ;;  %v3690_v6 = vld [vmem:[#allocation6 + $0xd4] sm:$0xf0] }
 0x26a   :  { %v1401_v58 = vmul.f32 %v1391_v30, %v4346_v40  ;;  %v1402_v59 = vmul.f32 %v1392_v45, %v4361_v63  ;;  %v1403_v48 = vmul.f32 %v1391_v30, %v4351_v26  ;;  %v1404_v37 = vmul.f32 %v1392_v45, %v4364_v43  ;;  %v3691_v3 = vld [vmem:[#allocation6 + $0xe4] sm:$0xf]  ;;  %v3349_v26 = vld [vmem:[#allocation6 + $0x60] sm:$0xf]  ;;  %v3676_v43 = vld [vmem:[#allocation6 + $0x64] sm:$0xf0]  ;;  %2050 = vmatpush.bf16.msrb.mxu3 %v3426_v0 }
 0x26b   :  { %v1411_v24 = vrot.slane %v1410_v25, 1  ;;  %v1413_v41 = vperm.slane %v1409_v14, 1  ;;  %v3354_v50 = vor.u32 %v3675_v56, %v3351_v2  ;;  %v1420_v63 = vadd.f32 %v1412_v13, %v1397_v32  ;;  %v3671_v25 = vld [vmem:[#allocation6 + $0x44] sm:$0xf] }
 0x26c   :  { %v1422_v8 = vadd.f32 %v1412_v13, %v1399_v47  ;;  %v3418_v29 = vor.u32 %v3691_v3, %v3415_v33  ;;  %v3350_v36 = vor.u32 %v3676_v43, %v3349_v26  ;;  %v3414_v14 = vor.u32 %v3692_v23, %v3413_v7  ;;  %v3687_v47 = vld [vmem:[#allocation6 + $0xc4] sm:$0xf]  ;;  %v3688_v13 = vld [vmem:[#allocation6 + $0xc4] sm:$0xf0]  ;;  %v3391_v43 = vld [vmem:[#allocation6 + $0xb8] sm:$0xf0] }
 0x26d   :  { %v1414_v40 = vperm.slane %v1411_v24, 0  ;;  %v1415_v34 = vperm.slane %v1411_v24, 1  ;;  %v1421_v5 = vadd.f32 %v1413_v41, %v1398_v22  ;;  %v1423_v9 = vadd.f32 %v1413_v41, %v1400_v38  ;;  %2032 = vmatpush.bf16.msrb.mxu2 %v3354_v50  ;;  %v3399_v38 = vld [vmem:[#allocation6 + $0xc8] sm:$0xf0]  ;;  %v3397_v24 = vld [vmem:[#allocation6 + $0xc0] sm:$0xf] }
 0x26e   :  { %v1428_v4 = vmax.f32 %v1420_v63, 0.0  ;;  %v1430_v62 = vmax.f32 %v1422_v8, 0.0  ;;  %2051 = vmatpush.bf16.msrb.mxu3 %v3418_v29  ;;  %v3346_v32 = vor.u32 %v3673_v55, %v3343_v10  ;;  %v3410_v22 = vor.u32 %v3689_v35, %v3407_v16  ;;  %1994 = vmatpush.bf16.msrb.mxu0 %v3350_v36  ;;  %v3685_v63 = vld [vmem:[#allocation6 + $0xb4] sm:$0xf]  ;;  %v3325_v7 = vld [vmem:[#allocation6 + $0x30] sm:$0xf] }
 0x26f   :  { %v1424_v11 = vadd.f32 %v1414_v40, %v1401_v58  ;;  %v1425_v39 = vadd.f32 %v1415_v34, %v1402_v59  ;;  %v1426_v12 = vadd.f32 %v1414_v40, %v1403_v48  ;;  %v1427_v15 = vadd.f32 %v1415_v34, %v1404_v37  ;;  %2013 = vmatpush.bf16.msrb.mxu1 %v3414_v14  ;;  %v3333_v59 = vld [vmem:[#allocation6 + $0x40] sm:$0xf]  ;;  %v3672_v48 = vld [vmem:[#allocation6 + $0x44] sm:$0xf0]  ;;  %v3327_v34 = vld [vmem:[#allocation6 + $0x38] sm:$0xf0] }
 0x270   :  { %v1429_v46 = vmax.f32 %v1421_v5, 0.0  ;;  %v1431_v54 = vmax.f32 %v1423_v9, 0.0  ;;  %v3406_v58 = vor.u32 %v3690_v6, %v3405_v21  ;;  %v3338_v2 = vor.u32 %v3671_v25, %v3335_v17  ;;  %v3670_v8 = vld [vmem:[#allocation6 + $0x34] sm:$0xf0]  ;;  %v3389_v9 = vld [vmem:[#allocation6 + $0xb0] sm:$0xf] }
 0x271   :  { %v1432_v27 = vmax.f32 %v1424_v11, 0.0  ;;  %v1433_v28 = vmax.f32 %v1425_v39, 0.0  ;;  %v1434_v49 = vmax.f32 %v1426_v12, 0.0  ;;  %v1435_v60 = vmax.f32 %v1427_v15, 0.0  ;;  %2033 = vmatpush.bf16.msrb.mxu2 %v3346_v32  ;;  %v3686_v10 = vld [vmem:[#allocation6 + $0xb4] sm:$0xf0] }
 0x272   :  { %v1440_v30 = vpack.c.bf16 %v1429_v46, %v1428_v4  ;;  %v1441_v45 = vpack.c.bf16 %v1431_v54, %v1430_v62  ;;  %2052 = vmatpush.bf16.msrb.mxu3 %v3410_v22  ;;  %v3402_v3 = vor.u32 %v3687_v47, %v3399_v38  ;;  %1995 = vmatpush.bf16.msrb.mxu0 %v3342_v57  ;;  %v3667_v35 = vld [vmem:[#allocation6 + $0x24] sm:$0xf]  ;;  %v3319_v12 = vld [vmem:[#allocation6 + $0x28] sm:$0xf0]  ;;  %v3317_v62 = vld [vmem:[#allocation6 + $0x20] sm:$0xf] }
 0x273   :  { %v1442_v42 = vpack.c.bf16 %v1433_v28, %v1432_v27  ;;  %v1443_v31 = vpack.c.bf16 %v1435_v60, %v1434_v49  ;;  %2014 = vmatpush.bf16.msrb.mxu1 %v3406_v58  ;;  %v3334_v33 = vor.u32 %v3672_v48, %v3333_v59  ;;  %v3398_v40 = vor.u32 %v3688_v13, %v3397_v24  ;;  %v3683_v15 = vld [vmem:[#allocation6 + $0xa4] sm:$0xf]  ;;  %v3668_v28 = vld [vmem:[#allocation6 + $0x24] sm:$0xf0]  ;;  %v3381_v49 = vld [vmem:[#allocation6 + $0xa0] sm:$0xf] }
 0x274   :  { %v1449_v53 = vrot.slane %v1440_v30, 7  ;;  %v1451_v19 = vrot.slane %v1441_v45, 7  ;;  %v3330_v26 = vor.u32 %v3669_v18, %v3327_v34  ;;  %v3394_v23 = vor.u32 %v3685_v63, %v3391_v43  ;;  %v3684_v6 = vld [vmem:[#allocation6 + $0xa4] sm:$0xf0]  ;;  %v3665_v30 = vld [vmem:[#allocation6 + $0x14] sm:$0xf] }
 0x275   :  { %v1454_v1 = vrot.slane %v1442_v42, 7  ;;  %v1456_v56 = vrot.slane %v1443_v31, 7  ;;  %2034 = vmatpush.bf16.msrb.mxu2 %v3338_v2  ;;  %v3326_v55 = vor.u32 %v3670_v8, %v3325_v7  ;;  %v3390_v39 = vor.u32 %v3686_v10, %v3389_v9  ;;  %v3311_v45 = vld [vmem:[#allocation6 + $0x18] sm:$0xf0]  ;;  %v3681_v42 = vld [vmem:[#allocation6 + $0x94] sm:$0xf] }
 0x276   :  { %v1450_v41 = vrot.slane %v1449_v53, 4  ;;  %v1453_v52 = vrot.slane %v1451_v19, 4  ;;  %1465 = vst [vmem:[#allocation2] sm:$0xee] %v1449_v53  ;;  %2053 = vmatpush.bf16.msrb.mxu3 %v3402_v3  ;;  %1996 = vmatpush.bf16.msrb.mxu0 %v3334_v33  ;;  %v3322_v20 = vor.u32 %v3667_v35, %v3319_v12  ;;  %v3386_v46 = vor.u32 %v3683_v15, %v3383_v44  ;;  %v3375_v31 = vld [vmem:[#allocation6 + $0x98] sm:$0xf0] }
 0x277   :  { %v1455_v0 = vrot.slane %v1454_v1, 4  ;;  %v1458_v51 = vrot.slane %v1456_v56, 4  ;;  %1468 = vst [vmem:[#allocation2 + $0x18] sm:$0xee] %v1454_v1  ;;  %2015 = vmatpush.bf16.msrb.mxu1 %v3398_v40  ;;  %v3318_v60 = vor.u32 %v3668_v28, %v3317_v62  ;;  %v3382_v17 = vor.u32 %v3684_v6, %v3381_v49  ;;  %v3309_v57 = vld [vmem:[#allocation6 + $0x10] sm:$0xf] }
 0x278   :  { %v4466_v50 = vsel %vm4460_vm7, %v1450_v41, %v1451_v19  ;;  %1467 = vst [vmem:[#allocation2 + $0x10] sm:$0x11] %v1453_v52  ;;  %v3314_v19 = vor.u32 %v3665_v30, %v3311_v45  ;;  %v3666_v58 = vld [vmem:[#allocation6 + $0x14] sm:$0xf0]  ;;  %v3378_v59 = vor.u32 %v3681_v42, %v3375_v31  ;;  %v3373_v48 = vld [vmem:[#allocation6 + $0x90] sm:$0xf] }
 0x279   :  { %v4470_v5 = vsel %vm4460_vm7, %v1455_v0, %v1456_v56  ;;  %1466 = vst [vmem:[#allocation2 + $0x8] sm:$0xff] %v4466_v50  ;;  %v1519_v29 = vrot.slane %v4466_v50, 5  ;;  %2035 = vmatpush.bf16.msrb.mxu2 %v3330_v26  ;;  %v3682_v37 = vld [vmem:[#allocation6 + $0x94] sm:$0xf0]  ;;  %v3663_v1 = vld [vmem:[#allocation6 + $0x4] sm:$0xf]  ;;  %v3310_v24 = vor.u32 %v3666_v58, %v3309_v57 }
 0x27a   :  { %1469 = vst [vmem:[#allocation2 + $0x20] sm:$0xff] %v4470_v5  ;;  %2054 = vmatpush.bf16.msrb.mxu3 %v3394_v23  ;;  %1997 = vmatpush.bf16.msrb.mxu0 %v3326_v55  ;;  %v1526_v25 = vrot.slane %v4470_v5, 5  ;;  %v3374_v13 = vor.u32 %v3682_v37, %v3373_v48  ;;  %v3303_v41 = vld [vmem:[#allocation6 + $0x8] sm:$0xf0]  ;;  %v3679_v52 = vld [vmem:[#allocation6 + $0x84] sm:$0xf] }
 0x27b   :  { %1470 = vst [vmem:[#allocation2 + $0x28] sm:$0x11] %v1458_v51  ;;  %v1521_v21 = vrot.slane %v1519_v29, 4  ;;  %2016 = vmatpush.bf16.msrb.mxu1 %v3390_v39  ;;  %v3367_v3 = vld [vmem:[#allocation6 + $0x88] sm:$0xf0]  ;;  %v3306_v0 = vor.u32 %v3663_v1, %v3303_v41 }
 0x27c   :  { %v3370_v51 = vor.u32 %v3679_v52, %v3367_v3  ;;  %v3301_v18 = vld [vmem:[#allocation6] sm:$0xf]  ;;  %v3664_v33 = vld [vmem:[#allocation6 + $0x4] sm:$0xf0]  ;;  %v1528_v26 = vrot.slane %v1526_v25, 4 }
 0x27d   :  { %v1507_v11 = vld [vmem:[#allocation2] sm:$0xee]  ;;  %2036 = vmatpush.bf16.msrb.mxu2 %v3322_v20  ;;  %v3365_v40 = vld [vmem:[#allocation6 + $0x80] sm:$0xf]  ;;  %v3680_v34 = vld [vmem:[#allocation6 + $0x84] sm:$0xf0]  ;;  %v3302_v23 = vor.u32 %v3664_v33, %v3301_v18 }
 0x27e   :  { %v3153_v16 = vrot.slane %v1507_v11, 9  ;;  %2055 = vmatpush.bf16.msrb.mxu3 %v3386_v46  ;;  %v4480_v38 = vld [vmem:[#allocation2 + $0x18] sm:$0xee]  ;;  %1998 = vmatpush.bf16.msrb.mxu0 %v3318_v60  ;;  %v3741_v7 = vld [vmem:[#allocation6 + $0x274] sm:$0xf]  ;;  %v3366_v8 = vor.u32 %v3680_v34, %v3365_v40 }
 0x27f   :  { %v1508_v4 = vld [vmem:[#allocation2 + $0x10] sm:$0x11]  ;;  %2017 = vmatpush.bf16.msrb.mxu1 %v3382_v17  ;;  %v3154_v63 = vrot.slane %v4480_v38, 9  ;;  %v3489_v9 = vld [vmem:[#allocation6 + $0x278] sm:$0xf0] }
 0x280   :  { %v1520_v54 = vsel %vm4117_vm10, %v3153_v16, %v1519_v29  ;;  %v1522_v27 = vrot.slane %v1508_v4, 5  ;;  %v3757_v29 = vld [vmem:[#allocation6 + $0x2f4] sm:$0xf]  ;;  %v3553_v55 = vld [vmem:[#allocation6 + $0x2f8] sm:$0xf0]  ;;  %v3492_v10 = vor.u32 %v3741_v7, %v3489_v9 }
 0x281   :  { %v1563_v14 = vunpack.c.l.b16 %v1520_v54  ;;  %v1564_v22 = vunpack.c.h.b16 %v1520_v54  ;;  %2037 = vmatpush.bf16.msrb.mxu2 %v3314_v19  ;;  %v3556_v35 = vor.u32 %v3757_v29, %v3553_v55  ;;  %v3487_v11 = vld [vmem:[#allocation6 + $0x270] sm:$0xf]  ;;  %v3742_v39 = vld [vmem:[#allocation6 + $0x274] sm:$0xf0]  ;;  %v3739_v20 = vld [vmem:[#allocation6 + $0x264] sm:$0xf] }
 0x282   :  { %v1523_v36 = vsel %vm4117_vm10, %v1521_v21, %v1522_v27  ;;  %v4482_v53 = vld [vmem:[#allocation2 + $0x28] sm:$0x11]  ;;  %2056 = vmatpush.bf16.msrb.mxu3 %v3378_v59  ;;  %1999 = vmatpush.bf16.msrb.mxu0 %v3310_v24  ;;  %v3551_v12 = vld [vmem:[#allocation6 + $0x2f0] sm:$0xf]  ;;  %v3488_v15 = vor.u32 %v3742_v39, %v3487_v11  ;;  %v3481_v44 = vld [vmem:[#allocation6 + $0x268] sm:$0xf0] }
 0x283   :  { %v1565_v32 = vunpack.c.l.b16 %v1523_v36  ;;  %v1566_v47 = vunpack.c.h.b16 %v1523_v36  ;;  %v1529_v43 = vrot.slane %v4482_v53, 5  ;;  %2018 = vmatpush.bf16.msrb.mxu1 %v3374_v13  ;;  %v3758_v16 = vld [vmem:[#allocation6 + $0x2f4] sm:$0xf0]  ;;  %v3484_v46 = vor.u32 %v3739_v20, %v3481_v44  ;;  %v3755_v62 = vld [vmem:[#allocation6 + $0x2e4] sm:$0xf] }
 0x284   :  { %v3552_v4 = vor.u32 %v3758_v16, %v3551_v12  ;;  %v3545_v54 = vld [vmem:[#allocation6 + $0x2e8] sm:$0xf0]  ;;  %v3479_v21 = vld [vmem:[#allocation6 + $0x260] sm:$0xf]  ;;  %v3740_v28 = vld [vmem:[#allocation6 + $0x264] sm:$0xf0] }
 0x285   :  { %v1571_v56 = vpack.c.b16 %v1565_v32, %v1563_v14  ;;  %v1572_v2 = vpack.c.b16 %v1566_v47, %v1564_v22  ;;  %2038 = vmatpush.bf16.msrb.mxu2 %v3306_v0  ;;  %v3548_v27 = vor.u32 %v3755_v62, %v3545_v54  ;;  %v3543_v49 = vld [vmem:[#allocation6 + $0x2e0] sm:$0xf]  ;;  %v3756_v60 = vld [vmem:[#allocation6 + $0x2e4] sm:$0xf0]  ;;  %v1530_v6 = vsel %vm4117_vm10, %v1528_v26, %v1529_v43  ;;  %v3737_v36 = vld [vmem:[#allocation6 + $0x254] sm:$0xf] }
 0x286   :  { %2057 = vmatpush.bf16.msrb.mxu3 %v3370_v51  ;;  %2000 = vmatpush.bf16.msrb.mxu0 %v3302_v23  ;;  %v3480_v30 = vor.u32 %v3740_v28, %v3479_v21  ;;  %v3544_v45 = vor.u32 %v3756_v60, %v3543_v49  ;;  %v3473_v14 = vld [vmem:[#allocation6 + $0x258] sm:$0xf0]  ;;  %v3753_v17 = vld [vmem:[#allocation6 + $0x2d4] sm:$0xf]  ;;  %v3471_v31 = vld [vmem:[#allocation6 + $0x250] sm:$0xf]  ;;  %v1527_v22 = vsel %vm4117_vm10, %v3154_v63, %v1526_v25  ;;  %v1569_v57 = vunpack.c.l.b16 %v1530_v6 }
 0x287   :  { %1747 = vmatmul.bf16.vlgmr.msra.gmra.mxu0 %v1571_v56  ;;  %1766 = vmatmul.bf16.vlgmr.msra.gmra.mxu1 %v1572_v2  ;;  %v3537_v42 = vld [vmem:[#allocation6 + $0x2d8] sm:$0xf0]  ;;  %v3738_v32 = vld [vmem:[#allocation6 + $0x254] sm:$0xf0]  ;;  %v3476_v47 = vor.u32 %v3737_v36, %v3473_v14  ;;  %v3535_v53 = vld [vmem:[#allocation6 + $0x2d0] sm:$0xf]  ;;  %v1570_v58 = vunpack.c.h.b16 %v1530_v6  ;;  %v1567_v13 = vunpack.c.l.b16 %v1527_v22  ;;  %v1568_v61 = vunpack.c.h.b16 %v1527_v22 }
 0x288   :  { %1785 = vmatmul.bf16.vlgmr.msra.gmra.mxu2 %v1571_v56  ;;  %1804 = vmatmul.bf16.vlgmr.msra.gmra.mxu3 %v1572_v2  ;;  %v3540_v38 = vor.u32 %v3753_v17, %v3537_v42  ;;  %v3754_v19 = vld [vmem:[#allocation6 + $0x2d4] sm:$0xf0]  ;;  %v3735_v59 = vld [vmem:[#allocation6 + $0x244] sm:$0xf]  ;;  %v3465_v48 = vld [vmem:[#allocation6 + $0x248] sm:$0xf0]  ;;  %v3472_v37 = vor.u32 %v3738_v32, %v3471_v31 }
 0x289   :  { %2340 = vmatpush.bf16.msra.mxu2 %v3492_v10  ;;  %2019 = vmatpush.bf16.msrb.mxu1 %v3366_v8  ;;  %v3536_v1 = vor.u32 %v3754_v19, %v3535_v53  ;;  %v3751_v56 = vld [vmem:[#allocation6 + $0x2c4] sm:$0xf]  ;;  %v3529_v2 = vld [vmem:[#allocation6 + $0x2c8] sm:$0xf0]  ;;  %v3463_v24 = vld [vmem:[#allocation6 + $0x240] sm:$0xf]  ;;  %v1573_v3 = vpack.c.b16 %v1569_v57, %v1567_v13  ;;  %v1574_v0 = vpack.c.b16 %v1570_v58, %v1568_v61 }
 0x28a   :  { %2359 = vmatpush.bf16.msra.mxu3 %v3556_v35  ;;  %2302 = vmatpush.bf16.msra.mxu0 %v3488_v15  ;;  %v3736_v25 = vld [vmem:[#allocation6 + $0x244] sm:$0xf0]  ;;  %v3527_v41 = vld [vmem:[#allocation6 + $0x2c0] sm:$0xf]  ;;  %v3468_v51 = vor.u32 %v3735_v59, %v3465_v48  ;;  %v3532_v18 = vor.u32 %v3751_v56, %v3529_v2  ;;  %v3733_v34 = vld [vmem:[#allocation6 + $0x234] sm:$0xf] }
 0x28b   :  { %v3752_v52 = vld [vmem:[#allocation6 + $0x2c4] sm:$0xf0]  ;;  %v3464_v33 = vor.u32 %v3736_v25, %v3463_v24  ;;  %v3457_v63 = vld [vmem:[#allocation6 + $0x238] sm:$0xf0]  ;;  %v3749_v26 = vld [vmem:[#allocation6 + $0x2b4] sm:$0xf] }
 0x28c   :  { %v3528_v40 = vor.u32 %v3752_v52, %v3527_v41  ;;  %v3460_v43 = vor.u32 %v3733_v34, %v3457_v63  ;;  %v3521_v7 = vld [vmem:[#allocation6 + $0x2b8] sm:$0xf0]  ;;  %v3455_v23 = vld [vmem:[#allocation6 + $0x230] sm:$0xf]  ;;  %v3734_v8 = vld [vmem:[#allocation6 + $0x234] sm:$0xf0] }
 0x28d   :  { %2321 = vmatpush.bf16.msra.mxu1 %v3552_v4  ;;  %2341 = vmatpush.bf16.msra.mxu2 %v3484_v46  ;;  %v3524_v9 = vor.u32 %v3749_v26, %v3521_v7  ;;  %v3456_v29 = vor.u32 %v3734_v8, %v3455_v23  ;;  %v3519_v55 = vld [vmem:[#allocation6 + $0x2b0] sm:$0xf]  ;;  %v3750_v10 = vld [vmem:[#allocation6 + $0x2b4] sm:$0xf0]  ;;  %v3731_v35 = vld [vmem:[#allocation6 + $0x224] sm:$0xf] }
 0x28e   :  { %2360 = vmatpush.bf16.msra.mxu3 %v3548_v27  ;;  %2303 = vmatpush.bf16.msra.mxu0 %v3480_v30  ;;  %v3520_v11 = vor.u32 %v3750_v10, %v3519_v55  ;;  %v3449_v39 = vld [vmem:[#allocation6 + $0x228] sm:$0xf0]  ;;  %v3747_v12 = vld [vmem:[#allocation6 + $0x2a4] sm:$0xf]  ;;  %v3447_v16 = vld [vmem:[#allocation6 + $0x220] sm:$0xf] }
 0x28f   :  { %v3513_v15 = vld [vmem:[#allocation6 + $0x2a8] sm:$0xf0]  ;;  %v3732_v20 = vld [vmem:[#allocation6 + $0x224] sm:$0xf0]  ;;  %v3511_v44 = vld [vmem:[#allocation6 + $0x2a0] sm:$0xf]  ;;  %v3452_v4 = vor.u32 %v3731_v35, %v3449_v39 }
 0x290   :  { %v3516_v46 = vor.u32 %v3747_v12, %v3513_v15  ;;  %v3748_v62 = vld [vmem:[#allocation6 + $0x2a4] sm:$0xf0]  ;;  %v3729_v54 = vld [vmem:[#allocation6 + $0x214] sm:$0xf]  ;;  %v3441_v21 = vld [vmem:[#allocation6 + $0x218] sm:$0xf0]  ;;  %v3448_v27 = vor.u32 %v3732_v20, %v3447_v16 }
 0x291   :  { %2322 = vmatpush.bf16.msra.mxu1 %v3544_v45  ;;  %2342 = vmatpush.bf16.msra.mxu2 %v3476_v47  ;;  %v3512_v28 = vor.u32 %v3748_v62, %v3511_v44  ;;  %v3745_v49 = vld [vmem:[#allocation6 + $0x294] sm:$0xf]  ;;  %v3505_v60 = vld [vmem:[#allocation6 + $0x298] sm:$0xf0]  ;;  %v3439_v6 = vld [vmem:[#allocation6 + $0x210] sm:$0xf]  ;;  %v3444_v31 = vor.u32 %v3729_v54, %v3441_v21 }
 0x292   :  { %2361 = vmatpush.bf16.msra.mxu3 %v3540_v38  ;;  %2304 = vmatpush.bf16.msra.mxu0 %v3472_v37  ;;  %v3730_v30 = vld [vmem:[#allocation6 + $0x214] sm:$0xf0]  ;;  %v3503_v45 = vld [vmem:[#allocation6 + $0x290] sm:$0xf]  ;;  %v3287_v42 = vld [vmem:[#allocation2 + $0x8] sm:$0xf0]  ;;  %v3508_v32 = vor.u32 %v3745_v49, %v3505_v60 }
 0x293   :  { %v3746_v36 = vld [vmem:[#allocation6 + $0x294] sm:$0xf0]  ;;  %v3285_v17 = vld [vmem:[#allocation2] sm:$0xf]  ;;  %v3727_v22 = vld [vmem:[#allocation6 + $0x204] sm:$0xf]  ;;  %v3440_v38 = vor.u32 %v3730_v30, %v3439_v6 }
 0x294   :  { %v3660_v14 = vld [vmem:[#allocation2 + $0x4] sm:$0xf0]  ;;  %v3433_v47 = vld [vmem:[#allocation6 + $0x208] sm:$0xf0]  ;;  %v3504_v53 = vor.u32 %v3746_v36, %v3503_v45  ;;  %v3743_v19 = vld [vmem:[#allocation6 + $0x284] sm:$0xf] }
 0x295   :  { %2323 = vmatpush.bf16.msra.mxu1 %v3536_v1  ;;  %2343 = vmatpush.bf16.msra.mxu2 %v3468_v51  ;;  %v3497_v57 = vld [vmem:[#allocation6 + $0x288] sm:$0xf0]  ;;  %v3431_v58 = vld [vmem:[#allocation6 + $0x200] sm:$0xf]  ;;  %v3728_v59 = vld [vmem:[#allocation6 + $0x204] sm:$0xf0]  ;;  %v3286_v1 = vor.u32 %v3660_v14, %v3285_v17  ;;  %v3436_v24 = vor.u32 %v3727_v22, %v3433_v47 }
 0x296   :  { %2362 = vmatpush.bf16.msra.mxu3 %v3532_v18  ;;  %2305 = vmatpush.bf16.msra.mxu0 %v3464_v33  ;;  %v3495_v48 = vld [vmem:[#allocation6 + $0x280] sm:$0xf]  ;;  %v3744_v37 = vld [vmem:[#allocation6 + $0x284] sm:$0xf0]  ;;  %v3659_v56 = vld [vmem:[#allocation2 + $0x4] sm:$0xf]  ;;  %v3500_v13 = vor.u32 %v3743_v19, %v3497_v57  ;;  %v3432_v61 = vor.u32 %v3728_v59, %v3431_v58 }
 0x297   :  { %1752 = vmatmul.bf16.gmra.mxu0 %v1573_v3  ;;  %1771 = vmatmul.bf16.gmra.mxu1 %v1574_v0  ;;  %v3290_v2 = vor.u32 %v3659_v56, %v3287_v42  ;;  %v3496_v25 = vor.u32 %v3744_v37, %v3495_v48  ;;  %v3662_v41 = vld [vmem:[#allocation2 + $0x1c] sm:$0xf0]  ;;  %v3295_v52 = vld [vmem:[#allocation2 + $0x20] sm:$0xf0]  ;;  %v2070_v33 = vld [vmem:[#allocation2 + $0x10] sm:$0x33] }
 0x298   :  { %1790 = vmatmul.bf16.gmra.mxu2 %v1573_v3  ;;  %1809 = vmatmul.bf16.gmra.mxu3 %v1574_v0  ;;  %v3293_v3 = vld [vmem:[#allocation2 + $0x18] sm:$0xf]  ;;  %v3661_v0 = vld [vmem:[#allocation2 + $0x1c] sm:$0xf]  ;;  %v2069_v34 = vld [vmem:[#allocation2] sm:$0xcc] }
 0x299   :  { %2324 = vmatpush.bf16.msra.mxu1 %v3528_v40  ;;  %2344 = vmatpush.bf16.msra.mxu2 %v3460_v43  ;;  %v3294_v51 = vor.u32 %v3662_v41, %v3293_v3  ;;  %v3298_v18 = vor.u32 %v3661_v0, %v3295_v52  ;;  %v2082_v40 = vrot.slane %v4466_v50, 6  ;;  %v2085_v63 = vrot.slane %v2070_v33, 6  ;;  %v2071_v12 = vld [vmem:[#allocation2 + $0x18] sm:$0xcc] }
 0x29a   :  { %2363 = vmatpush.bf16.msra.mxu3 %v3524_v9  ;;  %2306 = vmatpush.bf16.msra.mxu0 %v3456_v29  ;;  %v3427_v26 = vrot.slane %v2069_v34, 10  ;;  %v2089_v39 = vrot.slane %v4470_v5, 6  ;;  %v3428_v16 = vrot.slane %v2071_v12, 10  ;;  %v2495_v34 = vld [vmem:[%s4769_s4 + $0x70] sm:$0xff] }
 0x29b   :  { %v2084_v43 = vrot.slane %v2082_v40, 4  ;;  %v2746_v12 = vld [vmem:[%s4768_s3 + $0x3] ss:$8 sm:$0x3] }
 0x29c   :  { %v2083_v8 = vsel %vm4496_vm8, %v3427_v26, %v2082_v40  ;;  %v2091_v20 = vrot.slane %v2089_v39, 4  ;;  %v2496_v40 = vld [vmem:[%s4769_s4 + $0x78] sm:$0xff] }
 0x29d   :  { %2325 = vmatpush.bf16.msra.mxu1 %v3520_v11  ;;  %2345 = vmatpush.bf16.msra.mxu2 %v3452_v4  ;;  %v2086_v23 = vsel %vm4496_vm8, %v2084_v43, %v2085_v63  ;;  %v2126_v55 = vunpack.c.l.b16 %v2083_v8  ;;  %v2127_v50 = vunpack.c.h.b16 %v2083_v8  ;;  %v2072_v11 = vld [vmem:[#allocation2 + $0x28] sm:$0x33]  ;;  %v2090_v4 = vsel %vm4496_vm8, %v3428_v16, %v2089_v39  ;;  %v2512_v43 = vld [vmem:[%s4769_s4 + $0xf8] sm:$0xff]  ;;  %v2494_v8 = vld [vmem:[%s4769_s4 + $0x68] sm:$0xff] }
 0x29e   :  { %2364 = vmatpush.bf16.msra.mxu3 %v3516_v46  ;;  %2307 = vmatpush.bf16.msra.mxu0 %v3448_v27  ;;  %v2128_v9 = vunpack.c.l.b16 %v2086_v23  ;;  %v2129_v29 = vunpack.c.h.b16 %v2086_v23  ;;  %v2092_v15 = vrot.slane %v2072_v11, 6  ;;  %v2130_v54 = vunpack.c.l.b16 %v2090_v4  ;;  %v2511_v11 = vld [vmem:[%s4769_s4 + $0xf0] sm:$0xff]  ;;  %v2492_v39 = vld [vmem:[%s4769_s4 + $0x58] sm:$0xff] }
 0x29f   :  { %v2131_v21 = vunpack.c.h.b16 %v2090_v4 }
 0x2a0   :  { %v2134_v10 = vpack.c.b16 %v2128_v9, %v2126_v55  ;;  %v2135_v35 = vpack.c.b16 %v2129_v29, %v2127_v50  ;;  %v2093_v44 = vsel %vm4496_vm8, %v2091_v20, %v2092_v15  ;;  %v2510_v20 = vld [vmem:[%s4769_s4 + $0xe8] sm:$0xff] }
 0x2a1   :  { %2326 = vmatpush.bf16.msra.mxu1 %v3512_v28  ;;  %2346 = vmatpush.bf16.msra.mxu2 %v3444_v31  ;;  %v2132_v46 = vunpack.c.l.b16 %v2093_v44  ;;  %v2133_v62 = vunpack.c.h.b16 %v2093_v44 }
 0x2a2   :  { %2365 = vmatpush.bf16.msra.mxu3 %v3508_v32  ;;  %2308 = vmatpush.bf16.msra.mxu0 %v3440_v38 }
 0x2a3   :  { %v2136_v27 = vpack.c.b16 %v2132_v46, %v2130_v54  ;;  %v2137_v28 = vpack.c.b16 %v2133_v62, %v2131_v21  ;;  %v2491_v62 = vld [vmem:[%s4769_s4 + $0x50] sm:$0xff]  ;;  %v2509_v54 = vld [vmem:[%s4769_s4 + $0xe0] sm:$0xff] }
 0x2a5   :  { %2327 = vmatpush.bf16.msra.mxu1 %v3504_v53  ;;  %2347 = vmatpush.bf16.msra.mxu2 %v3436_v24 }
 0x2a6   :  { %2366 = vmatpush.bf16.msra.mxu3 %v3500_v13  ;;  %2309 = vmatpush.bf16.msra.mxu0 %v3432_v61 }
 0x2a7   :  { %2001 = vmatmul.bf16.vlgmr.msrb.gmra.mxu0 %v3286_v1  ;;  %2020 = vmatmul.bf16.vlgmr.msrb.gmra.mxu1 %v3290_v2 }
 0x2a8   :  { %2039 = vmatmul.bf16.vlgmr.msrb.gmra.mxu2 %v3286_v1  ;;  %2058 = vmatmul.bf16.vlgmr.msrb.gmra.mxu3 %v3290_v2 }
 0x2a9   :  { %2328 = vmatpush.bf16.msra.mxu1 %v3496_v25 }
 0x2aa   :  { %2513 = vmatpush.msrb.mxu0 %v2496_v40 }
 0x2ac   :  { %2514 = vmatpush.msrb.mxu0 %v2495_v34 }
 0x2ad   :  { %2533 = vmatpush.msrb.mxu1 %v2512_v43 }
 0x2ae   :  { %2515 = vmatpush.msrb.mxu0 %v2494_v8  ;;  %v2504_v8 = vld [vmem:[%s4769_s4 + $0xb8] sm:$0xff] }
 0x2af   :  { %2534 = vmatpush.msrb.mxu1 %v2511_v11 }
 0x2b1   :  { %2535 = vmatpush.msrb.mxu1 %v2510_v20  ;;  %v2556_v20 = vld [vmem:[%s4770_s5 + $0x18] sm:$0xff] }
 0x2b2   :  { %2594 = vmatpush.msrb.mxu3 %v2556_v20 }
 0x2b3   :  { %2536 = vmatpush.msrb.mxu1 %v2509_v54  ;;  %v2553_v54 = vld [vmem:[%s4770_s5] sm:$0xff] }
 0x2b7   :  { %2006 = vmatmul.bf16.gmra.mxu0 %v3294_v51  ;;  %2025 = vmatmul.bf16.gmra.mxu1 %v3298_v18 }
 0x2b8   :  { %2044 = vmatmul.bf16.gmra.mxu2 %v3294_v51  ;;  %2063 = vmatmul.bf16.gmra.mxu3 %v3298_v18 }
 0x2c7   :  { %2310 = vmatmul.bf16.vlgmr.msra.gmra.mxu0 %v2134_v10  ;;  %2329 = vmatmul.bf16.vlgmr.msra.gmra.mxu1 %v2135_v35 }
 0x2c8   :  { %2348 = vmatmul.bf16.vlgmr.msra.gmra.mxu2 %v2134_v10  ;;  %2367 = vmatmul.bf16.vlgmr.msra.gmra.mxu3 %v2135_v35  ;;  %v2493_v35 = vld [vmem:[%s4769_s4 + $0x60] sm:$0xff] }
 0x2c9   :  { %2516 = vmatpush.msrb.mxu0 %v2493_v35  ;;  %v2484_v35 = vld [vmem:[%s4769_s4 + $0x18] sm:$0xff] }
 0x2cb   :  { %2517 = vmatpush.msrb.mxu0 %v2492_v39 }
 0x2cd   :  { %2518 = vmatpush.msrb.mxu0 %v2491_v62  ;;  %v2554_v62 = vld [vmem:[%s4770_s5 + $0x8] sm:$0xff] }
 0x2ce   :  { %2595 = vmatpush.msrb.mxu3 %v2554_v62 }
 0x2d7   :  { %2315 = vmatmul.bf16.gmra.mxu0 %v2136_v27  ;;  %2334 = vmatmul.bf16.gmra.mxu1 %v2137_v28 }
 0x2d8   :  { %2353 = vmatmul.bf16.gmra.mxu2 %v2136_v27  ;;  %2372 = vmatmul.bf16.gmra.mxu3 %v2137_v28  ;;  %v4570_v27 = vperm.slane %v2746_v12, 0 }
 0x304   :  { %v1748_v5 = vpop.f32.mrf.mxu0  ;;  %v1767_v49 = vpop.f32.mrf.mxu1 }
 0x305   :  { %v1768_v60 = vadd.f32 %v1767_v49, %v1748_v5 }
 0x30b   :  { %v1786_v6 = vpop.f32.mrf.mxu2  ;;  %v1805_v30 = vpop.f32.mrf.mxu3 }
 0x30c   :  { %v4509_v45 = vadd.f32 %v1805_v30, %v1786_v6  ;;  %v1750_v36 = vpop.f32.mrf.mxu0  ;;  %v1769_v14 = vpop.f32.mrf.mxu1  ;;  %v2490_v30 = vld [vmem:[%s4769_s4 + $0x48] sm:$0xff] }
 0x30d   :  { %v1770_v17 = vadd.f32 %v1769_v14, %v1750_v36  ;;  %v2508_v36 = vld [vmem:[%s4769_s4 + $0xd8] sm:$0xff]  ;;  %v2489_v14 = vld [vmem:[%s4769_s4 + $0x40] sm:$0xff]  ;;  %2519 = vmatpush.msrb.mxu0 %v2490_v30 }
 0x30e   :  { %2537 = vmatpush.msrb.mxu1 %v2508_v36 }
 0x30f   :  { %2520 = vmatpush.msrb.mxu0 %v2489_v14 }
 0x313   :  { %v1788_v42 = vpop.f32.mrf.mxu2  ;;  %v1807_v31 = vpop.f32.mrf.mxu3 }
 0x314   :  { %v1808_v32 = vadd.f32 %v1807_v31, %v1788_v42  ;;  %v1753_v22 = vpop.f32.mrf.mxu0  ;;  %v1772_v47 = vpop.f32.mrf.mxu1  ;;  %v2507_v31 = vld [vmem:[%s4769_s4 + $0xd0] sm:$0xff] }
 0x315   :  { %v4511_v38 = vadd.f32 %v1772_v47, %v1753_v22  ;;  %2538 = vmatpush.msrb.mxu1 %v2507_v31 }
 0x31b   :  { %v1791_v53 = vpop.f32.mrf.mxu2  ;;  %v1810_v19 = vpop.f32.mrf.mxu3 }
 0x31c   :  { %v4513_v57 = vadd.f32 %v1810_v19, %v1791_v53  ;;  %v4515_v58 = vpop.f32.mrf.mxu0  ;;  %v4517_v59 = vpop.f32.mrf.mxu1 }
 0x323   :  { %v4519_v48 = vpop.f32.mrf.mxu2  ;;  %v4521_v37 = vpop.f32.mrf.mxu3 }
 0x324   :  { %v2002_v1 = vpop.f32.mrf.mxu0  ;;  %v2021_v56 = vpop.f32.mrf.mxu1 }
 0x325   :  { %v2003_v9 = vadd.f32 %v2002_v1, %v1768_v60 }
 0x327   :  { %v2022_v44 = vadd.f32 %v2021_v56, %v2003_v9  ;;  %v2488_v56 = vld [vmem:[%s4769_s4 + $0x38] sm:$0xff] }
 0x328   :  { %2521 = vmatpush.msrb.mxu0 %v2488_v56 }
 0x32b   :  { %v2040_v2 = vpop.f32.mrf.mxu2  ;;  %v2059_v24 = vpop.f32.mrf.mxu3 }
 0x32c   :  { %v2004_v13 = vpop.f32.mrf.mxu0  ;;  %v2023_v61 = vpop.f32.mrf.mxu1  ;;  %v2041_v5 = vadd.f32 %v2040_v2, %v4509_v45  ;;  %v2506_v2 = vld [vmem:[%s4769_s4 + $0xc8] sm:$0xff] }
 0x32d   :  { %v2005_v29 = vadd.f32 %v2004_v13, %v1770_v17  ;;  %2539 = vmatpush.msrb.mxu1 %v2506_v2 }
 0x32f   :  { %v2024_v4 = vadd.f32 %v2023_v61, %v2005_v29  ;;  %v4600_v61 = vperm.slane %v2746_v12, 1  ;;  %v2485_v29 = vld [vmem:[%s4769_s4 + $0x20] sm:$0xff] }
 0x333   :  { %v2042_v25 = vpop.f32.mrf.mxu2  ;;  %v2061_v41 = vpop.f32.mrf.mxu3 }
 0x334   :  { %v2007_v52 = vpop.f32.mrf.mxu0  ;;  %v4523_v3 = vpop.f32.mrf.mxu1  ;;  %v2043_v49 = vadd.f32 %v2042_v25, %v1808_v32  ;;  %v2060_v32 = vadd.f32 %v2059_v24, %v2041_v5  ;;  %v2487_v25 = vld [vmem:[%s4769_s4 + $0x30] sm:$0xff] }
 0x335   :  { %v2008_v47 = vadd.f32 %v2007_v52, %v4511_v38  ;;  %v1775_v52 = vadd.f32 %v4517_v59, %v4515_v58  ;;  %2522 = vmatpush.msrb.mxu0 %v2487_v25  ;;  %v2483_v5 = vld [vmem:[%s4769_s4 + $0x10] sm:$0xff]  ;;  %v2498_v25 = vld [vmem:[%s4769_s4 + $0x88] sm:$0xff] }
 0x336   :  { %v2062_v22 = vadd.f32 %v2061_v41, %v2043_v49  ;;  %v2505_v41 = vld [vmem:[%s4769_s4 + $0xc0] sm:$0xff] }
 0x337   :  { %v2027_v43 = vadd.f32 %v4523_v3, %v2008_v47  ;;  %2540 = vmatpush.msrb.mxu1 %v2505_v41  ;;  %v2501_v49 = vld [vmem:[%s4769_s4 + $0xa0] sm:$0xff]  ;;  %v2499_v47 = vld [vmem:[%s4769_s4 + $0x90] sm:$0xff] }
 0x339   :  { %2541 = vmatpush.msrb.mxu1 %v2504_v8 }
 0x33b   :  { %v4525_v0 = vpop.f32.mrf.mxu2  ;;  %v4527_v51 = vpop.f32.mrf.mxu3 }
 0x33c   :  { %v4529_v18 = vpop.f32.mrf.mxu0  ;;  %v4531_v33 = vpop.f32.mrf.mxu1  ;;  %v2046_v11 = vadd.f32 %v4525_v0, %v4513_v57 }
 0x33d   :  { %v2010_v58 = vadd.f32 %v4529_v18, %v1775_v52 }
 0x343   :  { %v4539_v63 = vpop.f32.mrf.mxu2  ;;  %v4541_v26 = vpop.f32.mrf.mxu3 }
 0x344   :  { %v2311_v7 = vpop.f32.mrf.mxu0  ;;  %v2330_v23 = vpop.f32.mrf.mxu1 }
 0x345   :  { %v2331_v55 = vadd.f32 %v2330_v23, %v2311_v7  ;;  %v2486_v23 = vld [vmem:[%s4769_s4 + $0x28] sm:$0xff] }
 0x346   :  { %2523 = vmatpush.msrb.mxu0 %v2486_v23 }
 0x347   :  { %v2378_v21 = vadd.f32 %v2331_v55, %v2022_v44  ;;  %v2503_v55 = vld [vmem:[%s4769_s4 + $0xb0] sm:$0xff] }
 0x348   :  { %v2555_v44 = vld [vmem:[%s4770_s5 + $0x10] sm:$0xff]  ;;  %2524 = vmatpush.msrb.mxu0 %v2485_v29  ;;  %2542 = vmatpush.msrb.mxu1 %v2503_v55 }
 0x349   :  { %v4586_v45 = vadd.f32 %v4570_v27, %v2378_v21  ;;  %v1813_v21 = vadd.f32 %v4521_v37, %v4519_v48  ;;  %2574 = vmatpush.msrb.mxu2 %v2555_v44  ;;  %v2065_v37 = vadd.f32 %v4527_v51, %v2046_v11 }
 0x34a   :  { %2525 = vmatpush.msrb.mxu0 %v2484_v35 }
 0x34b   :  { %v2349_v50 = vpop.f32.mrf.mxu2  ;;  %v2368_v10 = vpop.f32.mrf.mxu3  ;;  %v2427_v40 = vmul.f32 %v4586_v45, %v4586_v45  ;;  %v2048_v36 = vadd.f32 %v4539_v63, %v1813_v21  ;;  %2575 = vmatpush.msrb.mxu2 %v2553_v54  ;;  %v2481_v63 = vld [vmem:[%s4769_s4] sm:$0xff] }
 0x34c   :  { %v2313_v15 = vpop.f32.mrf.mxu0  ;;  %v2332_v16 = vpop.f32.mrf.mxu1  ;;  %v2369_v6 = vadd.f32 %v2368_v10, %v2349_v50  ;;  %2526 = vmatpush.msrb.mxu0 %v2483_v5 }
 0x34d   :  { %v2333_v46 = vadd.f32 %v2332_v16, %v2313_v15  ;;  %v2502_v16 = vld [vmem:[%s4769_s4 + $0xa8] sm:$0xff] }
 0x34e   :  { %v2379_v24 = vadd.f32 %v2369_v6, %v2060_v32  ;;  %2543 = vmatpush.msrb.mxu1 %v2502_v16 }
 0x34f   :  { %v2380_v28 = vadd.f32 %v2333_v46, %v2024_v4  ;;  %v2029_v4 = vadd.f32 %v4531_v33, %v2010_v58 }
 0x350   :  { %v4626_v3 = vadd.f32 %v4600_v61, %v2379_v24  ;;  %2544 = vmatpush.msrb.mxu1 %v2501_v49 }
 0x351   :  { %v4574_v60 = vadd.f32 %v4570_v27, %v2380_v28 }
 0x352   :  { %v2428_v28 = vmul.f32 %v4626_v3, %v4626_v3 }
 0x353   :  { %v2351_v17 = vpop.f32.mrf.mxu2  ;;  %v2370_v42 = vpop.f32.mrf.mxu3  ;;  %v2429_v13 = vmul.f32 %v4574_v60, %v4574_v60  ;;  %v2399_v59 = vadd.f32 %v4574_v60, %v4586_v45 }
 0x354   :  { %v2371_v53 = vadd.f32 %v2370_v42, %v2351_v17  ;;  %v2316_v19 = vpop.f32.mrf.mxu0  ;;  %v2335_v1 = vpop.f32.mrf.mxu1  ;;  %v2482_v17 = vld [vmem:[%s4769_s4 + $0x8] sm:$0xff]  ;;  %v2500_v42 = vld [vmem:[%s4769_s4 + $0x98] sm:$0xff] }
 0x355   :  { %v2336_v34 = vadd.f32 %v2335_v1, %v2316_v19  ;;  %v2435_v9 = vadd.f32 %v2429_v13, %v2427_v40  ;;  %v2400_v57 = vrot.slane %v2399_v59, 4  ;;  %2527 = vmatpush.msrb.mxu0 %v2482_v17  ;;  %2545 = vmatpush.msrb.mxu1 %v2500_v42  ;;  %v2067_v13 = vadd.f32 %v4541_v26, %v2048_v36  ;;  %v2497_v26 = vld [vmem:[%s4769_s4 + $0x80] sm:$0xff] }
 0x356   :  { %v2381_v38 = vadd.f32 %v2371_v53, %v2062_v22 }
 0x357   :  { %v2382_v50 = vadd.f32 %v2336_v34, %v2027_v43  ;;  %v2436_v0 = vrot.slane %v2435_v9, 4  ;;  %v2401_v31 = vadd.f32 %v2400_v57, %v2399_v59  ;;  %2528 = vmatpush.msrb.mxu0 %v2481_v63  ;;  %2546 = vmatpush.msrb.mxu1 %v2499_v47 }
 0x358   :  { %v4614_v7 = vadd.f32 %v4600_v61, %v2381_v38 }
 0x359   :  { %v4670_v30 = vadd.f32 %v4570_v27, %v2382_v50  ;;  %v2437_v32 = vadd.f32 %v2436_v0, %v2435_v9  ;;  %v2402_v41 = vrot.slane %v2401_v31, 2  ;;  %2547 = vmatpush.msrb.mxu1 %v2498_v25 }
 0x35a   :  { %v2430_v39 = vmul.f32 %v4614_v7, %v4614_v7  ;;  %v2406_v6 = vadd.f32 %v4614_v7, %v4626_v3 }
 0x35b   :  { %v2354_v10 = vpop.f32.mrf.mxu2  ;;  %v2373_v18 = vpop.f32.mrf.mxu3  ;;  %v2431_v19 = vmul.f32 %v4670_v30, %v4670_v30  ;;  %v2438_v52 = vrot.slane %v2437_v32, 2  ;;  %v2403_v55 = vadd.f32 %v2402_v41, %v2401_v31  ;;  %2548 = vmatpush.msrb.mxu1 %v2497_v26 }
 0x35c   :  { %v2318_v12 = vpop.f32.mrf.mxu0  ;;  %v2337_v15 = vpop.f32.mrf.mxu1  ;;  %v2374_v33 = vadd.f32 %v2373_v18, %v2354_v10  ;;  %v2442_v14 = vadd.f32 %v2430_v39, %v2428_v28  ;;  %v2407_v53 = vrot.slane %v2406_v6, 4 }
 0x35d   :  { %v2338_v46 = vadd.f32 %v2337_v15, %v2318_v12  ;;  %v2439_v18 = vadd.f32 %v2438_v52, %v2437_v32 }
 0x35e   :  { %v2383_v51 = vadd.f32 %v2374_v33, %v2065_v37  ;;  %v2443_v24 = vrot.slane %v2442_v14, 4  ;;  %v2408_v8 = vadd.f32 %v2407_v53, %v2406_v6 }
 0x35f   :  { %v2384_v48 = vadd.f32 %v2338_v46, %v2029_v4  ;;  %v2404_v4 = vrot.slane %v2403_v55, 1  ;;  %v2440_v0 = vrot.slane %v2439_v18, 1 }
 0x360   :  { %v4700_v43 = vadd.f32 %v4600_v61, %v2383_v51  ;;  %v2444_v9 = vadd.f32 %v2443_v24, %v2442_v14  ;;  %v2409_v12 = vrot.slane %v2408_v8, 2 }
 0x361   :  { %v4681_v22 = vadd.f32 %v4570_v27, %v2384_v48  ;;  %v2405_v48 = vadd.f32 %v2404_v4, %v2403_v55  ;;  %v2441_v37 = vadd.f32 %v2440_v0, %v2439_v18 }
 0x362   :  { %v2432_v35 = vmul.f32 %v4700_v43, %v4700_v43  ;;  %v2445_v20 = vrot.slane %v2444_v9, 2  ;;  %v2410_v21 = vadd.f32 %v2409_v12, %v2408_v8 }
 0x363   :  { %v2413_v1 = vadd.f32 %v4681_v22, %v4670_v30  ;;  %v2433_v27 = vmul.f32 %v4681_v22, %v4681_v22  ;;  %v2356_v56 = vpop.f32.mrf.mxu2  ;;  %v2375_v2 = vpop.f32.mrf.mxu3 }
 0x364   :  { %v2376_v38 = vadd.f32 %v2375_v2, %v2356_v56  ;;  %v2446_v6 = vadd.f32 %v2445_v20, %v2444_v9  ;;  %v2411_v32 = vrot.slane %v2410_v21, 1  ;;  %v2747_v20 = vld [vmem:[%s4768_s3 + $0x4] ss:$8 sm:$0x3] }
 0x365   :  { %v2414_v40 = vrot.slane %v2413_v1, 4  ;;  %v2449_v34 = vadd.f32 %v2433_v27, %v2431_v19 }
 0x366   :  { %v2385_v23 = vadd.f32 %v2376_v38, %v2067_v13  ;;  %v2447_v47 = vrot.slane %v2446_v6, 1  ;;  %v2412_v27 = vadd.f32 %v2411_v32, %v2410_v21 }
 0x367   :  { %v2415_v58 = vadd.f32 %v2414_v40, %v2413_v1  ;;  %v2450_v59 = vrot.slane %v2449_v34, 4 }
 0x368   :  { %v4706_v29 = vadd.f32 %v4600_v61, %v2385_v23  ;;  %v2448_v56 = vadd.f32 %v2447_v47, %v2446_v6 }
 0x369   :  { %v2416_v50 = vrot.slane %v2415_v58, 2  ;;  %v2451_v10 = vadd.f32 %v2450_v59, %v2449_v34 }
 0x36a   :  { %v2420_v11 = vadd.f32 %v4706_v29, %v4700_v43  ;;  %v2434_v39 = vmul.f32 %v4706_v29, %v4706_v29 }
 0x36b   :  { %v2417_v15 = vadd.f32 %v2416_v50, %v2415_v58  ;;  %v2452_v16 = vrot.slane %v2451_v10, 2 }
 0x36c   :  { %v2421_v61 = vrot.slane %v2420_v11, 4  ;;  %v2456_v44 = vadd.f32 %v2434_v39, %v2432_v35 }
 0x36d   :  { %v2418_v57 = vrot.slane %v2417_v15, 1  ;;  %v2453_v46 = vadd.f32 %v2452_v16, %v2451_v10 }
 0x36e   :  { %v2422_v62 = vadd.f32 %v2421_v61, %v2420_v11  ;;  %v2457_v54 = vrot.slane %v2456_v44, 4 }
 0x36f   :  { %v2419_v28 = vadd.f32 %v2418_v57, %v2417_v15  ;;  %v2454_v33 = vrot.slane %v2453_v46, 1  ;;  %v2635_v57 = vperm.slane %v2747_v20, 0 }
 0x370   :  { %v2423_v5 = vrot.slane %v2422_v62, 2  ;;  %v2458_v49 = vadd.f32 %v2457_v54, %v2456_v44 }
 0x371   :  { %v2455_v36 = vadd.f32 %v2454_v33, %v2453_v46  ;;  %v2467_v42 = vsel %vm1190_vm11, %v2419_v28, %v2405_v48  ;;  %v2748_v28 = vld [vmem:[%s4768_s3 + $0x5] ss:$8 sm:$0x3] }
 0x372   :  { %v2424_v14 = vadd.f32 %v2423_v5, %v2422_v62  ;;  %v2459_v17 = vrot.slane %v2458_v49, 2  ;;  %v2636_v62 = vperm.slane %v2747_v20, 1  ;;  %v3781_v20 = vld [vmem:[%s4765_s0 + $0x30] sm:$0xff] }
 0x373   :  { %v2475_v31 = vsel %vm1199_vm12, %v2455_v36, %v2441_v37  ;;  %v2651_v37 = vperm.slane %v2748_v28, 1 }
 0x374   :  { %v2479_v51 = vsel %vm1204_vm13, %v2467_v42, %v2475_v31  ;;  %v2425_v63 = vrot.slane %v2424_v14, 1  ;;  %v2460_v53 = vadd.f32 %v2459_v17, %v2458_v49  ;;  %v2650_v17 = vperm.slane %v2748_v28, 0 }
 0x375   :  { %2529 = vmatmul.f32.vlgmr.msrb.gmra.mxu0 %v2479_v51 }
 0x376   :  { %v2426_v19 = vadd.f32 %v2425_v63, %v2424_v14  ;;  %v2461_v1 = vrot.slane %v2460_v53, 1 }
 0x378   :  { %v2462_v2 = vadd.f32 %v2461_v1, %v2460_v53  ;;  %v2468_v13 = vsel %vm1190_vm11, %v2426_v19, %v2412_v27 }
 0x37a   :  { %v2476_v24 = vsel %vm1199_vm12, %v2462_v2, %v2448_v56 }
 0x37b   :  { %v2480_v38 = vsel %vm1204_vm13, %v2468_v13, %v2476_v24 }
 0x37c   :  { %2549 = vmatmul.f32.vlgmr.msrb.gmra.mxu1 %v2480_v38 }
 0x3f2   :  { %v2530_v25 = vpop.f32.mrf.mxu0 }
 0x3f9   :  { %v2550_v41 = vpop.f32.mrf.mxu1 }
 0x3fa   :  { %v2551_v52 = vadd.f32 %v2550_v41, %v2530_v25 }
 0x3fc   :  { %3557 = vmatmul.msk.f32.vlgmr.msrb.gmra.mxu2 %vm1283_vm14, %v2551_v52  ;;  %3558 = vmatmul.msk.f32.vlgmr.msrb.gmra.mxu3 %vm1283_vm14, %v2551_v52 }
 0x47f   :  { %v2577_v40 = vpop.f32.mrf.mxu2  ;;  %v2597_v34 = vpop.f32.mrf.mxu3 }
 0x480   :  { %v2600_v23 = vmul.f32 %v2577_v40, %v2577_v40  ;;  %v2601_v26 = vmul.f32 %v2597_v34, %v2597_v34 }
 0x482   :  { %v2604_v8 = vrot.slane %v2600_v23, 6  ;;  %v2605_v58 = vrot.slane %v2601_v26, 6 }
 0x484   :  { %v2608_v59 = vsub.f32 %v2577_v40, %v2604_v8  ;;  %v2609_v9 = vsub.f32 %v2597_v34, %v2605_v58 }
 0x486   :  { %v2610_v55 = vmax.f32 %v2608_v59, 0.0  ;;  %v2611_v50 = vmax.f32 %v2609_v9, 0.0 }
 0x488   :  { %v2612_v10 = vadd.f32 1e-05, %v2610_v55  ;;  %v2613_v18 = vadd.f32 1e-05, %v2611_v50 }
 0x48a   :  { %3771 = vrsqrt.f32 %v2612_v10  ;;  %vm2620_vm12 = vweird.f32 %v2612_v10  ;;  %vm2630_vm14 = vweird.f32 %v2613_v18 }
 0x48b   :  { %3773 = vrsqrt.f32 %v2613_v18 }
 0x490   :  { %v3772_v35 = vpop.eup %3771 }
 0x491   :  { %v3774_v11 = vpop.eup %3773  ;;  %v2615_v39 = vmul.f32 %v3772_v35, %v2612_v10  ;;  %vm2621_vm9 = vweird.f32 %v3772_v35  ;;  %v3777_v10 = vld [vmem:[%s4765_s0 + $0x10] sm:$0xff] }
 0x492   :  { %v2625_v12 = vmul.f32 %v3774_v11, %v2613_v18  ;;  %vm2631_vm10 = vweird.f32 %v3774_v11  ;;  %vm2622_vm13 = vmor %vm2620_vm12, %vm2621_vm9 }
 0x493   :  { %v2616_v15 = vmul.f32 %v3772_v35, %v2615_v39  ;;  %vm2632_vm15 = vmor %vm2630_vm14, %vm2631_vm10  ;;  %v3779_v39 = vld [vmem:[%s4765_s0 + $0x20] sm:$0xff] }
 0x494   :  { %v2626_v16 = vmul.f32 %v3774_v11, %v2625_v12 }
 0x495   :  { %v2617_v61 = vmul.f32 0.5, %v2616_v15  ;;  %v3780_v15 = vld [vmem:[%s4765_s0 + $0x28] sm:$0xff] }
 0x496   :  { %v2627_v44 = vmul.f32 0.5, %v2626_v16 }
 0x497   :  { %v2618_v4 = vsub.f32 1.5, %v2617_v61 }
 0x498   :  { %v2628_v0 = vsub.f32 1.5, %v2627_v44 }
 0x499   :  { %v2619_v46 = vmul.f32 %v3772_v35, %v2618_v4 }
 0x49a   :  { %v2629_v54 = vmul.f32 %v3774_v11, %v2628_v0  ;;  %v3782_v0 = vld [vmem:[%s4765_s0 + $0x38] sm:$0xff] }
 0x49b   :  { %v2623_v21 = vsel %vm2622_vm13, %v3772_v35, %v2619_v46  ;;  %v3778_v35 = vld [vmem:[%s4765_s0 + $0x18] sm:$0xff] }
 0x49c   :  { %v2639_v33 = vmul.f32 %v2635_v57, %v2623_v21  ;;  %v2633_v5 = vsel %vm2632_vm15, %v3774_v11, %v2629_v54 }
 0x49d   :  { %v2640_v49 = vmul.f32 %v2636_v62, %v2633_v5 }
 0x49e   :  { %v2643_v6 = vrot.slane %v2639_v33, 2  ;;  %2656 = vst [vmem:[#allocation1] sm:$0xff] %v2639_v33 }
 0x49f   :  { %v2644_v48 = vrot.slane %v2640_v49, 2  ;;  %2657 = vst [vmem:[#allocation1 + $0x9] sm:$0xff] %v2640_v49 }
 0x4a0   :  { %v2647_v14 = vmul.f32 %v2643_v6, %v2577_v40 }
 0x4a1   :  { %v2648_v36 = vmul.f32 %v2644_v48, %v2597_v34 }
 0x4a2   :  { %v2654_v32 = vsub.f32 %v2650_v17, %v2647_v14 }
 0x4a3   :  { %v2655_v42 = vsub.f32 %v2651_v37, %v2648_v36 }
 0x4a5   :  { %v2680_v31 = vrot.slane %v2655_v42, 7 }
 0x4a6   :  { %v2659_v51 = vld [vmem:[#allocation1 + $0x2] ss:$9 sm:$0xff] }
 0x4a7   :  { %v2661_v63 = vld [vmem:[#allocation1 + $0x3] ss:$9 sm:$0xff]  ;;  %v2662_v47 = vperm.slane %v2659_v51, 0  ;;  %v2663_v53 = vperm.slane %v2659_v51, 1  ;;  %v2681_v27 = vsel %vm76_vm1, %v2654_v32, %v2680_v31  ;;  %v2682_v56 = vsel %vm1190_vm11, %v2654_v32, %v2680_v31 }
 0x4a8   :  { %v2664_v19 = vperm.slane %v2661_v63, 0  ;;  %v2665_v1 = vperm.slane %v2661_v63, 1  ;;  %v2683_v34 = vrot.slane %v2682_v56, 1  ;;  %v2684_v23 = vperm.slane %v2681_v27, 0 }
 0x4a9   :  { %v2670_v2 = vmul.f32 %v2662_v47, %v4586_v45  ;;  %v2671_v13 = vmul.f32 %v2663_v53, %v4626_v3  ;;  %v2672_v24 = vmul.f32 %v2662_v47, %v4574_v60  ;;  %v2673_v38 = vmul.f32 %v2663_v53, %v4614_v7 }
 0x4aa   :  { %v2674_v25 = vmul.f32 %v2664_v19, %v4670_v30  ;;  %v2675_v41 = vmul.f32 %v2665_v1, %v4700_v43  ;;  %v2676_v52 = vmul.f32 %v2664_v19, %v4681_v22  ;;  %v2677_v40 = vmul.f32 %v2665_v1, %v4706_v29  ;;  %v3775_v30 = vld [vmem:[%s4765_s0] sm:$0xff]  ;;  %v3776_v43 = vld [vmem:[%s4765_s0 + $0x8] sm:$0xff]  ;;  %s3867_s0 = smov 256  }
 0x4ab   :  { %v2685_v26 = vperm.slane %v2681_v27, 1  ;;  %v2686_v8 = vperm.slane %v2683_v34, 0  ;;  %v2687_v58 = vperm.slane %v2683_v34, 1  ;;  %v2692_v45 = vadd.f32 %v2684_v23, %v2670_v2 }
 0x4ac   :  { %v2694_v3 = vadd.f32 %v2684_v23, %v2672_v24 }
 0x4ad   :  { %v2693_v59 = vadd.f32 %v2685_v26, %v2671_v13  ;;  %v2695_v9 = vadd.f32 %v2685_v26, %v2673_v38  ;;  %v2696_v60 = vadd.f32 %v2686_v8, %v2674_v25  ;;  %v2697_v55 = vadd.f32 %v2687_v58, %v2675_v41 }
 0x4ae   :  { %v2698_v7 = vadd.f32 %v2686_v8, %v2676_v52  ;;  %v2699_v50 = vadd.f32 %v2687_v58, %v2677_v40  ;;  %v2700_v22 = vadd.f32 %v3775_v30, %v2692_v45  ;;  %v2702_v18 = vadd.f32 %v3777_v10, %v2694_v3 }
 0x4af   :  { %v2701_v29 = vadd.f32 %v3776_v43, %v2693_v59  ;;  %v2703_v11 = vadd.f32 %v3778_v35, %v2695_v9  ;;  %v2704_v12 = vadd.f32 %v3779_v39, %v2696_v60  ;;  %v2705_v16 = vadd.f32 %v3780_v15, %v2697_v55 }
 0x4b0   :  { %v2706_v61 = vadd.f32 %v3781_v20, %v2698_v7  ;;  %v2708_v44 = vmax.f32 %v2700_v22, 0.0  ;;  %v2710_v57 = vmax.f32 %v2702_v18, 0.0  ;;  %v2707_v46 = vadd.f32 %v3782_v0, %v2699_v50 }
 0x4b1   :  { %v2709_v4 = vmax.f32 %v2701_v29, 0.0  ;;  %v2711_v62 = vmax.f32 %v2703_v11, 0.0  ;;  %v2712_v54 = vmax.f32 %v2704_v12, 0.0  ;;  %v2713_v21 = vmax.f32 %v2705_v16, 0.0 }
 0x4b2   :  { %2716 = vst [vmem:[#allocation8] sm:$0xff] %v2708_v44  ;;  %v2714_v28 = vmax.f32 %v2706_v61, 0.0  ;;  %v2715_v33 = vmax.f32 %v2707_v46, 0.0 }
 0x4b3   :  { %2717 = vst [vmem:[#allocation8 + $0x8] sm:$0xff] %v2709_v4 }
 0x4b4   :  { %2718 = vst [vmem:[#allocation8 + $0x10] sm:$0xff] %v2710_v57 }
 0x4b5   :  { %2719 = vst [vmem:[#allocation8 + $0x18] sm:$0xff] %v2711_v62 }
 0x4b6   :  { %2720 = vst [vmem:[#allocation8 + $0x20] sm:$0xff] %v2712_v54 }
 0x4b7   :  { %2721 = vst [vmem:[#allocation8 + $0x28] sm:$0xff] %v2713_v21 }
 0x4b8   :  { %2722 = vst [vmem:[#allocation8 + $0x30] sm:$0xff] %v2714_v28 }
 0x4b9   :  { %2723 = vst [vmem:[#allocation8 + $0x38] sm:$0xff] %v2715_v33 }
 0x4ba   :  { %2736 = dma.vmem_to_hbm [thread:$0]  %s2729_s10, 1024, %s2731_s13, [#allocation5], %s3867_s0, %s3867_s0, %s3868_s14  }
 0x4bb   :  { %3859 = dma.done.wait [#allocation5], 1024  }
 0x4bc   :  { %3860 = vsyncadd [#allocation5], 4294966272 }
 0x4bd   :  { %2741 = vsyncpa [#allocation4], 1 }
 0x4be   :  { %2742 = vsyncpa [#allocation7], 1 }
 0x4bf   :  { %2743 = vsyncpa [#allocation5], 1 }

// kernel: tpu_custom_call.1
= control target key start
LH: loop header
LB: loop body
LE: loop exit
PB: predicated region body
PF: predicated region fallthrough
CT: control target
= control target key end

     0   :  { %11 = vsyncpa [#allocation4], 0  ;;  %s4765_s0 = inlined_call_operand.vmem [shape: f32[2,16,256], index: 0, kind: input, shape index: {}]   ;;  %s4766_s1 = inlined_call_operand.hbm [shape: bf16[768,256], index: 1, kind: input, shape index: {}]   ;;  %s4767_s2 = inlined_call_operand.hbm [shape: bf16[768,256], index: 2, kind: input, shape index: {}]   ;;  %s4768_s3 = inlined_call_operand.vmem [shape: f32[8,256], index: 3, kind: input, shape index: {}]   ;;  %s4769_s4 = inlined_call_operand.vmem [shape: f32[256,16], index: 4, kind: input, shape index: {}]   ;;  %s4770_s5 = inlined_call_operand.vmem [shape: f32[16,256], index: 5, kind: input, shape index: {}]   ;;  %s4771_s6 = inlined_call_operand.hbm [shape: f32[2,16,256], index: 6, kind: output, shape index: {}]  }
   0x1   :  { %12 = vsyncpa [#allocation7], 0 }
   0x2   :  { %13 = vsyncpa [#allocation5], 0  ;;  %s20_s23 = sshll.u32 %s4766_s1, 4  ;;  %s3861_s24 = smov [#allocation3]   ;;  %s21_s23 = int_to_ptr.hbm [resolvable:$true] %s20_s23 }
   0x3   :  { %s22_s25 = sshll.u32 %s3861_s24, 4  ;;  %s33_s28 = sshll.u32 %s4767_s2, 4  ;;  %s23_s25 = int_to_ptr.vmem [resolvable:$true] %s22_s25  ;;  %s34_s28 = int_to_ptr.hbm [resolvable:$true] %s33_s28 }
   0x4   :  { %s3862_s29 = smov 128   ;;  %s3863_s30 = smov 8  }
   0x5   :  { %28 = dma.hbm_to_vmem [thread:$0]  %s21_s23, 12288, %s23_s25, [#allocation4], %s3862_s29, %s3862_s29, %s3863_s30  }
   0x6   :  { %s3864_s7 = smov [#allocation6]  }
   0x7   :  { %s35_s8 = sshll.u32 %s3864_s7, 4  ;;  %s36_s8 = int_to_ptr.vmem [resolvable:$true] %s35_s8 }
   0x8   :  { %41 = dma.hbm_to_vmem [thread:$0]  %s34_s28, 12288, %s36_s8, [#allocation7], %s3862_s29, %s3862_s29, %s3863_s30  }
   0x9   :  { %3855 = dma.done.wait [#allocation4], 12288  }
   0xa   :  { %3856 = vsyncadd [#allocation4], 4294955008 }
   0xb   :  { %3857 = dma.done.wait [#allocation7], 12288  }
   0xc   :  { %3858 = vsyncadd [#allocation7], 4294955008  ;;  %vm77_vm0 = vsmask.f32 256  ;;  %vm76_vm1 = vcmask 1040384   ;;  %vm79_vm2 = vcmask 1044484  }
   0xd   :  { %vm80_vm3 = vsmask.f32 4352  ;;  %vm89_vm4 = vsmask.f32 7938  ;;  %v2807_v0 = vld [vmem:[#allocation3 + $0x170] sm:$0xf]  ;;  %vm3912_vm6 = vmand %vm76_vm1, %vm77_vm0 }
   0xe   :  { %v3610_v1 = vld [vmem:[#allocation3 + $0x174] sm:$0xf0]  ;;  %v2871_v2 = vld [vmem:[#allocation3 + $0x1f0] sm:$0xf]  ;;  %vm91_vm5 = vsmask.f32 7954  ;;  %vm3918_vm7 = vmand %vm79_vm2, %vm80_vm3 }
   0xf   :  { %v2808_v3 = vor.u32 %v3610_v1, %v2807_v0  ;;  %v3626_v4 = vld [vmem:[#allocation3 + $0x1f4] sm:$0xf0]  ;;  %v3609_v5 = vld [vmem:[#allocation3 + $0x174] sm:$0xf]  ;;  %v2809_v6 = vld [vmem:[#allocation3 + $0x178] sm:$0xf0] }
  0x10   :  { %v2872_v7 = vor.u32 %v3626_v4, %v2871_v2  ;;  %v2812_v8 = vor.u32 %v3609_v5, %v2809_v6  ;;  %v3625_v9 = vld [vmem:[#allocation3 + $0x1f4] sm:$0xf]  ;;  %v2873_v10 = vld [vmem:[#allocation3 + $0x1f8] sm:$0xf0]  ;;  %v2799_v11 = vld [vmem:[#allocation3 + $0x160] sm:$0xf] }
  0x11   :  { %462 = vmatpush.bf16.msra.mxu0 %v2808_v3  ;;  %v2876_v12 = vor.u32 %v3625_v9, %v2873_v10  ;;  %v3608_v13 = vld [vmem:[#allocation3 + $0x164] sm:$0xf0]  ;;  %v2863_v14 = vld [vmem:[#allocation3 + $0x1e0] sm:$0xf]  ;;  %v3607_v20 = vld [vmem:[#allocation3 + $0x164] sm:$0xf] }
  0x12   :  { %v3624_v15 = vld [vmem:[#allocation3 + $0x1e4] sm:$0xf0]  ;;  %481 = vmatpush.bf16.msra.mxu1 %v2872_v7  ;;  %500 = vmatpush.bf16.msra.mxu2 %v2812_v8  ;;  %v2800_v18 = vor.u32 %v3608_v13, %v2799_v11  ;;  %v2801_v21 = vld [vmem:[#allocation3 + $0x168] sm:$0xf0]  ;;  %v3623_v22 = vld [vmem:[#allocation3 + $0x1e4] sm:$0xf] }
  0x13   :  { %v2864_v19 = vor.u32 %v3624_v15, %v2863_v14  ;;  %519 = vmatpush.bf16.msra.mxu3 %v2876_v12  ;;  %v2804_v23 = vor.u32 %v3607_v20, %v2801_v21  ;;  %v2865_v24 = vld [vmem:[#allocation3 + $0x1e8] sm:$0xf0]  ;;  %v2791_v25 = vld [vmem:[#allocation3 + $0x150] sm:$0xf]  ;;  %v3606_v26 = vld [vmem:[#allocation3 + $0x154] sm:$0xf0] }
  0x14   :  { %v2868_v27 = vor.u32 %v3623_v22, %v2865_v24  ;;  %v2855_v28 = vld [vmem:[#allocation3 + $0x1d0] sm:$0xf]  ;;  %v3622_v29 = vld [vmem:[#allocation3 + $0x1d4] sm:$0xf0]  ;;  %v3605_v30 = vld [vmem:[#allocation3 + $0x154] sm:$0xf]  ;;  %v2792_v31 = vor.u32 %v3606_v26, %v2791_v25 }
  0x15   :  { %463 = vmatpush.bf16.msra.mxu0 %v2800_v18  ;;  %v2793_v32 = vld [vmem:[#allocation3 + $0x158] sm:$0xf0]  ;;  %v3621_v33 = vld [vmem:[#allocation3 + $0x1d4] sm:$0xf]  ;;  %v2856_v35 = vor.u32 %v3622_v29, %v2855_v28  ;;  %v2783_v37 = vld [vmem:[#allocation3 + $0x140] sm:$0xf] }
  0x16   :  { %v2857_v34 = vld [vmem:[#allocation3 + $0x1d8] sm:$0xf0]  ;;  %482 = vmatpush.bf16.msra.mxu1 %v2864_v19  ;;  %501 = vmatpush.bf16.msra.mxu2 %v2804_v23  ;;  %v2796_v36 = vor.u32 %v3605_v30, %v2793_v32  ;;  %v3604_v38 = vld [vmem:[#allocation3 + $0x144] sm:$0xf0]  ;;  %v2847_v39 = vld [vmem:[#allocation3 + $0x1c0] sm:$0xf] }
  0x17   :  { %520 = vmatpush.bf16.msra.mxu3 %v2868_v27  ;;  %v2860_v40 = vor.u32 %v3621_v33, %v2857_v34  ;;  %v3620_v41 = vld [vmem:[#allocation3 + $0x1c4] sm:$0xf0]  ;;  %v3603_v42 = vld [vmem:[#allocation3 + $0x144] sm:$0xf]  ;;  %v2785_v43 = vld [vmem:[#allocation3 + $0x148] sm:$0xf0]  ;;  %v2784_v47 = vor.u32 %v3604_v38, %v2783_v37 }
  0x18   :  { %v3619_v44 = vld [vmem:[#allocation3 + $0x1c4] sm:$0xf]  ;;  %v2849_v45 = vld [vmem:[#allocation3 + $0x1c8] sm:$0xf0]  ;;  %vm3924_vm8 = vmand %vm76_vm1, %vm89_vm4  ;;  %v2848_v49 = vor.u32 %v3620_v41, %v2847_v39  ;;  %v2788_v50 = vor.u32 %v3603_v42, %v2785_v43  ;;  %vm146_vm12 = vcmask 1043456   ;;  %vm148_vm13 = vcmask 1047556  }
  0x19   :  { %464 = vmatpush.bf16.msra.mxu0 %v2792_v31  ;;  %vm3930_vm9 = vmand %vm79_vm2, %vm91_vm5  ;;  %v2775_v51 = vld [vmem:[#allocation3 + $0x130] sm:$0xf]  ;;  %v3602_v52 = vld [vmem:[#allocation3 + $0x134] sm:$0xf0]  ;;  %v2852_v54 = vor.u32 %v3619_v44, %v2849_v45  ;;  %vm104_vm14 = vsmask.f32 4368 }
  0x1a   :  { %483 = vmatpush.bf16.msra.mxu1 %v2856_v35  ;;  %502 = vmatpush.bf16.msra.mxu2 %v2796_v36  ;;  %v2839_v53 = vld [vmem:[#allocation3 + $0x1b0] sm:$0xf]  ;;  %v3618_v55 = vld [vmem:[#allocation3 + $0x1b4] sm:$0xf0]  ;;  %v3601_v56 = vld [vmem:[#allocation3 + $0x134] sm:$0xf]  ;;  %v2776_v61 = vor.u32 %v3602_v52, %v2775_v51 }
  0x1b   :  { %521 = vmatpush.bf16.msra.mxu3 %v2860_v40  ;;  %v2777_v57 = vld [vmem:[#allocation3 + $0x138] sm:$0xf0]  ;;  %v3617_v58 = vld [vmem:[#allocation3 + $0x1b4] sm:$0xf]  ;;  %vm3938_vm10 = vmor %vm3918_vm7, %vm3912_vm6  ;;  %v2840_v62 = vor.u32 %v3618_v55, %v2839_v53  ;;  %vm204_vm6 = vsmask.f32 7440 }
  0x1c   :  { %v2841_v59 = vld [vmem:[#allocation3 + $0x1b8] sm:$0xf0]  ;;  %vm93_vm11 = vmor %vm3930_vm9, %vm3924_vm8  ;;  %v2780_v63 = vor.u32 %v3601_v56, %v2777_v57  ;;  %v2767_v0 = vld [vmem:[#allocation3 + $0x120] sm:$0xf]  ;;  %vm800_vm8 = vcmask 1042432   ;;  %vm801_vm9 = vcmask 1046532  }
  0x1d   :  { %465 = vmatpush.bf16.msra.mxu0 %v2784_v47  ;;  %v3600_v1 = vld [vmem:[#allocation3 + $0x124] sm:$0xf0]  ;;  %v2831_v2 = vld [vmem:[#allocation3 + $0x1a0] sm:$0xf]  ;;  %v2844_v3 = vor.u32 %v3617_v58, %v2841_v59  ;;  %v3599_v5 = vld [vmem:[#allocation3 + $0x124] sm:$0xf] }
  0x1e   :  { %484 = vmatpush.bf16.msra.mxu1 %v2848_v49  ;;  %503 = vmatpush.bf16.msra.mxu2 %v2788_v50  ;;  %v3616_v4 = vld [vmem:[#allocation3 + $0x1a4] sm:$0xf0]  ;;  %v2769_v6 = vld [vmem:[#allocation3 + $0x128] sm:$0xf0]  ;;  %v3615_v7 = vld [vmem:[#allocation3 + $0x1a4] sm:$0xf]  ;;  %v2768_v10 = vor.u32 %v3600_v1, %v2767_v0 }
  0x1f   :  { %522 = vmatpush.bf16.msra.mxu3 %v2852_v54  ;;  %v2833_v8 = vld [vmem:[#allocation3 + $0x1a8] sm:$0xf0]  ;;  %v2759_v9 = vld [vmem:[#allocation3 + $0x110] sm:$0xf]  ;;  %v3598_v11 = vld [vmem:[#allocation3 + $0x114] sm:$0xf0]  ;;  %v2832_v14 = vor.u32 %v3616_v4, %v2831_v2  ;;  %v2772_v15 = vor.u32 %v3599_v5, %v2769_v6 }
  0x20   :  { %v2823_v12 = vld [vmem:[#allocation3 + $0x190] sm:$0xf]  ;;  %v3614_v13 = vld [vmem:[#allocation3 + $0x194] sm:$0xf0]  ;;  %v3597_v16 = vld [vmem:[#allocation3 + $0x114] sm:$0xf]  ;;  %v2836_v19 = vor.u32 %v3615_v7, %v2833_v8  ;;  %v2760_v23 = vor.u32 %v3598_v11, %v2759_v9 }
  0x21   :  { %466 = vmatpush.bf16.msra.mxu0 %v2776_v61  ;;  %v2761_v17 = vld [vmem:[#allocation3 + $0x118] sm:$0xf0]  ;;  %v3946_v18 = vld [vmem:[#allocation3 + $0x194] sm:$0xf]  ;;  %v57_v21 = vld [vmem:[%s4765_s0] sm:$0xff]  ;;  %v2824_v24 = vor.u32 %v3614_v13, %v2823_v12  ;;  %s3866_s9 = smov [#allocation8]  }
  0x22   :  { %485 = vmatpush.bf16.msra.mxu1 %v2840_v62  ;;  %504 = vmatpush.bf16.msra.mxu2 %v2780_v63  ;;  %v2825_v20 = vld [vmem:[#allocation3 + $0x198] sm:$0xf0]  ;;  %v58_v22 = vld [vmem:[%s4765_s0 + $0x8] sm:$0xff]  ;;  %v3954_v25 = vld [vmem:[#allocation3 + $0x100] sm:$0xf]  ;;  %v2764_v33 = vor.u32 %v3597_v16, %v2761_v17  ;;  %s2728_s10 = sshll.u32 %s3866_s9, 4  ;;  %s2729_s10 = int_to_ptr.vmem [resolvable:$true] %s2728_s10 }
  0x23   :  { %523 = vmatpush.bf16.msra.mxu3 %v2844_v3  ;;  %v3956_v26 = vld [vmem:[#allocation3 + $0x104] sm:$0xf0]  ;;  %v3958_v27 = vld [vmem:[#allocation3 + $0x180] sm:$0xf]  ;;  %v59_v29 = vld [vmem:[%s4765_s0 + $0x10] sm:$0xff]  ;;  %v100_v32 = vpack.c.bf16 %v58_v22, %v57_v21  ;;  %v2828_v40 = vor.u32 %v3946_v18, %v2825_v20  ;;  %s2730_s13 = sshll.u32 %s4771_s6, 4  ;;  %s2731_s13 = int_to_ptr.hbm [resolvable:$true] %s2730_s13 }
  0x24   :  { %v3960_v28 = vld [vmem:[#allocation3 + $0x184] sm:$0xf0]  ;;  %v60_v30 = vld [vmem:[%s4765_s0 + $0x18] sm:$0xff]  ;;  %v83_v31 = vld [vmem:[#allocation2] sm:$0x11]  ;;  %v2752_v57 = vor.u32 %v3956_v26, %v3954_v25  ;;  %s3868_s14 = smov 16  }
  0x25   :  { %467 = vmatpush.bf16.msra.mxu0 %v2768_v10  ;;  %v3968_v34 = vld [vmem:[#allocation3 + $0x104] sm:$0xf]  ;;  %v3970_v35 = vld [vmem:[#allocation3 + $0x108] sm:$0xf0]  ;;  %v84_v36 = vsel %vm3938_vm10, 0, %v83_v31  ;;  %v101_v38 = vpack.c.bf16 %v60_v30, %v59_v29  ;;  %v107_v44 = vshrl.u32 %v100_v32, 16  ;;  %vm3992_vm15 = vmand %vm146_vm12, %vm89_vm4  ;;  %v2816_v58 = vor.u32 %v3960_v28, %v3958_v27 }
  0x26   :  { %v94_v37 = vld [vmem:[#allocation2 + $0x10] sm:$0x11]  ;;  %v61_v39 = vld [vmem:[%s4765_s0 + $0x20] sm:$0xff]  ;;  %486 = vmatpush.bf16.msra.mxu1 %v2832_v14  ;;  %505 = vmatpush.bf16.msra.mxu2 %v2772_v15  ;;  %85 = vst [vmem:[#allocation2] sm:$0x11] %v84_v36  ;;  %v110_v45 = vshll.u32 %v100_v32, 16  ;;  %vm4000_vm3 = vmand %vm148_vm13, %vm91_vm5  ;;  %v2756_v63 = vor.u32 %v3968_v34, %v3970_v35 }
  0x27   :  { %v3978_v41 = vld [vmem:[#allocation3 + $0x184] sm:$0xf]  ;;  %v3980_v42 = vld [vmem:[#allocation3 + $0x188] sm:$0xf0]  ;;  %v95_v43 = vsel %vm93_vm11, 0, %v94_v37  ;;  %v62_v47 = vld [vmem:[%s4765_s0 + $0x28] sm:$0xff]  ;;  %524 = vmatpush.bf16.msra.mxu3 %v2836_v19 }
  0x28   :  { %96 = vst [vmem:[#allocation2 + $0x10] sm:$0x11] %v95_v43  ;;  %v115_v49 = vshrl.u32 %v101_v38, 16  ;;  %v118_v50 = vshll.u32 %v101_v38, 16  ;;  %v3996_v52 = vpack.c.bf16 %v62_v47, %v61_v39  ;;  %v109_v53 = vrot.slane %v107_v44, 7  ;;  %vm4012_vm4 = vmor %vm77_vm0, %vm104_vm14  ;;  %v63_v17 = vld [vmem:[%s4765_s0 + $0x30] sm:$0xff] }
  0x29   :  { %v3577_v55 = vld [vmem:[#allocation3 + $0x74] sm:$0xf]  ;;  %v2953_v56 = vld [vmem:[#allocation3 + $0x78] sm:$0xf0]  ;;  %468 = vmatpush.bf16.msra.mxu0 %v2760_v23  ;;  %vm203_vm5 = vsmask.f32 3328  ;;  %v2820_v6 = vor.u32 %v3978_v41, %v3980_v42  ;;  %vm150_vm0 = vmor %vm4000_vm3, %vm3992_vm15 }
  0x2a   :  { %v117_v59 = vrot.slane %v115_v49, 7  ;;  %v3593_v61 = vld [vmem:[#allocation3 + $0xf4] sm:$0xf]  ;;  %v3017_v62 = vld [vmem:[#allocation3 + $0xf8] sm:$0xf0]  ;;  %487 = vmatpush.bf16.msra.mxu1 %v2824_v24  ;;  %506 = vmatpush.bf16.msra.mxu2 %v2764_v33  ;;  %v112_v1 = vor.u32 %v110_v45, %v109_v53  ;;  %v113_v2 = vrot.slane %v109_v53, 4  ;;  %v2956_v9 = vor.u32 %v3577_v55, %v2953_v56  ;;  %vm4051_vm7 = vmor %vm203_vm5, %vm204_vm6 }
  0x2b   :  { %v2951_v3 = vld [vmem:[#allocation3 + $0x70] sm:$0xf]  ;;  %v3578_v4 = vld [vmem:[#allocation3 + $0x74] sm:$0xf0]  ;;  %v124_v5 = vshrl.u32 %v3996_v52, 16  ;;  %525 = vmatpush.bf16.msra.mxu3 %v2828_v40  ;;  %v3020_v12 = vor.u32 %v3593_v61, %v3017_v62  ;;  %v64_v18 = vld [vmem:[%s4765_s0 + $0x38] sm:$0xff] }
  0x2c   :  { %v120_v7 = vor.u32 %v118_v50, %v117_v59  ;;  %v122_v8 = vrot.slane %v117_v59, 4  ;;  %v3015_v10 = vld [vmem:[#allocation3 + $0xf0] sm:$0xf]  ;;  %v3594_v11 = vld [vmem:[#allocation3 + $0xf4] sm:$0xf0]  ;;  %v2952_v13 = vor.u32 %v3578_v4, %v2951_v3  ;;  %v127_v34 = vshll.u32 %v3996_v52, 16 }
  0x2d   :  { %v3575_v14 = vld [vmem:[#allocation3 + $0x64] sm:$0xf]  ;;  %v2945_v15 = vld [vmem:[#allocation3 + $0x68] sm:$0xf0]  ;;  %469 = vmatpush.bf16.msra.mxu0 %v2752_v57  ;;  %v151_v20 = vld [vmem:[#allocation2] sm:$0xff]  ;;  %v3016_v21 = vor.u32 %v3594_v11, %v3015_v10  ;;  %v4041_v29 = vrot.slane %v124_v5, 7  ;;  %v4046_v44 = vpack.c.bf16 %v64_v18, %v63_v17 }
  0x2e   :  { %v3591_v16 = vld [vmem:[#allocation3 + $0xe4] sm:$0xf]  ;;  %v4031_v19 = vsel %vm4012_vm4, %v113_v2, %v120_v7  ;;  %v2948_v22 = vor.u32 %v3575_v14, %v2945_v15  ;;  %v3009_v23 = vld [vmem:[#allocation3 + $0xe8] sm:$0xf0]  ;;  %v2943_v24 = vld [vmem:[#allocation3 + $0x60] sm:$0xf]  ;;  %488 = vmatpush.bf16.msra.mxu1 %v2816_v58  ;;  %507 = vmatpush.bf16.msra.mxu2 %v2756_v63  ;;  %v152_v25 = vsel %vm150_vm0, %v112_v1, %v151_v20 }
  0x2f   :  { %154 = vst [vmem:[#allocation2 + $0x8] sm:$0xff] %v4031_v19  ;;  %v155_v26 = vld [vmem:[#allocation2 + $0x10] sm:$0x11]  ;;  %v216_v27 = vshll.u32 %v4031_v19, 16  ;;  %v220_v28 = vshrl.u32 %v4031_v19, 16  ;;  %526 = vmatpush.bf16.msra.mxu3 %v2820_v6  ;;  %v207_v31 = vshrl.u32 %v152_v25, 16  ;;  %v3012_v37 = vor.u32 %v3591_v16, %v3009_v23 }
  0x30   :  { %153 = vst [vmem:[#allocation2] sm:$0xff] %v152_v25  ;;  %v156_v30 = vsel %vm3938_vm10, %v122_v8, %v155_v26  ;;  %v210_v32 = vshll.u32 %v152_v25, 16  ;;  %v3576_v33 = vld [vmem:[#allocation3 + $0x64] sm:$0xf0]  ;;  %v3007_v39 = vld [vmem:[#allocation3 + $0xe0] sm:$0xf] }
  0x31   :  { %157 = vst [vmem:[#allocation2 + $0x10] sm:$0x11] %v156_v30  ;;  %v218_v35 = vrot.slane %v216_v27, 5  ;;  %v222_v36 = vrot.slane %v220_v28, 4  ;;  %718 = vmatpush.bf16.msrb.mxu0 %v2952_v13  ;;  %v2944_v38 = vor.u32 %v3576_v33, %v2943_v24  ;;  %v209_v40 = vrot.slane %v207_v31, 4 }
  0x32   :  { %756 = vmatpush.bf16.msrb.mxu2 %v2956_v9  ;;  %v212_v41 = vrot.slane %v210_v32, 5  ;;  %737 = vmatpush.bf16.msrb.mxu1 %v3016_v21  ;;  %v3592_v42 = vld [vmem:[#allocation3 + $0xe4] sm:$0xf0]  ;;  %v3573_v43 = vld [vmem:[#allocation3 + $0x54] sm:$0xf]  ;;  %v130_v3 = vrot.slane %v4041_v29, 4 }
  0x33   :  { %775 = vmatpush.bf16.msrb.mxu3 %v3020_v12  ;;  %v223_v45 = vor.u32 %v222_v36, %v218_v35  ;;  %v3008_v47 = vor.u32 %v3592_v42, %v3007_v39  ;;  %v2937_v49 = vld [vmem:[#allocation3 + $0x58] sm:$0xf0]  ;;  %v3589_v50 = vld [vmem:[#allocation3 + $0xd4] sm:$0xf]  ;;  %v2935_v57 = vld [vmem:[#allocation3 + $0x50] sm:$0xf] }
  0x34   :  { %v3001_v53 = vld [vmem:[#allocation3 + $0xd8] sm:$0xf0]  ;;  %v213_v55 = vor.u32 %v212_v41, %v209_v40  ;;  %v2940_v56 = vor.u32 %v3573_v43, %v2937_v49  ;;  %v3574_v58 = vld [vmem:[#allocation3 + $0x54] sm:$0xf0]  ;;  %v2999_v59 = vld [vmem:[#allocation3 + $0xd0] sm:$0xf] }
  0x35   :  { %v224_v61 = vrot.slane %v223_v45, 4  ;;  %719 = vmatpush.bf16.msrb.mxu0 %v2944_v38  ;;  %v3004_v62 = vor.u32 %v3589_v50, %v3001_v53  ;;  %v2936_v63 = vor.u32 %v3574_v58, %v2935_v57  ;;  %v3590_v1 = vld [vmem:[#allocation3 + $0xd4] sm:$0xf0]  ;;  %v3571_v2 = vld [vmem:[#allocation3 + $0x44] sm:$0xf]  ;;  %v132_v9 = vshrl.u32 %v4046_v44, 16 }
  0x36   :  { %757 = vmatpush.bf16.msrb.mxu2 %v2948_v22  ;;  %v214_v5 = vrot.slane %v213_v55, 4  ;;  %738 = vmatpush.bf16.msrb.mxu1 %v3008_v47  ;;  %v3000_v6 = vor.u32 %v3590_v1, %v2999_v59  ;;  %v2929_v7 = vld [vmem:[#allocation3 + $0x48] sm:$0xf0]  ;;  %v3587_v8 = vld [vmem:[#allocation3 + $0xc4] sm:$0xf]  ;;  %v135_v31 = vshll.u32 %v4046_v44, 16  ;;  %v129_v53 = vor.u32 %v127_v34, %v4041_v29 }
  0x37   :  { %776 = vmatpush.bf16.msrb.mxu3 %v3012_v37  ;;  %v2993_v10 = vld [vmem:[#allocation3 + $0xc8] sm:$0xf0]  ;;  %v2927_v11 = vld [vmem:[#allocation3 + $0x40] sm:$0xf]  ;;  %v3572_v12 = vld [vmem:[#allocation3 + $0x44] sm:$0xf0]  ;;  %v2932_v14 = vor.u32 %v3571_v2, %v2929_v7 }
  0x38   :  { %v4056_v13 = vld [vmem:[#allocation2 + $0x10] sm:$0x11]  ;;  %v3588_v16 = vld [vmem:[#allocation3 + $0xc4] sm:$0xf0]  ;;  %v219_v17 = vsel %vm4051_vm7, %v214_v5, %v218_v35  ;;  %v2996_v20 = vor.u32 %v3587_v8, %v2993_v10  ;;  %v2928_v21 = vor.u32 %v3572_v12, %v2927_v11  ;;  %v97_v23 = vld [vmem:[#allocation2 + $0x28] sm:$0x11] }
  0x39   :  { %v2991_v15 = vld [vmem:[#allocation3 + $0xc0] sm:$0xf]  ;;  %v226_v18 = vshll.u32 %v4056_v13, 16  ;;  %720 = vmatpush.bf16.msrb.mxu0 %v2936_v63  ;;  %v86_v22 = vld [vmem:[#allocation2 + $0x18] sm:$0x11]  ;;  %v98_v26 = vsel %vm93_vm11, 0, %v97_v23  ;;  %v286_v33 = vunpack.c.l.b16 %v219_v17  ;;  %v287_v35 = vunpack.c.h.b16 %v219_v17 }
  0x3a   :  { %758 = vmatpush.bf16.msrb.mxu2 %v2940_v56  ;;  %739 = vmatpush.bf16.msrb.mxu1 %v3000_v6  ;;  %v2992_v24 = vor.u32 %v3588_v16, %v2991_v15  ;;  %v87_v25 = vsel %vm3938_vm10, 0, %v86_v22  ;;  %v4068_v27 = vrot.slane %v132_v9, 7  ;;  %v3569_v28 = vld [vmem:[#allocation3 + $0x34] sm:$0xf]  ;;  %v2921_v32 = vld [vmem:[#allocation3 + $0x38] sm:$0xf0] }
  0x3b   :  { %777 = vmatpush.bf16.msrb.mxu3 %v3004_v62  ;;  %v228_v30 = vrot.slane %v226_v18, 5  ;;  %88 = vst [vmem:[#allocation2 + $0x18] sm:$0x11] %v87_v25  ;;  %v2924_v37 = vor.u32 %v3569_v28, %v2921_v32  ;;  %v3585_v48 = vld [vmem:[#allocation3 + $0xb4] sm:$0xf]  ;;  %vm1190_vm11 = vcmask 1041409  }
  0x3c   :  { %99 = vst [vmem:[#allocation2 + $0x28] sm:$0x11] %v98_v26  ;;  %v139_v36 = vrot.slane %v4068_v27, 4  ;;  %v137_v38 = vor.u32 %v135_v31, %v4068_v27  ;;  %v2985_v39 = vld [vmem:[#allocation3 + $0xb8] sm:$0xf0]  ;;  %vm1199_vm12 = vcmask 1043459  }
  0x3d   :  { %v229_v46 = vsel %vm4051_vm7, %v224_v61, %v228_v30  ;;  %721 = vmatpush.bf16.msrb.mxu0 %v2928_v21  ;;  %v2919_v40 = vld [vmem:[#allocation3 + $0x30] sm:$0xf]  ;;  %v3570_v41 = vld [vmem:[#allocation3 + $0x34] sm:$0xf0]  ;;  %v2988_v44 = vor.u32 %v3585_v48, %v2985_v39  ;;  %v3567_v50 = vld [vmem:[#allocation3 + $0x24] sm:$0xf] }
  0x3e   :  { %759 = vmatpush.bf16.msrb.mxu2 %v2932_v14  ;;  %v288_v42 = vunpack.c.l.b16 %v229_v46  ;;  %v289_v43 = vunpack.c.h.b16 %v229_v46  ;;  %740 = vmatpush.bf16.msrb.mxu1 %v2992_v24  ;;  %v2920_v45 = vor.u32 %v3570_v41, %v2919_v40  ;;  %v2983_v47 = vld [vmem:[#allocation3 + $0xb0] sm:$0xf]  ;;  %v3586_v49 = vld [vmem:[#allocation3 + $0xb4] sm:$0xf0]  ;;  %v4080_v55 = vsel %vm4012_vm4, %v130_v3, %v137_v38  ;;  %v2913_v57 = vld [vmem:[#allocation3 + $0x28] sm:$0xf0] }
  0x3f   :  { %778 = vmatpush.bf16.msrb.mxu3 %v2996_v20  ;;  %v2984_v56 = vor.u32 %v3586_v49, %v2983_v47  ;;  %v3583_v58 = vld [vmem:[#allocation3 + $0xa4] sm:$0xf]  ;;  %v2977_v59 = vld [vmem:[#allocation3 + $0xa8] sm:$0xf0]  ;;  %161 = vst [vmem:[#allocation2 + $0x20] sm:$0xff] %v4080_v55  ;;  %v240_v63 = vshll.u32 %v4080_v55, 16  ;;  %v2916_v52 = vor.u32 %v3567_v50, %v2913_v57 }
  0x40   :  { %v294_v61 = vpack.c.b16 %v288_v42, %v286_v33  ;;  %v295_v62 = vpack.c.b16 %v289_v43, %v287_v35  ;;  %v244_v1 = vshrl.u32 %v4080_v55, 16  ;;  %v2911_v2 = vld [vmem:[#allocation3 + $0x20] sm:$0xf]  ;;  %v2980_v0 = vor.u32 %v3583_v58, %v2977_v59  ;;  %v3568_v29 = vld [vmem:[#allocation3 + $0x24] sm:$0xf0] }
  0x41   :  { %722 = vmatpush.bf16.msrb.mxu0 %v2920_v45  ;;  %v2975_v34 = vld [vmem:[#allocation3 + $0xa0] sm:$0xf]  ;;  %v3584_v3 = vld [vmem:[#allocation3 + $0xa4] sm:$0xf0]  ;;  %v242_v6 = vrot.slane %v240_v63, 5  ;;  %v2912_v8 = vor.u32 %v3568_v29, %v2911_v2  ;;  %vm1204_vm13 = vcmask 1041408  }
  0x42   :  { %760 = vmatpush.bf16.msrb.mxu2 %v2924_v37  ;;  %470 = vmatmul.bf16.vlgmr.msra.gmra.mxu0 %v294_v61  ;;  %v158_v5 = vld [vmem:[#allocation2 + $0x18] sm:$0xff]  ;;  %v246_v7 = vrot.slane %v244_v1, 4  ;;  %v3565_v9 = vld [vmem:[#allocation3 + $0x14] sm:$0xf]  ;;  %v2905_v12 = vld [vmem:[#allocation3 + $0x18] sm:$0xf0]  ;;  %v2976_v18 = vor.u32 %v3584_v3, %v2975_v34 }
  0x43   :  { %779 = vmatpush.bf16.msrb.mxu3 %v2988_v44  ;;  %489 = vmatmul.bf16.vlgmr.msra.gmra.mxu1 %v295_v62  ;;  %v159_v10 = vsel %vm150_vm0, %v129_v53, %v158_v5  ;;  %v162_v11 = vld [vmem:[#allocation2 + $0x28] sm:$0x11]  ;;  %v3581_v14 = vld [vmem:[#allocation3 + $0x94] sm:$0xf]  ;;  %v2908_v54 = vor.u32 %v3565_v9, %v2905_v12  ;;  %v2903_v21 = vld [vmem:[#allocation3 + $0x10] sm:$0xf] }
  0x44   :  { %508 = vmatmul.bf16.vlgmr.msra.gmra.mxu2 %v294_v61  ;;  %527 = vmatmul.bf16.vlgmr.msra.gmra.mxu3 %v295_v62  ;;  %160 = vst [vmem:[#allocation2 + $0x18] sm:$0xff] %v159_v10  ;;  %v163_v15 = vsel %vm3938_vm10, %v139_v36, %v162_v11  ;;  %v231_v16 = vshrl.u32 %v159_v10, 16  ;;  %v234_v17 = vshll.u32 %v159_v10, 16  ;;  %v2969_v20 = vld [vmem:[#allocation3 + $0x98] sm:$0xf0]  ;;  %v247_v37 = vor.u32 %v246_v7, %v242_v6  ;;  %vm4117_vm10 = vmor %vm800_vm8, %vm801_vm9 }
  0x45   :  { %741 = vmatpush.bf16.msrb.mxu1 %v2984_v56  ;;  %164 = vst [vmem:[#allocation2 + $0x28] sm:$0x11] %v163_v15  ;;  %723 = vmatpush.bf16.msrb.mxu0 %v2912_v8  ;;  %v2972_v51 = vor.u32 %v3581_v14, %v2969_v20  ;;  %v3566_v22 = vld [vmem:[#allocation3 + $0x14] sm:$0xf0]  ;;  %v2967_v26 = vld [vmem:[#allocation3 + $0x90] sm:$0xf] }
  0x46   :  { %761 = vmatpush.bf16.msrb.mxu2 %v2916_v52  ;;  %v233_v23 = vrot.slane %v231_v16, 4  ;;  %v236_v24 = vrot.slane %v234_v17, 5  ;;  %v2904_v25 = vor.u32 %v3566_v22, %v2903_v21  ;;  %v3582_v27 = vld [vmem:[#allocation3 + $0x94] sm:$0xf0]  ;;  %v3563_v60 = vld [vmem:[#allocation3 + $0x4] sm:$0xf] }
  0x47   :  { %780 = vmatpush.bf16.msrb.mxu3 %v2980_v0  ;;  %v2897_v28 = vld [vmem:[#allocation3 + $0x8] sm:$0xf0]  ;;  %v2968_v31 = vor.u32 %v3582_v27, %v2967_v26  ;;  %v3579_v33 = vld [vmem:[#allocation3 + $0x84] sm:$0xf]  ;;  %v2895_v36 = vld [vmem:[#allocation3] sm:$0xf] }
  0x48   :  { %v237_v30 = vor.u32 %v236_v24, %v233_v23  ;;  %v2900_v32 = vor.u32 %v3563_v60, %v2897_v28  ;;  %v2961_v35 = vld [vmem:[#allocation3 + $0x88] sm:$0xf0]  ;;  %v3564_v46 = vld [vmem:[#allocation3 + $0x4] sm:$0xf0]  ;;  %v2959_v38 = vld [vmem:[#allocation3 + $0x80] sm:$0xf] }
  0x49   :  { %742 = vmatpush.bf16.msrb.mxu1 %v2976_v18  ;;  %724 = vmatpush.bf16.msrb.mxu0 %v2904_v25  ;;  %v2964_v48 = vor.u32 %v3579_v33, %v2961_v35  ;;  %v3580_v39 = vld [vmem:[#allocation3 + $0x84] sm:$0xf0]  ;;  %v2896_v41 = vor.u32 %v3564_v46, %v2895_v36  ;;  %v4092_v42 = vld [vmem:[#allocation2] sm:$0xf]  ;;  %v4094_v43 = vld [vmem:[#allocation2 + $0x4] sm:$0xf] }
  0x4a   :  { %762 = vmatpush.bf16.msrb.mxu2 %v2908_v54  ;;  %v238_v40 = vrot.slane %v237_v30, 4  ;;  %v3865_v44 = vmov 0   ;;  %v2960_v47 = vor.u32 %v3580_v39, %v2959_v38  ;;  %v3641_v49 = vld [vmem:[#allocation3 + $0x274] sm:$0xf]  ;;  %v248_v53 = vrot.slane %v247_v37, 4 }
  0x4b   :  { %781 = vmatpush.bf16.msrb.mxu3 %v2972_v51  ;;  %1438 = vst [vmem:[#allocation2 + $0x10] sm:$0x22] %v3865_v44  ;;  %v3083_v57 = vld [vmem:[#allocation3 + $0x278] sm:$0xf0]  ;;  %v3657_v59 = vld [vmem:[#allocation3 + $0x2f4] sm:$0xf] }
  0x4c   :  { %v4097_v45 = vld [vmem:[#allocation2 + $0x28] sm:$0x11]  ;;  %1436 = vst [vmem:[#allocation2] sm:$0x11] %v3865_v44  ;;  %v243_v50 = vsel %vm4051_vm7, %v238_v40, %v242_v6  ;;  %v3086_v58 = vor.u32 %v3641_v49, %v3083_v57  ;;  %v3081_v62 = vld [vmem:[#allocation3 + $0x270] sm:$0xf] }
  0x4d   :  { %743 = vmatpush.bf16.msrb.mxu1 %v2968_v31  ;;  %v250_v56 = vshll.u32 %v4097_v45, 16  ;;  %725 = vmatpush.bf16.msrb.mxu0 %v2896_v41  ;;  %1439 = vst [vmem:[#allocation2 + $0x28] sm:$0x22] %v3865_v44  ;;  %v3147_v61 = vld [vmem:[#allocation3 + $0x2f8] sm:$0xf0]  ;;  %v290_v0 = vunpack.c.l.b16 %v243_v50  ;;  %v291_v29 = vunpack.c.h.b16 %v243_v50  ;;  %vm1283_vm14 = vcmask 130048  }
  0x4e   :  { %763 = vmatpush.bf16.msrb.mxu2 %v2900_v32  ;;  %v3150_v1 = vor.u32 %v3657_v59, %v3147_v61  ;;  %v3642_v2 = vld [vmem:[#allocation3 + $0x274] sm:$0xf0]  ;;  %v3145_v52 = vld [vmem:[#allocation3 + $0x2f0] sm:$0xf]  ;;  %v3639_v5 = vld [vmem:[#allocation3 + $0x264] sm:$0xf] }
  0x4f   :  { %782 = vmatpush.bf16.msrb.mxu3 %v2964_v48  ;;  %v252_v63 = vrot.slane %v250_v56, 5  ;;  %v3082_v34 = vor.u32 %v3642_v2, %v3081_v62  ;;  %v3658_v3 = vld [vmem:[#allocation3 + $0x2f4] sm:$0xf0]  ;;  %v3075_v6 = vld [vmem:[#allocation3 + $0x268] sm:$0xf0] }
  0x50   :  { %v3146_v8 = vor.u32 %v3658_v3, %v3145_v52  ;;  %v3078_v9 = vor.u32 %v3639_v5, %v3075_v6  ;;  %v3655_v10 = vld [vmem:[#allocation3 + $0x2e4] sm:$0xf]  ;;  %v3139_v11 = vld [vmem:[#allocation3 + $0x2e8] sm:$0xf0]  ;;  %v3073_v12 = vld [vmem:[#allocation3 + $0x260] sm:$0xf] }
  0x51   :  { %744 = vmatpush.bf16.msrb.mxu1 %v2960_v47  ;;  %v253_v7 = vsel %vm4051_vm7, %v248_v53, %v252_v63  ;;  %1025 = vmatpush.bf16.msra.mxu0 %v3082_v34  ;;  %v3142_v16 = vor.u32 %v3655_v10, %v3139_v11  ;;  %v3640_v17 = vld [vmem:[#allocation3 + $0x264] sm:$0xf0]  ;;  %v3137_v18 = vld [vmem:[#allocation3 + $0x2e0] sm:$0xf]  ;;  %v3637_v54 = vld [vmem:[#allocation3 + $0x254] sm:$0xf] }
  0x52   :  { %1063 = vmatpush.bf16.msra.mxu2 %v3086_v58  ;;  %v292_v14 = vunpack.c.l.b16 %v253_v7  ;;  %v293_v15 = vunpack.c.h.b16 %v253_v7  ;;  %v3656_v20 = vld [vmem:[#allocation3 + $0x2e4] sm:$0xf0]  ;;  %v3067_v51 = vld [vmem:[#allocation3 + $0x258] sm:$0xf0]  ;;  %v3653_v21 = vld [vmem:[#allocation3 + $0x2d4] sm:$0xf]  ;;  %v3074_v23 = vor.u32 %v3640_v17, %v3073_v12 }
  0x53   :  { %1082 = vmatpush.bf16.msra.mxu3 %v3150_v1  ;;  %v3138_v24 = vor.u32 %v3656_v20, %v3137_v18  ;;  %v3131_v25 = vld [vmem:[#allocation3 + $0x2d8] sm:$0xf0]  ;;  %v3065_v26 = vld [vmem:[#allocation3 + $0x250] sm:$0xf]  ;;  %v3638_v27 = vld [vmem:[#allocation3 + $0x254] sm:$0xf0]  ;;  %v3070_v60 = vor.u32 %v3637_v54, %v3067_v51 }
  0x54   :  { %v296_v22 = vpack.c.b16 %v292_v14, %v290_v0  ;;  %v297_v4 = vpack.c.b16 %v293_v15, %v291_v29  ;;  %v3134_v28 = vor.u32 %v3653_v21, %v3131_v25  ;;  %v3129_v30 = vld [vmem:[#allocation3 + $0x2d0] sm:$0xf]  ;;  %v3654_v31 = vld [vmem:[#allocation3 + $0x2d4] sm:$0xf0]  ;;  %v3635_v32 = vld [vmem:[#allocation3 + $0x244] sm:$0xf]  ;;  %v3066_v48 = vor.u32 %v3638_v27, %v3065_v26 }
  0x55   :  { %1044 = vmatpush.bf16.msra.mxu1 %v3146_v8  ;;  %v3059_v33 = vld [vmem:[#allocation3 + $0x248] sm:$0xf0]  ;;  %v3651_v35 = vld [vmem:[#allocation3 + $0x2c4] sm:$0xf]  ;;  %v3057_v37 = vld [vmem:[#allocation3 + $0x240] sm:$0xf]  ;;  %1026 = vmatpush.bf16.msra.mxu0 %v3074_v23  ;;  %v3130_v46 = vor.u32 %v3654_v31, %v3129_v30 }
  0x56   :  { %1064 = vmatpush.bf16.msra.mxu2 %v3078_v9  ;;  %475 = vmatmul.bf16.gmra.mxu0 %v296_v22  ;;  %v3123_v36 = vld [vmem:[#allocation3 + $0x2c8] sm:$0xf0]  ;;  %v3636_v38 = vld [vmem:[#allocation3 + $0x244] sm:$0xf0]  ;;  %v3121_v39 = vld [vmem:[#allocation3 + $0x2c0] sm:$0xf]  ;;  %v3062_v41 = vor.u32 %v3635_v32, %v3059_v33 }
  0x57   :  { %1083 = vmatpush.bf16.msra.mxu3 %v3142_v16  ;;  %494 = vmatmul.bf16.gmra.mxu1 %v297_v4  ;;  %v3652_v40 = vld [vmem:[#allocation3 + $0x2c4] sm:$0xf0]  ;;  %v3126_v47 = vor.u32 %v3651_v35, %v3123_v36  ;;  %v4108_v50 = vld [vmem:[#allocation2 + $0x1c] sm:$0xf]  ;;  %v3633_v53 = vld [vmem:[#allocation3 + $0x234] sm:$0xf]  ;;  %v3058_v59 = vor.u32 %v3636_v38, %v3057_v37 }
  0x58   :  { %513 = vmatmul.bf16.gmra.mxu2 %v296_v22  ;;  %532 = vmatmul.bf16.gmra.mxu3 %v297_v4  ;;  %v4106_v49 = vld [vmem:[#allocation2 + $0x18] sm:$0xf]  ;;  %v3051_v56 = vld [vmem:[#allocation3 + $0x238] sm:$0xf0]  ;;  %v3649_v57 = vld [vmem:[#allocation3 + $0x2b4] sm:$0xf]  ;;  %v3122_v61 = vor.u32 %v3652_v40, %v3121_v39 }
  0x59   :  { %1045 = vmatpush.bf16.msra.mxu1 %v3138_v24  ;;  %1437 = vst [vmem:[#allocation2 + $0x18] sm:$0x11] %v3865_v44  ;;  %v3115_v58 = vld [vmem:[#allocation3 + $0x2b8] sm:$0xf0]  ;;  %1027 = vmatpush.bf16.msra.mxu0 %v3066_v48  ;;  %v3049_v62 = vld [vmem:[#allocation3 + $0x230] sm:$0xf]  ;;  %v3054_v1 = vor.u32 %v3633_v53, %v3051_v56  ;;  %vm4460_vm7 = vmor %vm76_vm1, %vm79_vm2 }
  0x5a   :  { %1065 = vmatpush.bf16.msra.mxu2 %v3070_v60  ;;  %v3634_v63 = vld [vmem:[#allocation3 + $0x234] sm:$0xf0]  ;;  %v3118_v2 = vor.u32 %v3649_v57, %v3115_v58  ;;  %v3113_v52 = vld [vmem:[#allocation3 + $0x2b0] sm:$0xf]  ;;  %v3631_v29 = vld [vmem:[#allocation3 + $0x224] sm:$0xf] }
  0x5b   :  { %1084 = vmatpush.bf16.msra.mxu3 %v3134_v28  ;;  %v3650_v0 = vld [vmem:[#allocation3 + $0x2b4] sm:$0xf0]  ;;  %v3043_v34 = vld [vmem:[#allocation3 + $0x228] sm:$0xf0]  ;;  %v3647_v3 = vld [vmem:[#allocation3 + $0x2a4] sm:$0xf]  ;;  %v3050_v7 = vor.u32 %v3634_v63, %v3049_v62 }
  0x5c   :  { %v3107_v5 = vld [vmem:[#allocation3 + $0x2a8] sm:$0xf0]  ;;  %v3560_v44 = vld [vmem:[#allocation2 + $0x4] sm:$0xf0]  ;;  %v2881_v6 = vld [vmem:[#allocation2 + $0x8] sm:$0xf0]  ;;  %v3114_v8 = vor.u32 %v3650_v0, %v3113_v52  ;;  %v3046_v11 = vor.u32 %v3631_v29, %v3043_v34 }
  0x5d   :  { %1046 = vmatpush.bf16.msra.mxu1 %v3130_v46  ;;  %1028 = vmatpush.bf16.msra.mxu0 %v3058_v59  ;;  %v3041_v9 = vld [vmem:[#allocation3 + $0x220] sm:$0xf]  ;;  %v3632_v10 = vld [vmem:[#allocation3 + $0x224] sm:$0xf0]  ;;  %v3110_v12 = vor.u32 %v3647_v3, %v3107_v5  ;;  %v3629_v16 = vld [vmem:[#allocation3 + $0x214] sm:$0xf]  ;;  %v2880_v17 = vor.u32 %v3560_v44, %v4092_v42  ;;  %v2884_v18 = vor.u32 %v4094_v43, %v2881_v6 }
  0x5e   :  { %1066 = vmatpush.bf16.msra.mxu2 %v3062_v41  ;;  %v3105_v14 = vld [vmem:[#allocation3 + $0x2a0] sm:$0xf]  ;;  %v3648_v15 = vld [vmem:[#allocation3 + $0x2a4] sm:$0xf0]  ;;  %v3035_v20 = vld [vmem:[#allocation3 + $0x218] sm:$0xf0]  ;;  %v3042_v21 = vor.u32 %v3632_v10, %v3041_v9 }
  0x5f   :  { %1085 = vmatpush.bf16.msra.mxu3 %v3126_v47  ;;  %v3645_v54 = vld [vmem:[#allocation3 + $0x294] sm:$0xf]  ;;  %v3099_v51 = vld [vmem:[#allocation3 + $0x298] sm:$0xf0]  ;;  %v3106_v22 = vor.u32 %v3648_v15, %v3105_v14  ;;  %v3033_v4 = vld [vmem:[#allocation3 + $0x210] sm:$0xf]  ;;  %v3038_v24 = vor.u32 %v3629_v16, %v3035_v20 }
  0x60   :  { %v3630_v23 = vld [vmem:[#allocation3 + $0x214] sm:$0xf0]  ;;  %v3102_v25 = vor.u32 %v3645_v54, %v3099_v51  ;;  %v3097_v26 = vld [vmem:[#allocation3 + $0x290] sm:$0xf]  ;;  %v3627_v60 = vld [vmem:[#allocation3 + $0x204] sm:$0xf] }
  0x61   :  { %1047 = vmatpush.bf16.msra.mxu1 %v3122_v61  ;;  %1029 = vmatpush.bf16.msra.mxu0 %v3050_v7  ;;  %v3646_v27 = vld [vmem:[#allocation3 + $0x294] sm:$0xf0]  ;;  %v3027_v42 = vld [vmem:[#allocation3 + $0x208] sm:$0xf0]  ;;  %v3643_v43 = vld [vmem:[#allocation3 + $0x284] sm:$0xf]  ;;  %v3034_v30 = vor.u32 %v3630_v23, %v3033_v4 }
  0x62   :  { %1067 = vmatpush.bf16.msra.mxu2 %v3054_v1  ;;  %v3091_v28 = vld [vmem:[#allocation3 + $0x288] sm:$0xf0]  ;;  %v3098_v31 = vor.u32 %v3646_v27, %v3097_v26  ;;  %v3025_v32 = vld [vmem:[#allocation3 + $0x200] sm:$0xf]  ;;  %v3030_v33 = vor.u32 %v3627_v60, %v3027_v42  ;;  %v3628_v36 = vld [vmem:[#allocation3 + $0x204] sm:$0xf0] }
  0x63   :  { %1086 = vmatpush.bf16.msra.mxu3 %v3118_v2  ;;  %v3094_v35 = vor.u32 %v3643_v43, %v3091_v28  ;;  %v3089_v37 = vld [vmem:[#allocation3 + $0x280] sm:$0xf]  ;;  %v3644_v48 = vld [vmem:[#allocation3 + $0x284] sm:$0xf0]  ;;  %v3026_v46 = vor.u32 %v3628_v36, %v3025_v32  ;;  %v3562_v39 = vld [vmem:[#allocation2 + $0x1c] sm:$0xf0] }
  0x64   :  { %v3090_v38 = vor.u32 %v3644_v48, %v3089_v37  ;;  %v2889_v40 = vld [vmem:[#allocation2 + $0x20] sm:$0xf0]  ;;  %v2888_v41 = vor.u32 %v3562_v39, %v4106_v49  ;;  %v805_v53 = vrot.slane %v4031_v19, 5  ;;  %v808_v57 = vrot.slane %v4056_v13, 5  ;;  %v795_v0 = vld [vmem:[#allocation2 + $0x18] sm:$0xee] }
  0x65   :  { %1048 = vmatpush.bf16.msra.mxu1 %v3114_v8  ;;  %1030 = vmatpush.bf16.msra.mxu0 %v3042_v21  ;;  %v2892_v47 = vor.u32 %v4108_v50, %v2889_v40  ;;  %v794_v56 = vld [vmem:[#allocation2] sm:$0xee]  ;;  %v812_v52 = vrot.slane %v4080_v55, 5  ;;  %v3022_v29 = vrot.slane %v795_v0, 9  ;;  %v815_v3 = vrot.slane %v4097_v45, 5  ;;  %v1222_v36 = vld [vmem:[%s4769_s4 + $0x78] sm:$0xff] }
  0x66   :  { %1068 = vmatpush.bf16.msra.mxu2 %v3046_v11  ;;  %726 = vmatmul.bf16.vlgmr.msrb.gmra.mxu0 %v2880_v17  ;;  %v3021_v58 = vrot.slane %v794_v56, 9  ;;  %v807_v59 = vrot.slane %v805_v53, 4  ;;  %v1221_v37 = vld [vmem:[%s4769_s4 + $0x70] sm:$0xff]  ;;  %v1220_v48 = vld [vmem:[%s4769_s4 + $0x68] sm:$0xff]  ;;  %v1218_v56 = vld [vmem:[%s4769_s4 + $0x58] sm:$0xff]  ;;  %vm2078_vm2 = vcmask 1045508  }
  0x67   :  { %1087 = vmatpush.bf16.msra.mxu3 %v3110_v12  ;;  %745 = vmatmul.bf16.vlgmr.msrb.gmra.mxu1 %v2884_v18  ;;  %v814_v34 = vrot.slane %v812_v52, 4  ;;  %v813_v5 = vsel %vm4117_vm10, %v3022_v29, %v812_v52  ;;  %v1214_v52 = vld [vmem:[%s4769_s4 + $0x38] sm:$0xff]  ;;  %vm4496_vm8 = vmor %vm1204_vm13, %vm2078_vm2 }
  0x68   :  { %764 = vmatmul.bf16.vlgmr.msrb.gmra.mxu2 %v2880_v17  ;;  %783 = vmatmul.bf16.vlgmr.msrb.gmra.mxu3 %v2884_v18  ;;  %v806_v49 = vsel %vm4117_vm10, %v3021_v58, %v805_v53  ;;  %v809_v19 = vsel %vm4117_vm10, %v807_v59, %v808_v57  ;;  %v853_v6 = vunpack.c.l.b16 %v813_v5  ;;  %v854_v8 = vunpack.c.h.b16 %v813_v5  ;;  %v1237_v53 = vld [vmem:[%s4769_s4 + $0xf0] sm:$0xff]  ;;  %v1236_v57 = vld [vmem:[%s4769_s4 + $0xe8] sm:$0xff]  ;;  %v1235_v59 = vld [vmem:[%s4769_s4 + $0xe0] sm:$0xff] }
  0x69   :  { %1049 = vmatpush.bf16.msra.mxu1 %v3106_v22  ;;  %1031 = vmatpush.bf16.msra.mxu0 %v3034_v30  ;;  %v849_v50 = vunpack.c.l.b16 %v806_v49  ;;  %v851_v62 = vunpack.c.l.b16 %v809_v19  ;;  %v850_v63 = vunpack.c.h.b16 %v806_v49  ;;  %v852_v1 = vunpack.c.h.b16 %v809_v19  ;;  %v1217_v58 = vld [vmem:[%s4769_s4 + $0x50] sm:$0xff]  ;;  %v1216_v49 = vld [vmem:[%s4769_s4 + $0x48] sm:$0xff] }
  0x6a   :  { %1069 = vmatpush.bf16.msra.mxu2 %v3038_v24  ;;  %v816_v44 = vsel %vm4117_vm10, %v814_v34, %v815_v3  ;;  %v1232_v34 = vld [vmem:[%s4769_s4 + $0xc8] sm:$0xff]  ;;  %v1213_v3 = vld [vmem:[%s4769_s4 + $0x30] sm:$0xff] }
  0x6b   :  { %1088 = vmatpush.bf16.msra.mxu3 %v3102_v25  ;;  %v857_v2 = vpack.c.b16 %v851_v62, %v849_v50  ;;  %v858_v13 = vpack.c.b16 %v852_v1, %v850_v63  ;;  %v855_v7 = vunpack.c.l.b16 %v816_v44  ;;  %v856_v9 = vunpack.c.h.b16 %v816_v44  ;;  %v1234_v1 = vld [vmem:[%s4769_s4 + $0xd8] sm:$0xff] }
  0x6d   :  { %1050 = vmatpush.bf16.msra.mxu1 %v3098_v31  ;;  %1032 = vmatpush.bf16.msra.mxu0 %v3026_v46  ;;  %v859_v55 = vpack.c.b16 %v855_v7, %v853_v6  ;;  %v860_v10 = vpack.c.b16 %v856_v9, %v854_v8  ;;  %v1231_v6 = vld [vmem:[%s4769_s4 + $0xc0] sm:$0xff]  ;;  %v1212_v7 = vld [vmem:[%s4769_s4 + $0x28] sm:$0xff] }
  0x6e   :  { %1070 = vmatpush.bf16.msra.mxu2 %v3030_v33 }
  0x6f   :  { %1089 = vmatpush.bf16.msra.mxu3 %v3094_v35 }
  0x71   :  { %1051 = vmatpush.bf16.msra.mxu1 %v3090_v38  ;;  %1239 = vmatpush.msrb.mxu0 %v1222_v36  ;;  %v1210_v36 = vld [vmem:[%s4769_s4 + $0x18] sm:$0xff] }
  0x73   :  { %1240 = vmatpush.msrb.mxu0 %v1221_v37 }
  0x75   :  { %1241 = vmatpush.msrb.mxu0 %v1220_v48 }
  0x76   :  { %731 = vmatmul.bf16.gmra.mxu0 %v2888_v41 }
  0x77   :  { %750 = vmatmul.bf16.gmra.mxu1 %v2892_v47 }
  0x78   :  { %769 = vmatmul.bf16.gmra.mxu2 %v2888_v41  ;;  %788 = vmatmul.bf16.gmra.mxu3 %v2892_v47  ;;  %v1238_v41 = vld [vmem:[%s4769_s4 + $0xf8] sm:$0xff]  ;;  %v1219_v47 = vld [vmem:[%s4769_s4 + $0x60] sm:$0xff] }
  0x79   :  { %1259 = vmatpush.msrb.mxu1 %v1238_v41  ;;  %1242 = vmatpush.msrb.mxu0 %v1219_v47  ;;  %v1226_v47 = vld [vmem:[%s4769_s4 + $0x98] sm:$0xff] }
  0x7b   :  { %1260 = vmatpush.msrb.mxu1 %v1237_v53  ;;  %1243 = vmatpush.msrb.mxu0 %v1218_v56  ;;  %v1207_v53 = vld [vmem:[%s4769_s4] sm:$0xff] }
  0x7d   :  { %1261 = vmatpush.msrb.mxu1 %v1236_v57  ;;  %1244 = vmatpush.msrb.mxu0 %v1217_v58 }
  0x7f   :  { %1262 = vmatpush.msrb.mxu1 %v1235_v59  ;;  %1245 = vmatpush.msrb.mxu0 %v1216_v49 }
  0x81   :  { %1263 = vmatpush.msrb.mxu1 %v1234_v1 }
  0x86   :  { %1033 = vmatmul.bf16.vlgmr.msra.gmra.mxu0 %v857_v2 }
  0x87   :  { %1052 = vmatmul.bf16.vlgmr.msra.gmra.mxu1 %v858_v13 }
  0x88   :  { %1071 = vmatmul.bf16.vlgmr.msra.gmra.mxu2 %v857_v2  ;;  %1090 = vmatmul.bf16.vlgmr.msra.gmra.mxu3 %v858_v13  ;;  %v1215_v2 = vld [vmem:[%s4769_s4 + $0x40] sm:$0xff]  ;;  %v1233_v13 = vld [vmem:[%s4769_s4 + $0xd0] sm:$0xff] }
  0x89   :  { %1246 = vmatpush.msrb.mxu0 %v1215_v2  ;;  %1264 = vmatpush.msrb.mxu1 %v1233_v13 }
  0x8b   :  { %1247 = vmatpush.msrb.mxu0 %v1214_v52  ;;  %1265 = vmatpush.msrb.mxu1 %v1232_v34  ;;  %v1225_v52 = vld [vmem:[%s4769_s4 + $0x90] sm:$0xff] }
  0x8d   :  { %1248 = vmatpush.msrb.mxu0 %v1213_v3  ;;  %1266 = vmatpush.msrb.mxu1 %v1231_v6 }
  0x8f   :  { %1249 = vmatpush.msrb.mxu0 %v1212_v7 }
  0x96   :  { %1038 = vmatmul.bf16.gmra.mxu0 %v859_v55 }
  0x97   :  { %1057 = vmatmul.bf16.gmra.mxu1 %v860_v10 }
  0x98   :  { %1076 = vmatmul.bf16.gmra.mxu2 %v859_v55  ;;  %1095 = vmatmul.bf16.gmra.mxu3 %v860_v10  ;;  %v65_v10 = vld [vmem:[%s4768_s3] ss:$8 sm:$0x3] }
  0x99   :  { %v4263_v37 = vperm.slane %v65_v10, 0 }
  0xbf   :  { %v4131_v11 = vpop.f32.mrf.mxu0 }
  0xc0   :  { %v4133_v12 = vpop.f32.mrf.mxu1 }
  0xc1   :  { %v491_v0 = vadd.f32 %v4133_v12, %v4131_v11 }
  0xc7   :  { %v4135_v45 = vpop.f32.mrf.mxu2  ;;  %v4137_v14 = vpop.f32.mrf.mxu3 }
  0xc8   :  { %v473_v15 = vpop.f32.mrf.mxu0  ;;  %v492_v16 = vpop.f32.mrf.mxu1 }
  0xc9   :  { %v493_v29 = vadd.f32 %v492_v16, %v473_v15  ;;  %v1230_v15 = vld [vmem:[%s4769_s4 + $0xb8] sm:$0xff]  ;;  %v1211_v16 = vld [vmem:[%s4769_s4 + $0x20] sm:$0xff] }
  0xca   :  { %1267 = vmatpush.msrb.mxu1 %v1230_v15  ;;  %1250 = vmatpush.msrb.mxu0 %v1211_v16  ;;  %v1282_v15 = vld [vmem:[%s4770_s5 + $0x18] sm:$0xff]  ;;  %v1279_v16 = vld [vmem:[%s4770_s5] sm:$0xff] }
  0xcb   :  { %1321 = vmatpush.msrb.mxu3 %v1282_v15 }
  0xcc   :  { %1251 = vmatpush.msrb.mxu0 %v1210_v36 }
  0xcf   :  { %v4139_v17 = vpop.f32.mrf.mxu2  ;;  %v4141_v18 = vpop.f32.mrf.mxu3 }
  0xd3   :  { %v476_v20 = vpop.f32.mrf.mxu0 }
  0xd4   :  { %v495_v54 = vpop.f32.mrf.mxu1 }
  0xd5   :  { %v4143_v51 = vadd.f32 %v495_v54, %v476_v20 }
  0xdb   :  { %v514_v21 = vpop.f32.mrf.mxu2  ;;  %v533_v22 = vpop.f32.mrf.mxu3 }
  0xdc   :  { %v4145_v4 = vadd.f32 %v533_v22, %v514_v21  ;;  %v4147_v23 = vpop.f32.mrf.mxu0  ;;  %v4149_v24 = vpop.f32.mrf.mxu1  ;;  %v529_v22 = vadd.f32 %v4137_v14, %v4135_v45  ;;  %v1228_v14 = vld [vmem:[%s4769_s4 + $0xa8] sm:$0xff] }
  0xe3   :  { %v4151_v25 = vpop.f32.mrf.mxu2  ;;  %v4153_v26 = vpop.f32.mrf.mxu3 }
  0xe4   :  { %v727_v27 = vpop.f32.mrf.mxu0  ;;  %v4155_v60 = vpop.f32.mrf.mxu1 }
  0xe5   :  { %v728_v5 = vadd.f32 %v727_v27, %v491_v0  ;;  %v531_v27 = vadd.f32 %v4141_v18, %v4139_v17  ;;  %v1209_v17 = vld [vmem:[%s4769_s4 + $0x10] sm:$0xff]  ;;  %v1227_v18 = vld [vmem:[%s4769_s4 + $0xa0] sm:$0xff] }
  0xe6   :  { %1252 = vmatpush.msrb.mxu0 %v1209_v17 }
  0xe7   :  { %v747_v20 = vadd.f32 %v4155_v60, %v728_v5  ;;  %v1223_v5 = vld [vmem:[%s4769_s4 + $0x80] sm:$0xff] }
  0xeb   :  { %v4157_v42 = vpop.f32.mrf.mxu2  ;;  %v4159_v43 = vpop.f32.mrf.mxu3 }
  0xec   :  { %v729_v28 = vpop.f32.mrf.mxu0  ;;  %v4161_v30 = vpop.f32.mrf.mxu1  ;;  %v766_v48 = vadd.f32 %v4157_v42, %v529_v22  ;;  %v1208_v42 = vld [vmem:[%s4769_s4 + $0x8] sm:$0xff]  ;;  %v536_v22 = vadd.f32 %v4153_v26, %v4151_v25 }
  0xed   :  { %v730_v44 = vadd.f32 %v729_v28, %v493_v29  ;;  %v1229_v28 = vld [vmem:[%s4769_s4 + $0xb0] sm:$0xff]  ;;  %1253 = vmatpush.msrb.mxu0 %v1208_v42  ;;  %v4300_v29 = vperm.slane %v65_v10, 1 }
  0xee   :  { %1268 = vmatpush.msrb.mxu1 %v1229_v28  ;;  %v785_v59 = vadd.f32 %v4159_v43, %v766_v48 }
  0xef   :  { %v749_v54 = vadd.f32 %v4161_v30, %v730_v44  ;;  %1254 = vmatpush.msrb.mxu0 %v1207_v53 }
  0xf0   :  { %1269 = vmatpush.msrb.mxu1 %v1228_v14 }
  0xf2   :  { %1270 = vmatpush.msrb.mxu1 %v1227_v18 }
  0xf3   :  { %v4163_v31 = vpop.f32.mrf.mxu2  ;;  %v4165_v32 = vpop.f32.mrf.mxu3 }
  0xf4   :  { %v4167_v33 = vpop.f32.mrf.mxu0  ;;  %v4169_v35 = vpop.f32.mrf.mxu1  ;;  %v768_v45 = vadd.f32 %v4163_v31, %v531_v27  ;;  %1271 = vmatpush.msrb.mxu1 %v1226_v47 }
  0xf5   :  { %v733_v2 = vadd.f32 %v4167_v33, %v4143_v51  ;;  %v498_v51 = vadd.f32 %v4149_v24, %v4147_v23 }
  0xf6   :  { %v787_v49 = vadd.f32 %v4165_v32, %v768_v45  ;;  %v1224_v32 = vld [vmem:[%s4769_s4 + $0x88] sm:$0xff]  ;;  %1272 = vmatpush.msrb.mxu1 %v1225_v52 }
  0xf7   :  { %v752_v44 = vadd.f32 %v4169_v35, %v733_v2 }
  0xf8   :  { %1273 = vmatpush.msrb.mxu1 %v1224_v32 }
  0xfa   :  { %1274 = vmatpush.msrb.mxu1 %v1223_v5 }
  0xfb   :  { %v4180_v46 = vpop.f32.mrf.mxu2  ;;  %v4182_v38 = vpop.f32.mrf.mxu3 }
  0xfc   :  { %v4184_v39 = vpop.f32.mrf.mxu0  ;;  %v4186_v40 = vpop.f32.mrf.mxu1  ;;  %v771_v10 = vadd.f32 %v4180_v46, %v4145_v4 }
  0xfd   :  { %v735_v6 = vadd.f32 %v4184_v39, %v498_v51 }
 0x103   :  { %v4212_v19 = vpop.f32.mrf.mxu2  ;;  %v4214_v50 = vpop.f32.mrf.mxu3 }
 0x104   :  { %v1034_v62 = vpop.f32.mrf.mxu0  ;;  %v1053_v63 = vpop.f32.mrf.mxu1  ;;  %v773_v48 = vadd.f32 %v4212_v19, %v536_v22 }
 0x105   :  { %v1054_v8 = vadd.f32 %v1053_v63, %v1034_v62 }
 0x106   :  { %v792_v19 = vadd.f32 %v4214_v50, %v773_v48 }
 0x107   :  { %v1101_v60 = vadd.f32 %v1054_v8, %v747_v20  ;;  %v754_v20 = vadd.f32 %v4186_v40, %v735_v6 }
 0x109   :  { %v4289_v56 = vadd.f32 %v4263_v37, %v1101_v60 }
 0x10b   :  { %v1072_v9 = vpop.f32.mrf.mxu2  ;;  %v1091_v55 = vpop.f32.mrf.mxu3  ;;  %v1150_v33 = vmul.f32 %v4289_v56, %v4289_v56 }
 0x10c   :  { %v1036_v11 = vpop.f32.mrf.mxu0  ;;  %v1055_v12 = vpop.f32.mrf.mxu1  ;;  %v1092_v31 = vadd.f32 %v1091_v55, %v1072_v9 }
 0x10d   :  { %v1056_v21 = vadd.f32 %v1055_v12, %v1036_v11  ;;  %v1281_v12 = vld [vmem:[%s4770_s5 + $0x10] sm:$0xff] }
 0x10e   :  { %v1102_v0 = vadd.f32 %v1092_v31, %v785_v59  ;;  %1301 = vmatpush.msrb.mxu2 %v1281_v12 }
 0x10f   :  { %v1103_v30 = vadd.f32 %v1056_v21, %v749_v54  ;;  %v1280_v21 = vld [vmem:[%s4770_s5 + $0x8] sm:$0xff] }
 0x110   :  { %v4320_v24 = vadd.f32 %v4300_v29, %v1102_v0  ;;  %1302 = vmatpush.msrb.mxu2 %v1279_v16  ;;  %1322 = vmatpush.msrb.mxu3 %v1280_v21 }
 0x111   :  { %v4277_v41 = vadd.f32 %v4263_v37, %v1103_v30  ;;  %v790_v30 = vadd.f32 %v4182_v38, %v771_v10 }
 0x112   :  { %v1151_v27 = vmul.f32 %v4320_v24, %v4320_v24 }
 0x113   :  { %v1074_v57 = vpop.f32.mrf.mxu2  ;;  %v1093_v58 = vpop.f32.mrf.mxu3  ;;  %v1152_v13 = vmul.f32 %v4277_v41, %v4277_v41  ;;  %v1122_v7 = vadd.f32 %v4277_v41, %v4289_v56 }
 0x114   :  { %v1094_v62 = vadd.f32 %v1093_v58, %v1074_v57  ;;  %v1039_v63 = vpop.f32.mrf.mxu0  ;;  %v1058_v1 = vpop.f32.mrf.mxu1 }
 0x115   :  { %v1059_v34 = vadd.f32 %v1058_v1, %v1039_v63  ;;  %v1158_v23 = vadd.f32 %v1152_v13, %v1150_v33  ;;  %v1123_v4 = vrot.slane %v1122_v7, 4 }
 0x116   :  { %v1104_v43 = vadd.f32 %v1094_v62, %v787_v49 }
 0x117   :  { %v1105_v8 = vadd.f32 %v1059_v34, %v752_v44  ;;  %v1159_v46 = vrot.slane %v1158_v23, 4  ;;  %v1124_v14 = vadd.f32 %v1123_v4, %v1122_v7 }
 0x118   :  { %v4310_v3 = vadd.f32 %v4300_v29, %v1104_v43 }
 0x119   :  { %v4346_v40 = vadd.f32 %v4263_v37, %v1105_v8  ;;  %v1160_v25 = vadd.f32 %v1159_v46, %v1158_v23  ;;  %v1125_v59 = vrot.slane %v1124_v14, 2 }
 0x11a   :  { %v1153_v35 = vmul.f32 %v4310_v3, %v4310_v3  ;;  %v1129_v36 = vadd.f32 %v4310_v3, %v4320_v24 }
 0x11b   :  { %v1077_v9 = vpop.f32.mrf.mxu2  ;;  %v1096_v55 = vpop.f32.mrf.mxu3  ;;  %v1154_v42 = vmul.f32 %v4346_v40, %v4346_v40  ;;  %v1161_v62 = vrot.slane %v1160_v25, 2  ;;  %v1126_v50 = vadd.f32 %v1125_v59, %v1124_v14 }
 0x11c   :  { %v1041_v11 = vpop.f32.mrf.mxu0  ;;  %v1060_v39 = vpop.f32.mrf.mxu1  ;;  %v1097_v28 = vadd.f32 %v1096_v55, %v1077_v9  ;;  %v1165_v45 = vadd.f32 %v1153_v35, %v1151_v27  ;;  %v1130_v18 = vrot.slane %v1129_v36, 4 }
 0x11d   :  { %v1061_v54 = vadd.f32 %v1060_v39, %v1041_v11  ;;  %v1162_v33 = vadd.f32 %v1161_v62, %v1160_v25  ;;  %v1127_v55 = vrot.slane %v1126_v50, 1 }
 0x11e   :  { %v1106_v17 = vadd.f32 %v1097_v28, %v790_v30  ;;  %v1166_v57 = vrot.slane %v1165_v45, 4  ;;  %v1131_v2 = vadd.f32 %v1130_v18, %v1129_v36 }
 0x11f   :  { %v1107_v60 = vadd.f32 %v1061_v54, %v754_v20  ;;  %v1163_v35 = vrot.slane %v1162_v33, 1  ;;  %v1128_v21 = vadd.f32 %v1127_v55, %v1126_v50  ;;  %v3725_v55 = vld [vmem:[#allocation6 + $0x1f4] sm:$0xf] }
 0x120   :  { %v4361_v63 = vadd.f32 %v4300_v29, %v1106_v17  ;;  %v1167_v0 = vadd.f32 %v1166_v57, %v1165_v45  ;;  %v1132_v6 = vrot.slane %v1131_v2, 2 }
 0x121   :  { %v4351_v26 = vadd.f32 %v4263_v37, %v1107_v60  ;;  %v1164_v22 = vadd.f32 %v1163_v35, %v1162_v33  ;;  %v3213_v33 = vld [vmem:[#allocation6 + $0x170] sm:$0xf]  ;;  %v3279_v35 = vld [vmem:[#allocation6 + $0x1f8] sm:$0xf0] }
 0x122   :  { %v1155_v34 = vmul.f32 %v4361_v63, %v4361_v63  ;;  %v1133_v20 = vadd.f32 %v1132_v6, %v1131_v2 }
 0x123   :  { %v1136_v31 = vadd.f32 %v4351_v26, %v4346_v40  ;;  %v1156_v47 = vmul.f32 %v4351_v26, %v4351_v26  ;;  %v1079_v38 = vpop.f32.mrf.mxu2  ;;  %v1098_v53 = vpop.f32.mrf.mxu3 }
 0x124   :  { %v1099_v58 = vadd.f32 %v1098_v53, %v1079_v38  ;;  %v1134_v48 = vrot.slane %v1133_v20, 1 }
 0x125   :  { %v1137_v37 = vrot.slane %v1136_v31, 4  ;;  %v1172_v49 = vadd.f32 %v1156_v47, %v1154_v42 }
 0x126   :  { %v1108_v1 = vadd.f32 %v1099_v58, %v792_v19 }
 0x127   :  { %v1138_v13 = vadd.f32 %v1137_v37, %v1136_v31  ;;  %v1173_v52 = vrot.slane %v1172_v49, 4  ;;  %v1135_v31 = vadd.f32 %v1134_v48, %v1133_v20  ;;  %v3724_v20 = vld [vmem:[#allocation6 + $0x1e4] sm:$0xf0] }
 0x128   :  { %v4364_v43 = vadd.f32 %v4300_v29, %v1108_v1  ;;  %v1168_v29 = vrot.slane %v1167_v0, 2 }
 0x129   :  { %v1139_v32 = vrot.slane %v1138_v13, 2  ;;  %v1174_v51 = vadd.f32 %v1173_v52, %v1172_v49 }
 0x12a   :  { %v1143_v5 = vadd.f32 %v4364_v43, %v4361_v63  ;;  %v1157_v44 = vmul.f32 %v4364_v43, %v4364_v43  ;;  %v1169_v54 = vadd.f32 %v1168_v29, %v1167_v0  ;;  %v3215_v29 = vld [vmem:[#allocation6 + $0x178] sm:$0xf0] }
 0x12b   :  { %v1140_v7 = vadd.f32 %v1139_v32, %v1138_v13  ;;  %v1175_v23 = vrot.slane %v1174_v51, 2 }
 0x12c   :  { %v1144_v8 = vrot.slane %v1143_v5, 4  ;;  %v1179_v9 = vadd.f32 %v1157_v44, %v1155_v34  ;;  %v1170_v25 = vrot.slane %v1169_v54, 1  ;;  %v3710_v34 = vld [vmem:[#allocation6 + $0x174] sm:$0xf0] }
 0x12d   :  { %v1141_v10 = vrot.slane %v1140_v7, 1  ;;  %v1176_v11 = vadd.f32 %v1175_v23, %v1174_v51  ;;  %v3726_v23 = vld [vmem:[#allocation6 + $0x1f4] sm:$0xf0] }
 0x12e   :  { %v1145_v39 = vadd.f32 %v1144_v8, %v1143_v5  ;;  %v1180_v12 = vrot.slane %v1179_v9, 4  ;;  %v1171_v47 = vadd.f32 %v1170_v25, %v1169_v54  ;;  %v3277_v5 = vld [vmem:[#allocation6 + $0x1f0] sm:$0xf]  ;;  %v3705_v25 = vld [vmem:[#allocation6 + $0x154] sm:$0xf] }
 0x12f   :  { %v1142_v15 = vadd.f32 %v1141_v10, %v1140_v7  ;;  %v1177_v16 = vrot.slane %v1176_v11, 1  ;;  %v3214_v7 = vor.u32 %v3710_v34, %v3213_v33  ;;  %v3278_v8 = vor.u32 %v3726_v23, %v3277_v5  ;;  %v3703_v33 = vld [vmem:[#allocation6 + $0x144] sm:$0xf]  ;;  %v3191_v34 = vld [vmem:[#allocation6 + $0x148] sm:$0xf0] }
 0x130   :  { %v1146_v4 = vrot.slane %v1145_v39, 2  ;;  %v1181_v46 = vadd.f32 %v1180_v12, %v1179_v9  ;;  %v3709_v9 = vld [vmem:[#allocation6 + $0x174] sm:$0xf]  ;;  %v3708_v12 = vld [vmem:[#allocation6 + $0x164] sm:$0xf0]  ;;  %v3194_v23 = vor.u32 %v3703_v33, %v3191_v34 }
 0x131   :  { %v1178_v27 = vadd.f32 %v1177_v16, %v1176_v11  ;;  %v1191_v60 = vsel %vm1190_vm11, %v1142_v15, %v1128_v21  ;;  %1739 = vmatpush.bf16.msra.mxu0 %v3214_v7  ;;  %v3218_v10 = vor.u32 %v3709_v9, %v3215_v29  ;;  %1758 = vmatpush.bf16.msra.mxu1 %v3278_v8  ;;  %v3269_v15 = vld [vmem:[#allocation6 + $0x1e0] sm:$0xf]  ;;  %v3719_v8 = vld [vmem:[#allocation6 + $0x1c4] sm:$0xf]  ;;  %v3255_v9 = vld [vmem:[#allocation6 + $0x1c8] sm:$0xf0] }
 0x132   :  { %v1147_v28 = vadd.f32 %v1146_v4, %v1145_v39  ;;  %v1182_v36 = vrot.slane %v1181_v46, 2  ;;  %v3282_v11 = vor.u32 %v3725_v55, %v3279_v35  ;;  %v3205_v39 = vld [vmem:[#allocation6 + $0x160] sm:$0xf]  ;;  %v3707_v4 = vld [vmem:[#allocation6 + $0x164] sm:$0xf]  ;;  %v3270_v54 = vor.u32 %v3724_v20, %v3269_v15 }
 0x133   :  { %v1200_v30 = vsel %vm1199_vm12, %v1178_v27, %v1164_v22  ;;  %1777 = vmatpush.bf16.msra.mxu2 %v3218_v10  ;;  %v3206_v16 = vor.u32 %v3708_v12, %v3205_v39  ;;  %v3723_v22 = vld [vmem:[#allocation6 + $0x1e4] sm:$0xf]  ;;  %v3271_v27 = vld [vmem:[#allocation6 + $0x1e8] sm:$0xf0]  ;;  %v3258_v55 = vor.u32 %v3719_v8, %v3255_v9  ;;  %v3181_v10 = vld [vmem:[#allocation6 + $0x130] sm:$0xf] }
 0x134   :  { %v1205_v45 = vsel %vm1204_vm13, %v1191_v60, %v1200_v30  ;;  %v1148_v14 = vrot.slane %v1147_v28, 1  ;;  %v1183_v17 = vadd.f32 %v1182_v36, %v1181_v46  ;;  %v3207_v46 = vld [vmem:[#allocation6 + $0x168] sm:$0xf0]  ;;  %1796 = vmatpush.bf16.msra.mxu3 %v3282_v11  ;;  %v3197_v36 = vld [vmem:[#allocation6 + $0x150] sm:$0xf] }
 0x135   :  { %1255 = vmatmul.f32.vlgmr.msrb.gmra.mxu0 %v1205_v45  ;;  %v3210_v21 = vor.u32 %v3707_v4, %v3207_v46  ;;  %1759 = vmatpush.bf16.msra.mxu1 %v3270_v54  ;;  %v3706_v60 = vld [vmem:[#allocation6 + $0x154] sm:$0xf0]  ;;  %v3261_v30 = vld [vmem:[#allocation6 + $0x1d0] sm:$0xf]  ;;  %v3701_v46 = vld [vmem:[#allocation6 + $0x134] sm:$0xf] }
 0x136   :  { %v1149_v18 = vadd.f32 %v1148_v14, %v1147_v28  ;;  %v1184_v42 = vrot.slane %v1183_v17, 1  ;;  %1740 = vmatpush.bf16.msra.mxu0 %v3206_v16  ;;  %v3274_v28 = vor.u32 %v3723_v22, %v3271_v27  ;;  %v3198_v45 = vor.u32 %v3706_v60, %v3197_v36  ;;  %v3722_v14 = vld [vmem:[#allocation6 + $0x1d4] sm:$0xf0]  ;;  %v3245_v16 = vld [vmem:[#allocation6 + $0x1b0] sm:$0xf] }
 0x137   :  { %1778 = vmatpush.bf16.msra.mxu2 %v3210_v21  ;;  %v3702_v35 = vld [vmem:[#allocation6 + $0x134] sm:$0xf0]  ;;  %v3183_v54 = vld [vmem:[#allocation6 + $0x138] sm:$0xf0]  ;;  %v3717_v21 = vld [vmem:[#allocation6 + $0x1b4] sm:$0xf] }
 0x138   :  { %v1185_v38 = vadd.f32 %v1184_v42, %v1183_v17  ;;  %v1192_v53 = vsel %vm1190_vm11, %v1149_v18, %v1135_v31  ;;  %v3199_v17 = vld [vmem:[#allocation6 + $0x158] sm:$0xf0]  ;;  %1797 = vmatpush.bf16.msra.mxu3 %v3274_v28  ;;  %v3262_v31 = vor.u32 %v3722_v14, %v3261_v30  ;;  %v3182_v15 = vor.u32 %v3702_v35, %v3181_v10  ;;  %v3718_v20 = vld [vmem:[#allocation6 + $0x1b4] sm:$0xf0]  ;;  %v3173_v14 = vld [vmem:[#allocation6 + $0x120] sm:$0xf] }
 0x139   :  { %v3246_v4 = vor.u32 %v3718_v20, %v3245_v16  ;;  %v3186_v60 = vor.u32 %v3701_v46, %v3183_v54  ;;  %v3697_v33 = vld [vmem:[#allocation6 + $0x114] sm:$0xf]  ;;  %v3696_v10 = vld [vmem:[#allocation6 + $0x104] sm:$0xf0]  ;;  %v3221_v35 = vld [vmem:[#allocation6 + $0x180] sm:$0xf] }
 0x13a   :  { %v1201_v19 = vsel %vm1199_vm12, %v1185_v38, %v1171_v47  ;;  %v3202_v47 = vor.u32 %v3705_v25, %v3199_v17  ;;  %v3721_v38 = vld [vmem:[#allocation6 + $0x1d4] sm:$0xf]  ;;  %1741 = vmatpush.bf16.msra.mxu0 %v3198_v45  ;;  %1760 = vmatpush.bf16.msra.mxu1 %v3262_v31  ;;  %v3700_v25 = vld [vmem:[#allocation6 + $0x124] sm:$0xf0]  ;;  %v3237_v17 = vld [vmem:[#allocation6 + $0x1a0] sm:$0xf] }
 0x13b   :  { %v1206_v57 = vsel %vm1204_vm13, %v1192_v53, %v1201_v19  ;;  %v3263_v53 = vld [vmem:[#allocation6 + $0x1d8] sm:$0xf0]  ;;  %v4405_v19 = vld [vmem:[%s4768_s3 + $0x1] ss:$8 sm:$0x3] }
 0x13c   :  { %1275 = vmatmul.f32.vlgmr.msrb.gmra.mxu1 %v1206_v57  ;;  %1779 = vmatpush.bf16.msra.mxu2 %v3202_v47  ;;  %v1362_v5 = vperm.slane %v4405_v19, 0  ;;  %v1363_v12 = vperm.slane %v4405_v19, 1  ;;  %v3174_v47 = vor.u32 %v3700_v25, %v3173_v14  ;;  %v3175_v19 = vld [vmem:[#allocation6 + $0x128] sm:$0xf0] }
 0x13d   :  { %v3159_v16 = vld [vmem:[#allocation6 + $0x108] sm:$0xf0] }
 0x13e   :  { %v3223_v46 = vld [vmem:[#allocation6 + $0x188] sm:$0xf0] }
 0x140   :  { %1780 = vmatpush.bf16.msra.mxu2 %v3194_v23  ;;  %v3231_v23 = vld [vmem:[#allocation6 + $0x198] sm:$0xf0] }
 0x144   :  { %1781 = vmatpush.bf16.msra.mxu2 %v3186_v60 }
 0x1b2   :  { %v1256_v58 = vpop.f32.mrf.mxu0 }
 0x1b9   :  { %v1276_v59 = vpop.f32.mrf.mxu1 }
 0x1ba   :  { %v1277_v37 = vadd.f32 %v1276_v59, %v1256_v58  ;;  %v3266_v58 = vor.u32 %v3721_v38, %v3263_v53  ;;  %v3716_v38 = vld [vmem:[#allocation6 + $0x1a4] sm:$0xf0]  ;;  %v3699_v53 = vld [vmem:[#allocation6 + $0x124] sm:$0xf] }
 0x1bc   :  { %3151 = vmatmul.msk.f32.vlgmr.msrb.gmra.mxu2 %vm1283_vm14, %v1277_v37  ;;  %3152 = vmatmul.msk.f32.vlgmr.msrb.gmra.mxu3 %vm1283_vm14, %v1277_v37  ;;  %v3189_v37 = vld [vmem:[#allocation6 + $0x140] sm:$0xf] }
 0x1bd   :  { %1798 = vmatpush.bf16.msra.mxu3 %v3266_v58  ;;  %v3238_v58 = vor.u32 %v3716_v38, %v3237_v17  ;;  %v3359_v17 = vld [vmem:[#allocation6 + $0x78] sm:$0xf0] }
 0x1c1   :  { %1799 = vmatpush.bf16.msra.mxu3 %v3258_v55  ;;  %v3157_v55 = vld [vmem:[#allocation6 + $0x100] sm:$0xf] }
 0x23f   :  { %v4380_v49 = vpop.f32.mrf.mxu2  ;;  %v4382_v62 = vpop.f32.mrf.mxu3 }
 0x240   :  { %v1327_v1 = vmul.f32 %v4380_v49, %v4380_v49  ;;  %v1328_v2 = vmul.f32 %v4382_v62, %v4382_v62 }
 0x242   :  { %v1331_v13 = vrot.slane %v1327_v1, 6  ;;  %v1332_v52 = vrot.slane %v1328_v2, 6  ;;  %v3704_v1 = vld [vmem:[#allocation6 + $0x144] sm:$0xf0] }
 0x244   :  { %v1335_v0 = vsub.f32 %v4380_v49, %v1331_v13  ;;  %v1336_v32 = vsub.f32 %v4382_v62, %v1332_v52  ;;  %v3190_v13 = vor.u32 %v3704_v1, %v3189_v37  ;;  %v3253_v52 = vld [vmem:[#allocation6 + $0x1c0] sm:$0xf]  ;;  %v3239_v37 = vld [vmem:[#allocation6 + $0x1a8] sm:$0xf0]  ;;  %v3165_v1 = vld [vmem:[#allocation6 + $0x110] sm:$0xf] }
 0x246   :  { %v1337_v51 = vmax.f32 %v1335_v0, 0.0  ;;  %v1338_v50 = vmax.f32 %v1336_v32, 0.0  ;;  %v3720_v0 = vld [vmem:[#allocation6 + $0x1c4] sm:$0xf0]  ;;  %1742 = vmatpush.bf16.msra.mxu0 %v3190_v13 }
 0x247   :  { %v4414_v32 = vld [vmem:[%s4768_s3 + $0x2] ss:$8 sm:$0x3] }
 0x248   :  { %v4390_v44 = vadd.f32 1e-05, %v1337_v51  ;;  %v4392_v6 = vadd.f32 1e-05, %v1338_v50  ;;  %v3254_v50 = vor.u32 %v3720_v0, %v3253_v52  ;;  %v1377_v22 = vperm.slane %v4414_v32, 0 }
 0x249   :  { %v1378_v36 = vperm.slane %v4414_v32, 1  ;;  %v3698_v52 = vld [vmem:[#allocation6 + $0x114] sm:$0xf0]  ;;  %v3229_v0 = vld [vmem:[#allocation6 + $0x190] sm:$0xf] }
 0x24a   :  { %3767 = vrsqrt.f32 %v4390_v44  ;;  %vm1347_vm3 = vweird.f32 %v4390_v44  ;;  %1761 = vmatpush.bf16.msra.mxu1 %v3254_v50  ;;  %vm1357_vm6 = vweird.f32 %v4392_v6  ;;  %1743 = vmatpush.bf16.msra.mxu0 %v3182_v15  ;;  %v3714_v50 = vld [vmem:[#allocation6 + $0x194] sm:$0xf0]  ;;  %v3695_v15 = vld [vmem:[#allocation6 + $0x104] sm:$0xf] }
 0x24b   :  { %3769 = vrsqrt.f32 %v4392_v6  ;;  %v3230_v34 = vor.u32 %v3714_v50, %v3229_v0 }
 0x24e   :  { %1762 = vmatpush.bf16.msra.mxu1 %v3246_v4  ;;  %1744 = vmatpush.bf16.msra.mxu0 %v3174_v47  ;;  %v3711_v4 = vld [vmem:[#allocation6 + $0x184] sm:$0xf] }
 0x250   :  { %v4396_v48 = vpop.eup %3767 }
 0x251   :  { %v4398_v18 = vpop.eup %3769  ;;  %v1342_v42 = vmul.f32 %v4396_v48, %v4390_v44  ;;  %vm1348_vm15 = vweird.f32 %v4396_v48 }
 0x252   :  { %v1352_v57 = vmul.f32 %v4398_v18, %v4392_v6  ;;  %vm1358_vm4 = vweird.f32 %v4398_v18  ;;  %vm4422_vm5 = vmor %vm1347_vm3, %vm1348_vm15  ;;  %v3247_v6 = vld [vmem:[#allocation6 + $0x1b8] sm:$0xf0]  ;;  %1763 = vmatpush.bf16.msra.mxu1 %v3238_v58 }
 0x253   :  { %v1343_v59 = vmul.f32 %v4396_v48, %v1342_v42  ;;  %vm4433_vm0 = vmor %vm1357_vm6, %vm1358_vm4  ;;  %v3250_v45 = vor.u32 %v3717_v21, %v3247_v6  ;;  %v3226_v21 = vor.u32 %v3711_v4, %v3223_v46 }
 0x254   :  { %v1353_v2 = vmul.f32 %v4398_v18, %v1352_v57 }
 0x255   :  { %v1344_v51 = vmul.f32 0.5, %v1343_v59  ;;  %1800 = vmatpush.bf16.msra.mxu3 %v3250_v45  ;;  %v3178_v59 = vor.u32 %v3699_v53, %v3175_v19  ;;  %v3357_v53 = vld [vmem:[#allocation6 + $0x70] sm:$0xf]  ;;  %v3678_v19 = vld [vmem:[#allocation6 + $0x74] sm:$0xf0] }
 0x256   :  { %v1354_v7 = vmul.f32 0.5, %v1353_v2  ;;  %1764 = vmatpush.bf16.msra.mxu1 %v3230_v34 }
 0x257   :  { %v1345_v29 = vsub.f32 1.5, %v1344_v51  ;;  %1782 = vmatpush.bf16.msra.mxu2 %v3178_v59 }
 0x258   :  { %v1355_v39 = vsub.f32 1.5, %v1354_v7  ;;  %v3713_v7 = vld [vmem:[#allocation6 + $0x194] sm:$0xf] }
 0x259   :  { %v1346_v44 = vmul.f32 %v4396_v48, %v1345_v29  ;;  %v3234_v29 = vor.u32 %v3713_v7, %v3231_v23  ;;  %v3413_v7 = vld [vmem:[#allocation6 + $0xe0] sm:$0xf]  ;;  %v3692_v23 = vld [vmem:[#allocation6 + $0xe4] sm:$0xf0] }
 0x25a   :  { %v1356_v27 = vmul.f32 %v4398_v18, %v1355_v39  ;;  %v3158_v39 = vor.u32 %v3696_v10, %v3157_v55  ;;  %v3673_v55 = vld [vmem:[#allocation6 + $0x54] sm:$0xf]  ;;  %v3343_v10 = vld [vmem:[#allocation6 + $0x58] sm:$0xf0] }
 0x25b   :  { %v1350_v30 = vsel %vm4422_vm5, %v4396_v48, %v1346_v44  ;;  %v3715_v48 = vld [vmem:[#allocation6 + $0x1a4] sm:$0xf] }
 0x25c   :  { %v1366_v42 = vmul.f32 %v1362_v5, %v1350_v30  ;;  %v1360_v31 = vsel %vm4433_vm0, %v4398_v18, %v1356_v27  ;;  %v3242_v13 = vor.u32 %v3715_v48, %v3239_v37  ;;  %v3166_v18 = vor.u32 %v3698_v52, %v3165_v1  ;;  %v3167_v5 = vld [vmem:[#allocation6 + $0x118] sm:$0xf0]  ;;  %v3694_v1 = vld [vmem:[#allocation6 + $0xf4] sm:$0xf0] }
 0x25d   :  { %v1367_v57 = vmul.f32 %v1363_v12, %v1360_v31  ;;  %v3170_v9 = vor.u32 %v3697_v33, %v3167_v5  ;;  %v3712_v12 = vld [vmem:[#allocation6 + $0x184] sm:$0xf0]  ;;  %v3423_v31 = vld [vmem:[#allocation6 + $0xf8] sm:$0xf0]  ;;  %v3415_v33 = vld [vmem:[#allocation6 + $0xe8] sm:$0xf0] }
 0x25e   :  { %v1370_v2 = vrot.slane %v1366_v42, 2  ;;  %1383 = vst [vmem:[#allocation1] sm:$0xff] %v1366_v42  ;;  %1801 = vmatpush.bf16.msra.mxu3 %v3242_v13  ;;  %1745 = vmatpush.bf16.msra.mxu0 %v3166_v18  ;;  %v3222_v44 = vor.u32 %v3712_v12, %v3221_v35  ;;  %v3693_v42 = vld [vmem:[#allocation6 + $0xf4] sm:$0xf] }
 0x25f   :  { %v1371_v51 = vrot.slane %v1367_v57, 2  ;;  %1384 = vst [vmem:[#allocation1 + $0x9] sm:$0xff] %v1367_v57  ;;  %1783 = vmatpush.bf16.msra.mxu2 %v3170_v9  ;;  %v3421_v57 = vld [vmem:[#allocation6 + $0xf0] sm:$0xf]  ;;  %v3426_v0 = vor.u32 %v3693_v42, %v3423_v31  ;;  %v3689_v35 = vld [vmem:[#allocation6 + $0xd4] sm:$0xf] }
 0x260   :  { %v1374_v11 = vmul.f32 %v1370_v2, %v4380_v49  ;;  %1765 = vmatpush.bf16.msra.mxu1 %v3222_v44  ;;  %v3351_v2 = vld [vmem:[#allocation6 + $0x68] sm:$0xf0]  ;;  %v3422_v18 = vor.u32 %v3694_v1, %v3421_v57  ;;  %v3674_v44 = vld [vmem:[#allocation6 + $0x54] sm:$0xf0] }
 0x261   :  { %v1375_v8 = vmul.f32 %v1371_v51, %v4382_v62  ;;  %v3162_v62 = vor.u32 %v3695_v15, %v3159_v16  ;;  %v3358_v51 = vor.u32 %v3678_v19, %v3357_v53  ;;  %v3407_v16 = vld [vmem:[#allocation6 + $0xd8] sm:$0xf0] }
 0x262   :  { %1802 = vmatpush.bf16.msra.mxu3 %v3234_v29  ;;  %v1381_v27 = vsub.f32 %v1377_v22, %v1374_v11  ;;  %1746 = vmatpush.bf16.msra.mxu0 %v3158_v39 }
 0x263   :  { %v1382_v20 = vsub.f32 %v1378_v36, %v1375_v8  ;;  %v3677_v36 = vld [vmem:[#allocation6 + $0x74] sm:$0xf]  ;;  %1784 = vmatpush.bf16.msra.mxu2 %v3162_v62 }
 0x264   :  { %v3362_v52 = vor.u32 %v3677_v36, %v3359_v17  ;;  %2012 = vmatpush.bf16.msrb.mxu1 %v3422_v18  ;;  %v3335_v17 = vld [vmem:[#allocation6 + $0x48] sm:$0xf0]  ;;  %v3669_v18 = vld [vmem:[#allocation6 + $0x34] sm:$0xf] }
 0x265   :  { %v1407_v54 = vrot.slane %v1382_v20, 7  ;;  %v3341_v20 = vld [vmem:[#allocation6 + $0x50] sm:$0xf] }
 0x266   :  { %v1386_v28 = vld [vmem:[#allocation1 + $0x2] ss:$9 sm:$0xff]  ;;  %1803 = vmatpush.bf16.msra.mxu3 %v3226_v21  ;;  %1993 = vmatpush.bf16.msrb.mxu0 %v3358_v51  ;;  %v3342_v57 = vor.u32 %v3674_v44, %v3341_v20 }
 0x267   :  { %v1388_v49 = vld [vmem:[#allocation1 + $0x3] ss:$9 sm:$0xff]  ;;  %v1389_v60 = vperm.slane %v1386_v28, 0  ;;  %v1390_v6 = vperm.slane %v1386_v28, 1  ;;  %v1409_v14 = vsel %vm76_vm1, %v1381_v27, %v1407_v54  ;;  %v1410_v25 = vsel %vm1190_vm11, %v1381_v27, %v1407_v54  ;;  %2031 = vmatpush.bf16.msrb.mxu2 %v3362_v52  ;;  %v3405_v21 = vld [vmem:[#allocation6 + $0xd0] sm:$0xf] }
 0x268   :  { %v1391_v30 = vperm.slane %v1388_v49, 0  ;;  %v1392_v45 = vperm.slane %v1388_v49, 1  ;;  %v1412_v13 = vperm.slane %v1409_v14, 0  ;;  %v3383_v44 = vld [vmem:[#allocation6 + $0xa8] sm:$0xf0] }
 0x269   :  { %v1397_v32 = vmul.f32 %v1389_v60, %v4289_v56  ;;  %v1398_v22 = vmul.f32 %v1390_v6, %v4320_v24  ;;  %v1399_v47 = vmul.f32 %v1389_v60, %v4277_v41  ;;  %v1400_v38 = vmul.f32 %v1390_v6, %v4310_v3  ;;  %v3675_v56 = vld [vmem:[#allocation6 + $0x64] sm:$0xf]  ;;  %v3690_v6 = vld [vmem:[#allocation6 + $0xd4] sm:$0xf0] }
 0x26a   :  { %v1401_v58 = vmul.f32 %v1391_v30, %v4346_v40  ;;  %v1402_v59 = vmul.f32 %v1392_v45, %v4361_v63  ;;  %v1403_v48 = vmul.f32 %v1391_v30, %v4351_v26  ;;  %v1404_v37 = vmul.f32 %v1392_v45, %v4364_v43  ;;  %v3691_v3 = vld [vmem:[#allocation6 + $0xe4] sm:$0xf]  ;;  %v3349_v26 = vld [vmem:[#allocation6 + $0x60] sm:$0xf]  ;;  %v3676_v43 = vld [vmem:[#allocation6 + $0x64] sm:$0xf0]  ;;  %2050 = vmatpush.bf16.msrb.mxu3 %v3426_v0 }
 0x26b   :  { %v1411_v24 = vrot.slane %v1410_v25, 1  ;;  %v1413_v41 = vperm.slane %v1409_v14, 1  ;;  %v3354_v50 = vor.u32 %v3675_v56, %v3351_v2  ;;  %v1420_v63 = vadd.f32 %v1412_v13, %v1397_v32  ;;  %v3671_v25 = vld [vmem:[#allocation6 + $0x44] sm:$0xf] }
 0x26c   :  { %v1422_v8 = vadd.f32 %v1412_v13, %v1399_v47  ;;  %v3418_v29 = vor.u32 %v3691_v3, %v3415_v33  ;;  %v3350_v36 = vor.u32 %v3676_v43, %v3349_v26  ;;  %v3414_v14 = vor.u32 %v3692_v23, %v3413_v7  ;;  %v3687_v47 = vld [vmem:[#allocation6 + $0xc4] sm:$0xf]  ;;  %v3688_v13 = vld [vmem:[#allocation6 + $0xc4] sm:$0xf0]  ;;  %v3391_v43 = vld [vmem:[#allocation6 + $0xb8] sm:$0xf0] }
 0x26d   :  { %v1414_v40 = vperm.slane %v1411_v24, 0  ;;  %v1415_v34 = vperm.slane %v1411_v24, 1  ;;  %v1421_v5 = vadd.f32 %v1413_v41, %v1398_v22  ;;  %v1423_v9 = vadd.f32 %v1413_v41, %v1400_v38  ;;  %2032 = vmatpush.bf16.msrb.mxu2 %v3354_v50  ;;  %v3399_v38 = vld [vmem:[#allocation6 + $0xc8] sm:$0xf0]  ;;  %v3397_v24 = vld [vmem:[#allocation6 + $0xc0] sm:$0xf] }
 0x26e   :  { %v1428_v4 = vmax.f32 %v1420_v63, 0.0  ;;  %v1430_v62 = vmax.f32 %v1422_v8, 0.0  ;;  %2051 = vmatpush.bf16.msrb.mxu3 %v3418_v29  ;;  %v3346_v32 = vor.u32 %v3673_v55, %v3343_v10  ;;  %v3410_v22 = vor.u32 %v3689_v35, %v3407_v16  ;;  %1994 = vmatpush.bf16.msrb.mxu0 %v3350_v36  ;;  %v3685_v63 = vld [vmem:[#allocation6 + $0xb4] sm:$0xf]  ;;  %v3325_v7 = vld [vmem:[#allocation6 + $0x30] sm:$0xf] }
 0x26f   :  { %v1424_v11 = vadd.f32 %v1414_v40, %v1401_v58  ;;  %v1425_v39 = vadd.f32 %v1415_v34, %v1402_v59  ;;  %v1426_v12 = vadd.f32 %v1414_v40, %v1403_v48  ;;  %v1427_v15 = vadd.f32 %v1415_v34, %v1404_v37  ;;  %2013 = vmatpush.bf16.msrb.mxu1 %v3414_v14  ;;  %v3333_v59 = vld [vmem:[#allocation6 + $0x40] sm:$0xf]  ;;  %v3672_v48 = vld [vmem:[#allocation6 + $0x44] sm:$0xf0]  ;;  %v3327_v34 = vld [vmem:[#allocation6 + $0x38] sm:$0xf0] }
 0x270   :  { %v1429_v46 = vmax.f32 %v1421_v5, 0.0  ;;  %v1431_v54 = vmax.f32 %v1423_v9, 0.0  ;;  %v3406_v58 = vor.u32 %v3690_v6, %v3405_v21  ;;  %v3338_v2 = vor.u32 %v3671_v25, %v3335_v17  ;;  %v3670_v8 = vld [vmem:[#allocation6 + $0x34] sm:$0xf0]  ;;  %v3389_v9 = vld [vmem:[#allocation6 + $0xb0] sm:$0xf] }
 0x271   :  { %v1432_v27 = vmax.f32 %v1424_v11, 0.0  ;;  %v1433_v28 = vmax.f32 %v1425_v39, 0.0  ;;  %v1434_v49 = vmax.f32 %v1426_v12, 0.0  ;;  %v1435_v60 = vmax.f32 %v1427_v15, 0.0  ;;  %2033 = vmatpush.bf16.msrb.mxu2 %v3346_v32  ;;  %v3686_v10 = vld [vmem:[#allocation6 + $0xb4] sm:$0xf0] }
 0x272   :  { %v1440_v30 = vpack.c.bf16 %v1429_v46, %v1428_v4  ;;  %v1441_v45 = vpack.c.bf16 %v1431_v54, %v1430_v62  ;;  %2052 = vmatpush.bf16.msrb.mxu3 %v3410_v22  ;;  %v3402_v3 = vor.u32 %v3687_v47, %v3399_v38  ;;  %1995 = vmatpush.bf16.msrb.mxu0 %v3342_v57  ;;  %v3667_v35 = vld [vmem:[#allocation6 + $0x24] sm:$0xf]  ;;  %v3319_v12 = vld [vmem:[#allocation6 + $0x28] sm:$0xf0]  ;;  %v3317_v62 = vld [vmem:[#allocation6 + $0x20] sm:$0xf] }
 0x273   :  { %v1442_v42 = vpack.c.bf16 %v1433_v28, %v1432_v27  ;;  %v1443_v31 = vpack.c.bf16 %v1435_v60, %v1434_v49  ;;  %2014 = vmatpush.bf16.msrb.mxu1 %v3406_v58  ;;  %v3334_v33 = vor.u32 %v3672_v48, %v3333_v59  ;;  %v3398_v40 = vor.u32 %v3688_v13, %v3397_v24  ;;  %v3683_v15 = vld [vmem:[#allocation6 + $0xa4] sm:$0xf]  ;;  %v3668_v28 = vld [vmem:[#allocation6 + $0x24] sm:$0xf0]  ;;  %v3381_v49 = vld [vmem:[#allocation6 + $0xa0] sm:$0xf] }
 0x274   :  { %v1449_v53 = vrot.slane %v1440_v30, 7  ;;  %v1451_v19 = vrot.slane %v1441_v45, 7  ;;  %v3330_v26 = vor.u32 %v3669_v18, %v3327_v34  ;;  %v3394_v23 = vor.u32 %v3685_v63, %v3391_v43  ;;  %v3684_v6 = vld [vmem:[#allocation6 + $0xa4] sm:$0xf0]  ;;  %v3665_v30 = vld [vmem:[#allocation6 + $0x14] sm:$0xf] }
 0x275   :  { %v1454_v1 = vrot.slane %v1442_v42, 7  ;;  %v1456_v56 = vrot.slane %v1443_v31, 7  ;;  %2034 = vmatpush.bf16.msrb.mxu2 %v3338_v2  ;;  %v3326_v55 = vor.u32 %v3670_v8, %v3325_v7  ;;  %v3390_v39 = vor.u32 %v3686_v10, %v3389_v9  ;;  %v3311_v45 = vld [vmem:[#allocation6 + $0x18] sm:$0xf0]  ;;  %v3681_v42 = vld [vmem:[#allocation6 + $0x94] sm:$0xf] }
 0x276   :  { %v1450_v41 = vrot.slane %v1449_v53, 4  ;;  %v1453_v52 = vrot.slane %v1451_v19, 4  ;;  %1465 = vst [vmem:[#allocation2] sm:$0xee] %v1449_v53  ;;  %2053 = vmatpush.bf16.msrb.mxu3 %v3402_v3  ;;  %1996 = vmatpush.bf16.msrb.mxu0 %v3334_v33  ;;  %v3322_v20 = vor.u32 %v3667_v35, %v3319_v12  ;;  %v3386_v46 = vor.u32 %v3683_v15, %v3383_v44  ;;  %v3375_v31 = vld [vmem:[#allocation6 + $0x98] sm:$0xf0] }
 0x277   :  { %v1455_v0 = vrot.slane %v1454_v1, 4  ;;  %v1458_v51 = vrot.slane %v1456_v56, 4  ;;  %1468 = vst [vmem:[#allocation2 + $0x18] sm:$0xee] %v1454_v1  ;;  %2015 = vmatpush.bf16.msrb.mxu1 %v3398_v40  ;;  %v3318_v60 = vor.u32 %v3668_v28, %v3317_v62  ;;  %v3382_v17 = vor.u32 %v3684_v6, %v3381_v49  ;;  %v3309_v57 = vld [vmem:[#allocation6 + $0x10] sm:$0xf] }
 0x278   :  { %v4466_v50 = vsel %vm4460_vm7, %v1450_v41, %v1451_v19  ;;  %1467 = vst [vmem:[#allocation2 + $0x10] sm:$0x11] %v1453_v52  ;;  %v3314_v19 = vor.u32 %v3665_v30, %v3311_v45  ;;  %v3666_v58 = vld [vmem:[#allocation6 + $0x14] sm:$0xf0]  ;;  %v3378_v59 = vor.u32 %v3681_v42, %v3375_v31  ;;  %v3373_v48 = vld [vmem:[#allocation6 + $0x90] sm:$0xf] }
 0x279   :  { %v4470_v5 = vsel %vm4460_vm7, %v1455_v0, %v1456_v56  ;;  %1466 = vst [vmem:[#allocation2 + $0x8] sm:$0xff] %v4466_v50  ;;  %v1519_v29 = vrot.slane %v4466_v50, 5  ;;  %2035 = vmatpush.bf16.msrb.mxu2 %v3330_v26  ;;  %v3682_v37 = vld [vmem:[#allocation6 + $0x94] sm:$0xf0]  ;;  %v3663_v1 = vld [vmem:[#allocation6 + $0x4] sm:$0xf]  ;;  %v3310_v24 = vor.u32 %v3666_v58, %v3309_v57 }
 0x27a   :  { %1469 = vst [vmem:[#allocation2 + $0x20] sm:$0xff] %v4470_v5  ;;  %2054 = vmatpush.bf16.msrb.mxu3 %v3394_v23  ;;  %1997 = vmatpush.bf16.msrb.mxu0 %v3326_v55  ;;  %v1526_v25 = vrot.slane %v4470_v5, 5  ;;  %v3374_v13 = vor.u32 %v3682_v37, %v3373_v48  ;;  %v3303_v41 = vld [vmem:[#allocation6 + $0x8] sm:$0xf0]  ;;  %v3679_v52 = vld [vmem:[#allocation6 + $0x84] sm:$0xf] }
 0x27b   :  { %1470 = vst [vmem:[#allocation2 + $0x28] sm:$0x11] %v1458_v51  ;;  %v1521_v21 = vrot.slane %v1519_v29, 4  ;;  %2016 = vmatpush.bf16.msrb.mxu1 %v3390_v39  ;;  %v3367_v3 = vld [vmem:[#allocation6 + $0x88] sm:$0xf0]  ;;  %v3306_v0 = vor.u32 %v3663_v1, %v3303_v41 }
 0x27c   :  { %v3370_v51 = vor.u32 %v3679_v52, %v3367_v3  ;;  %v3301_v18 = vld [vmem:[#allocation6] sm:$0xf]  ;;  %v3664_v33 = vld [vmem:[#allocation6 + $0x4] sm:$0xf0]  ;;  %v1528_v26 = vrot.slane %v1526_v25, 4 }
 0x27d   :  { %v1507_v11 = vld [vmem:[#allocation2] sm:$0xee]  ;;  %2036 = vmatpush.bf16.msrb.mxu2 %v3322_v20  ;;  %v3365_v40 = vld [vmem:[#allocation6 + $0x80] sm:$0xf]  ;;  %v3680_v34 = vld [vmem:[#allocation6 + $0x84] sm:$0xf0]  ;;  %v3302_v23 = vor.u32 %v3664_v33, %v3301_v18 }
 0x27e   :  { %v3153_v16 = vrot.slane %v1507_v11, 9  ;;  %2055 = vmatpush.bf16.msrb.mxu3 %v3386_v46  ;;  %v4480_v38 = vld [vmem:[#allocation2 + $0x18] sm:$0xee]  ;;  %1998 = vmatpush.bf16.msrb.mxu0 %v3318_v60  ;;  %v3741_v7 = vld [vmem:[#allocation6 + $0x274] sm:$0xf]  ;;  %v3366_v8 = vor.u32 %v3680_v34, %v3365_v40 }
 0x27f   :  { %v1508_v4 = vld [vmem:[#allocation2 + $0x10] sm:$0x11]  ;;  %2017 = vmatpush.bf16.msrb.mxu1 %v3382_v17  ;;  %v3154_v63 = vrot.slane %v4480_v38, 9  ;;  %v3489_v9 = vld [vmem:[#allocation6 + $0x278] sm:$0xf0] }
 0x280   :  { %v1520_v54 = vsel %vm4117_vm10, %v3153_v16, %v1519_v29  ;;  %v1522_v27 = vrot.slane %v1508_v4, 5  ;;  %v3757_v29 = vld [vmem:[#allocation6 + $0x2f4] sm:$0xf]  ;;  %v3553_v55 = vld [vmem:[#allocation6 + $0x2f8] sm:$0xf0]  ;;  %v3492_v10 = vor.u32 %v3741_v7, %v3489_v9 }
 0x281   :  { %v1563_v14 = vunpack.c.l.b16 %v1520_v54  ;;  %v1564_v22 = vunpack.c.h.b16 %v1520_v54  ;;  %2037 = vmatpush.bf16.msrb.mxu2 %v3314_v19  ;;  %v3556_v35 = vor.u32 %v3757_v29, %v3553_v55  ;;  %v3487_v11 = vld [vmem:[#allocation6 + $0x270] sm:$0xf]  ;;  %v3742_v39 = vld [vmem:[#allocation6 + $0x274] sm:$0xf0]  ;;  %v3739_v20 = vld [vmem:[#allocation6 + $0x264] sm:$0xf] }
 0x282   :  { %v1523_v36 = vsel %vm4117_vm10, %v1521_v21, %v1522_v27  ;;  %v4482_v53 = vld [vmem:[#allocation2 + $0x28] sm:$0x11]  ;;  %2056 = vmatpush.bf16.msrb.mxu3 %v3378_v59  ;;  %1999 = vmatpush.bf16.msrb.mxu0 %v3310_v24  ;;  %v3551_v12 = vld [vmem:[#allocation6 + $0x2f0] sm:$0xf]  ;;  %v3488_v15 = vor.u32 %v3742_v39, %v3487_v11  ;;  %v3481_v44 = vld [vmem:[#allocation6 + $0x268] sm:$0xf0] }
 0x283   :  { %v1565_v32 = vunpack.c.l.b16 %v1523_v36  ;;  %v1566_v47 = vunpack.c.h.b16 %v1523_v36  ;;  %v1529_v43 = vrot.slane %v4482_v53, 5  ;;  %2018 = vmatpush.bf16.msrb.mxu1 %v3374_v13  ;;  %v3758_v16 = vld [vmem:[#allocation6 + $0x2f4] sm:$0xf0]  ;;  %v3484_v46 = vor.u32 %v3739_v20, %v3481_v44  ;;  %v3755_v62 = vld [vmem:[#allocation6 + $0x2e4] sm:$0xf] }
 0x284   :  { %v3552_v4 = vor.u32 %v3758_v16, %v3551_v12  ;;  %v3545_v54 = vld [vmem:[#allocation6 + $0x2e8] sm:$0xf0]  ;;  %v3479_v21 = vld [vmem:[#allocation6 + $0x260] sm:$0xf]  ;;  %v3740_v28 = vld [vmem:[#allocation6 + $0x264] sm:$0xf0] }
 0x285   :  { %v1571_v56 = vpack.c.b16 %v1565_v32, %v1563_v14  ;;  %v1572_v2 = vpack.c.b16 %v1566_v47, %v1564_v22  ;;  %2038 = vmatpush.bf16.msrb.mxu2 %v3306_v0  ;;  %v3548_v27 = vor.u32 %v3755_v62, %v3545_v54  ;;  %v3543_v49 = vld [vmem:[#allocation6 + $0x2e0] sm:$0xf]  ;;  %v3756_v60 = vld [vmem:[#allocation6 + $0x2e4] sm:$0xf0]  ;;  %v1530_v6 = vsel %vm4117_vm10, %v1528_v26, %v1529_v43  ;;  %v3737_v36 = vld [vmem:[#allocation6 + $0x254] sm:$0xf] }
 0x286   :  { %2057 = vmatpush.bf16.msrb.mxu3 %v3370_v51  ;;  %2000 = vmatpush.bf16.msrb.mxu0 %v3302_v23  ;;  %v3480_v30 = vor.u32 %v3740_v28, %v3479_v21  ;;  %v3544_v45 = vor.u32 %v3756_v60, %v3543_v49  ;;  %v3473_v14 = vld [vmem:[#allocation6 + $0x258] sm:$0xf0]  ;;  %v3753_v17 = vld [vmem:[#allocation6 + $0x2d4] sm:$0xf]  ;;  %v3471_v31 = vld [vmem:[#allocation6 + $0x250] sm:$0xf]  ;;  %v1527_v22 = vsel %vm4117_vm10, %v3154_v63, %v1526_v25  ;;  %v1569_v57 = vunpack.c.l.b16 %v1530_v6 }
 0x287   :  { %1747 = vmatmul.bf16.vlgmr.msra.gmra.mxu0 %v1571_v56  ;;  %1766 = vmatmul.bf16.vlgmr.msra.gmra.mxu1 %v1572_v2  ;;  %v3537_v42 = vld [vmem:[#allocation6 + $0x2d8] sm:$0xf0]  ;;  %v3738_v32 = vld [vmem:[#allocation6 + $0x254] sm:$0xf0]  ;;  %v3476_v47 = vor.u32 %v3737_v36, %v3473_v14  ;;  %v3535_v53 = vld [vmem:[#allocation6 + $0x2d0] sm:$0xf]  ;;  %v1570_v58 = vunpack.c.h.b16 %v1530_v6  ;;  %v1567_v13 = vunpack.c.l.b16 %v1527_v22  ;;  %v1568_v61 = vunpack.c.h.b16 %v1527_v22 }
 0x288   :  { %1785 = vmatmul.bf16.vlgmr.msra.gmra.mxu2 %v1571_v56  ;;  %1804 = vmatmul.bf16.vlgmr.msra.gmra.mxu3 %v1572_v2  ;;  %v3540_v38 = vor.u32 %v3753_v17, %v3537_v42  ;;  %v3754_v19 = vld [vmem:[#allocation6 + $0x2d4] sm:$0xf0]  ;;  %v3735_v59 = vld [vmem:[#allocation6 + $0x244] sm:$0xf]  ;;  %v3465_v48 = vld [vmem:[#allocation6 + $0x248] sm:$0xf0]  ;;  %v3472_v37 = vor.u32 %v3738_v32, %v3471_v31 }
 0x289   :  { %2340 = vmatpush.bf16.msra.mxu2 %v3492_v10  ;;  %2019 = vmatpush.bf16.msrb.mxu1 %v3366_v8  ;;  %v3536_v1 = vor.u32 %v3754_v19, %v3535_v53  ;;  %v3751_v56 = vld [vmem:[#allocation6 + $0x2c4] sm:$0xf]  ;;  %v3529_v2 = vld [vmem:[#allocation6 + $0x2c8] sm:$0xf0]  ;;  %v3463_v24 = vld [vmem:[#allocation6 + $0x240] sm:$0xf]  ;;  %v1573_v3 = vpack.c.b16 %v1569_v57, %v1567_v13  ;;  %v1574_v0 = vpack.c.b16 %v1570_v58, %v1568_v61 }
 0x28a   :  { %2359 = vmatpush.bf16.msra.mxu3 %v3556_v35  ;;  %2302 = vmatpush.bf16.msra.mxu0 %v3488_v15  ;;  %v3736_v25 = vld [vmem:[#allocation6 + $0x244] sm:$0xf0]  ;;  %v3527_v41 = vld [vmem:[#allocation6 + $0x2c0] sm:$0xf]  ;;  %v3468_v51 = vor.u32 %v3735_v59, %v3465_v48  ;;  %v3532_v18 = vor.u32 %v3751_v56, %v3529_v2  ;;  %v3733_v34 = vld [vmem:[#allocation6 + $0x234] sm:$0xf] }
 0x28b   :  { %v3752_v52 = vld [vmem:[#allocation6 + $0x2c4] sm:$0xf0]  ;;  %v3464_v33 = vor.u32 %v3736_v25, %v3463_v24  ;;  %v3457_v63 = vld [vmem:[#allocation6 + $0x238] sm:$0xf0]  ;;  %v3749_v26 = vld [vmem:[#allocation6 + $0x2b4] sm:$0xf] }
 0x28c   :  { %v3528_v40 = vor.u32 %v3752_v52, %v3527_v41  ;;  %v3460_v43 = vor.u32 %v3733_v34, %v3457_v63  ;;  %v3521_v7 = vld [vmem:[#allocation6 + $0x2b8] sm:$0xf0]  ;;  %v3455_v23 = vld [vmem:[#allocation6 + $0x230] sm:$0xf]  ;;  %v3734_v8 = vld [vmem:[#allocation6 + $0x234] sm:$0xf0] }
 0x28d   :  { %2321 = vmatpush.bf16.msra.mxu1 %v3552_v4  ;;  %2341 = vmatpush.bf16.msra.mxu2 %v3484_v46  ;;  %v3524_v9 = vor.u32 %v3749_v26, %v3521_v7  ;;  %v3456_v29 = vor.u32 %v3734_v8, %v3455_v23  ;;  %v3519_v55 = vld [vmem:[#allocation6 + $0x2b0] sm:$0xf]  ;;  %v3750_v10 = vld [vmem:[#allocation6 + $0x2b4] sm:$0xf0]  ;;  %v3731_v35 = vld [vmem:[#allocation6 + $0x224] sm:$0xf] }
 0x28e   :  { %2360 = vmatpush.bf16.msra.mxu3 %v3548_v27  ;;  %2303 = vmatpush.bf16.msra.mxu0 %v3480_v30  ;;  %v3520_v11 = vor.u32 %v3750_v10, %v3519_v55  ;;  %v3449_v39 = vld [vmem:[#allocation6 + $0x228] sm:$0xf0]  ;;  %v3747_v12 = vld [vmem:[#allocation6 + $0x2a4] sm:$0xf]  ;;  %v3447_v16 = vld [vmem:[#allocation6 + $0x220] sm:$0xf] }
 0x28f   :  { %v3513_v15 = vld [vmem:[#allocation6 + $0x2a8] sm:$0xf0]  ;;  %v3732_v20 = vld [vmem:[#allocation6 + $0x224] sm:$0xf0]  ;;  %v3511_v44 = vld [vmem:[#allocation6 + $0x2a0] sm:$0xf]  ;;  %v3452_v4 = vor.u32 %v3731_v35, %v3449_v39 }
 0x290   :  { %v3516_v46 = vor.u32 %v3747_v12, %v3513_v15  ;;  %v3748_v62 = vld [vmem:[#allocation6 + $0x2a4] sm:$0xf0]  ;;  %v3729_v54 = vld [vmem:[#allocation6 + $0x214] sm:$0xf]  ;;  %v3441_v21 = vld [vmem:[#allocation6 + $0x218] sm:$0xf0]  ;;  %v3448_v27 = vor.u32 %v3732_v20, %v3447_v16 }
 0x291   :  { %2322 = vmatpush.bf16.msra.mxu1 %v3544_v45  ;;  %2342 = vmatpush.bf16.msra.mxu2 %v3476_v47  ;;  %v3512_v28 = vor.u32 %v3748_v62, %v3511_v44  ;;  %v3745_v49 = vld [vmem:[#allocation6 + $0x294] sm:$0xf]  ;;  %v3505_v60 = vld [vmem:[#allocation6 + $0x298] sm:$0xf0]  ;;  %v3439_v6 = vld [vmem:[#allocation6 + $0x210] sm:$0xf]  ;;  %v3444_v31 = vor.u32 %v3729_v54, %v3441_v21 }
 0x292   :  { %2361 = vmatpush.bf16.msra.mxu3 %v3540_v38  ;;  %2304 = vmatpush.bf16.msra.mxu0 %v3472_v37  ;;  %v3730_v30 = vld [vmem:[#allocation6 + $0x214] sm:$0xf0]  ;;  %v3503_v45 = vld [vmem:[#allocation6 + $0x290] sm:$0xf]  ;;  %v3287_v42 = vld [vmem:[#allocation2 + $0x8] sm:$0xf0]  ;;  %v3508_v32 = vor.u32 %v3745_v49, %v3505_v60 }
 0x293   :  { %v3746_v36 = vld [vmem:[#allocation6 + $0x294] sm:$0xf0]  ;;  %v3285_v17 = vld [vmem:[#allocation2] sm:$0xf]  ;;  %v3727_v22 = vld [vmem:[#allocation6 + $0x204] sm:$0xf]  ;;  %v3440_v38 = vor.u32 %v3730_v30, %v3439_v6 }
 0x294   :  { %v3660_v14 = vld [vmem:[#allocation2 + $0x4] sm:$0xf0]  ;;  %v3433_v47 = vld [vmem:[#allocation6 + $0x208] sm:$0xf0]  ;;  %v3504_v53 = vor.u32 %v3746_v36, %v3503_v45  ;;  %v3743_v19 = vld [vmem:[#allocation6 + $0x284] sm:$0xf] }
 0x295   :  { %2323 = vmatpush.bf16.msra.mxu1 %v3536_v1  ;;  %2343 = vmatpush.bf16.msra.mxu2 %v3468_v51  ;;  %v3497_v57 = vld [vmem:[#allocation6 + $0x288] sm:$0xf0]  ;;  %v3431_v58 = vld [vmem:[#allocation6 + $0x200] sm:$0xf]  ;;  %v3728_v59 = vld [vmem:[#allocation6 + $0x204] sm:$0xf0]  ;;  %v3286_v1 = vor.u32 %v3660_v14, %v3285_v17  ;;  %v3436_v24 = vor.u32 %v3727_v22, %v3433_v47 }
 0x296   :  { %2362 = vmatpush.bf16.msra.mxu3 %v3532_v18  ;;  %2305 = vmatpush.bf16.msra.mxu0 %v3464_v33  ;;  %v3495_v48 = vld [vmem:[#allocation6 + $0x280] sm:$0xf]  ;;  %v3744_v37 = vld [vmem:[#allocation6 + $0x284] sm:$0xf0]  ;;  %v3659_v56 = vld [vmem:[#allocation2 + $0x4] sm:$0xf]  ;;  %v3500_v13 = vor.u32 %v3743_v19, %v3497_v57  ;;  %v3432_v61 = vor.u32 %v3728_v59, %v3431_v58 }
 0x297   :  { %1752 = vmatmul.bf16.gmra.mxu0 %v1573_v3  ;;  %1771 = vmatmul.bf16.gmra.mxu1 %v1574_v0  ;;  %v3290_v2 = vor.u32 %v3659_v56, %v3287_v42  ;;  %v3496_v25 = vor.u32 %v3744_v37, %v3495_v48  ;;  %v3662_v41 = vld [vmem:[#allocation2 + $0x1c] sm:$0xf0]  ;;  %v3295_v52 = vld [vmem:[#allocation2 + $0x20] sm:$0xf0]  ;;  %v2070_v33 = vld [vmem:[#allocation2 + $0x10] sm:$0x33] }
 0x298   :  { %1790 = vmatmul.bf16.gmra.mxu2 %v1573_v3  ;;  %1809 = vmatmul.bf16.gmra.mxu3 %v1574_v0  ;;  %v3293_v3 = vld [vmem:[#allocation2 + $0x18] sm:$0xf]  ;;  %v3661_v0 = vld [vmem:[#allocation2 + $0x1c] sm:$0xf]  ;;  %v2069_v34 = vld [vmem:[#allocation2] sm:$0xcc] }
 0x299   :  { %2324 = vmatpush.bf16.msra.mxu1 %v3528_v40  ;;  %2344 = vmatpush.bf16.msra.mxu2 %v3460_v43  ;;  %v3294_v51 = vor.u32 %v3662_v41, %v3293_v3  ;;  %v3298_v18 = vor.u32 %v3661_v0, %v3295_v52  ;;  %v2082_v40 = vrot.slane %v4466_v50, 6  ;;  %v2085_v63 = vrot.slane %v2070_v33, 6  ;;  %v2071_v12 = vld [vmem:[#allocation2 + $0x18] sm:$0xcc] }
 0x29a   :  { %2363 = vmatpush.bf16.msra.mxu3 %v3524_v9  ;;  %2306 = vmatpush.bf16.msra.mxu0 %v3456_v29  ;;  %v3427_v26 = vrot.slane %v2069_v34, 10  ;;  %v2089_v39 = vrot.slane %v4470_v5, 6  ;;  %v3428_v16 = vrot.slane %v2071_v12, 10  ;;  %v2495_v34 = vld [vmem:[%s4769_s4 + $0x70] sm:$0xff] }
 0x29b   :  { %v2084_v43 = vrot.slane %v2082_v40, 4  ;;  %v2746_v12 = vld [vmem:[%s4768_s3 + $0x3] ss:$8 sm:$0x3] }
 0x29c   :  { %v2083_v8 = vsel %vm4496_vm8, %v3427_v26, %v2082_v40  ;;  %v2091_v20 = vrot.slane %v2089_v39, 4  ;;  %v2496_v40 = vld [vmem:[%s4769_s4 + $0x78] sm:$0xff] }
 0x29d   :  { %2325 = vmatpush.bf16.msra.mxu1 %v3520_v11  ;;  %2345 = vmatpush.bf16.msra.mxu2 %v3452_v4  ;;  %v2086_v23 = vsel %vm4496_vm8, %v2084_v43, %v2085_v63  ;;  %v2126_v55 = vunpack.c.l.b16 %v2083_v8  ;;  %v2127_v50 = vunpack.c.h.b16 %v2083_v8  ;;  %v2072_v11 = vld [vmem:[#allocation2 + $0x28] sm:$0x33]  ;;  %v2090_v4 = vsel %vm4496_vm8, %v3428_v16, %v2089_v39  ;;  %v2512_v43 = vld [vmem:[%s4769_s4 + $0xf8] sm:$0xff]  ;;  %v2494_v8 = vld [vmem:[%s4769_s4 + $0x68] sm:$0xff] }
 0x29e   :  { %2364 = vmatpush.bf16.msra.mxu3 %v3516_v46  ;;  %2307 = vmatpush.bf16.msra.mxu0 %v3448_v27  ;;  %v2128_v9 = vunpack.c.l.b16 %v2086_v23  ;;  %v2129_v29 = vunpack.c.h.b16 %v2086_v23  ;;  %v2092_v15 = vrot.slane %v2072_v11, 6  ;;  %v2130_v54 = vunpack.c.l.b16 %v2090_v4  ;;  %v2511_v11 = vld [vmem:[%s4769_s4 + $0xf0] sm:$0xff]  ;;  %v2492_v39 = vld [vmem:[%s4769_s4 + $0x58] sm:$0xff] }
 0x29f   :  { %v2131_v21 = vunpack.c.h.b16 %v2090_v4 }
 0x2a0   :  { %v2134_v10 = vpack.c.b16 %v2128_v9, %v2126_v55  ;;  %v2135_v35 = vpack.c.b16 %v2129_v29, %v2127_v50  ;;  %v2093_v44 = vsel %vm4496_vm8, %v2091_v20, %v2092_v15  ;;  %v2510_v20 = vld [vmem:[%s4769_s4 + $0xe8] sm:$0xff] }
 0x2a1   :  { %2326 = vmatpush.bf16.msra.mxu1 %v3512_v28  ;;  %2346 = vmatpush.bf16.msra.mxu2 %v3444_v31  ;;  %v2132_v46 = vunpack.c.l.b16 %v2093_v44  ;;  %v2133_v62 = vunpack.c.h.b16 %v2093_v44 }
 0x2a2   :  { %2365 = vmatpush.bf16.msra.mxu3 %v3508_v32  ;;  %2308 = vmatpush.bf16.msra.mxu0 %v3440_v38 }
 0x2a3   :  { %v2136_v27 = vpack.c.b16 %v2132_v46, %v2130_v54  ;;  %v2137_v28 = vpack.c.b16 %v2133_v62, %v2131_v21  ;;  %v2491_v62 = vld [vmem:[%s4769_s4 + $0x50] sm:$0xff]  ;;  %v2509_v54 = vld [vmem:[%s4769_s4 + $0xe0] sm:$0xff] }
 0x2a5   :  { %2327 = vmatpush.bf16.msra.mxu1 %v3504_v53  ;;  %2347 = vmatpush.bf16.msra.mxu2 %v3436_v24 }
 0x2a6   :  { %2366 = vmatpush.bf16.msra.mxu3 %v3500_v13  ;;  %2309 = vmatpush.bf16.msra.mxu0 %v3432_v61 }
 0x2a7   :  { %2001 = vmatmul.bf16.vlgmr.msrb.gmra.mxu0 %v3286_v1  ;;  %2020 = vmatmul.bf16.vlgmr.msrb.gmra.mxu1 %v3290_v2 }
 0x2a8   :  { %2039 = vmatmul.bf16.vlgmr.msrb.gmra.mxu2 %v3286_v1  ;;  %2058 = vmatmul.bf16.vlgmr.msrb.gmra.mxu3 %v3290_v2 }
 0x2a9   :  { %2328 = vmatpush.bf16.msra.mxu1 %v3496_v25 }
 0x2aa   :  { %2513 = vmatpush.msrb.mxu0 %v2496_v40 }
 0x2ac   :  { %2514 = vmatpush.msrb.mxu0 %v2495_v34 }
 0x2ad   :  { %2533 = vmatpush.msrb.mxu1 %v2512_v43 }
 0x2ae   :  { %2515 = vmatpush.msrb.mxu0 %v2494_v8  ;;  %v2504_v8 = vld [vmem:[%s4769_s4 + $0xb8] sm:$0xff] }
 0x2af   :  { %2534 = vmatpush.msrb.mxu1 %v2511_v11 }
 0x2b1   :  { %2535 = vmatpush.msrb.mxu1 %v2510_v20  ;;  %v2556_v20 = vld [vmem:[%s4770_s5 + $0x18] sm:$0xff] }
 0x2b2   :  { %2594 = vmatpush.msrb.mxu3 %v2556_v20 }
 0x2b3   :  { %2536 = vmatpush.msrb.mxu1 %v2509_v54  ;;  %v2553_v54 = vld [vmem:[%s4770_s5] sm:$0xff] }
 0x2b7   :  { %2006 = vmatmul.bf16.gmra.mxu0 %v3294_v51  ;;  %2025 = vmatmul.bf16.gmra.mxu1 %v3298_v18 }
 0x2b8   :  { %2044 = vmatmul.bf16.gmra.mxu2 %v3294_v51  ;;  %2063 = vmatmul.bf16.gmra.mxu3 %v3298_v18 }
 0x2c7   :  { %2310 = vmatmul.bf16.vlgmr.msra.gmra.mxu0 %v2134_v10  ;;  %2329 = vmatmul.bf16.vlgmr.msra.gmra.mxu1 %v2135_v35 }
 0x2c8   :  { %2348 = vmatmul.bf16.vlgmr.msra.gmra.mxu2 %v2134_v10  ;;  %2367 = vmatmul.bf16.vlgmr.msra.gmra.mxu3 %v2135_v35  ;;  %v2493_v35 = vld [vmem:[%s4769_s4 + $0x60] sm:$0xff] }
 0x2c9   :  { %2516 = vmatpush.msrb.mxu0 %v2493_v35  ;;  %v2484_v35 = vld [vmem:[%s4769_s4 + $0x18] sm:$0xff] }
 0x2cb   :  { %2517 = vmatpush.msrb.mxu0 %v2492_v39 }
 0x2cd   :  { %2518 = vmatpush.msrb.mxu0 %v2491_v62  ;;  %v2554_v62 = vld [vmem:[%s4770_s5 + $0x8] sm:$0xff] }
 0x2ce   :  { %2595 = vmatpush.msrb.mxu3 %v2554_v62 }
 0x2d7   :  { %2315 = vmatmul.bf16.gmra.mxu0 %v2136_v27  ;;  %2334 = vmatmul.bf16.gmra.mxu1 %v2137_v28 }
 0x2d8   :  { %2353 = vmatmul.bf16.gmra.mxu2 %v2136_v27  ;;  %2372 = vmatmul.bf16.gmra.mxu3 %v2137_v28  ;;  %v4570_v27 = vperm.slane %v2746_v12, 0 }
 0x304   :  { %v1748_v5 = vpop.f32.mrf.mxu0  ;;  %v1767_v49 = vpop.f32.mrf.mxu1 }
 0x305   :  { %v1768_v60 = vadd.f32 %v1767_v49, %v1748_v5 }
 0x30b   :  { %v1786_v6 = vpop.f32.mrf.mxu2  ;;  %v1805_v30 = vpop.f32.mrf.mxu3 }
 0x30c   :  { %v4509_v45 = vadd.f32 %v1805_v30, %v1786_v6  ;;  %v1750_v36 = vpop.f32.mrf.mxu0  ;;  %v1769_v14 = vpop.f32.mrf.mxu1  ;;  %v2490_v30 = vld [vmem:[%s4769_s4 + $0x48] sm:$0xff] }
 0x30d   :  { %v1770_v17 = vadd.f32 %v1769_v14, %v1750_v36  ;;  %v2508_v36 = vld [vmem:[%s4769_s4 + $0xd8] sm:$0xff]  ;;  %v2489_v14 = vld [vmem:[%s4769_s4 + $0x40] sm:$0xff]  ;;  %2519 = vmatpush.msrb.mxu0 %v2490_v30 }
 0x30e   :  { %2537 = vmatpush.msrb.mxu1 %v2508_v36 }
 0x30f   :  { %2520 = vmatpush.msrb.mxu0 %v2489_v14 }
 0x313   :  { %v1788_v42 = vpop.f32.mrf.mxu2  ;;  %v1807_v31 = vpop.f32.mrf.mxu3 }
 0x314   :  { %v1808_v32 = vadd.f32 %v1807_v31, %v1788_v42  ;;  %v1753_v22 = vpop.f32.mrf.mxu0  ;;  %v1772_v47 = vpop.f32.mrf.mxu1  ;;  %v2507_v31 = vld [vmem:[%s4769_s4 + $0xd0] sm:$0xff] }
 0x315   :  { %v4511_v38 = vadd.f32 %v1772_v47, %v1753_v22  ;;  %2538 = vmatpush.msrb.mxu1 %v2507_v31 }
 0x31b   :  { %v1791_v53 = vpop.f32.mrf.mxu2  ;;  %v1810_v19 = vpop.f32.mrf.mxu3 }
 0x31c   :  { %v4513_v57 = vadd.f32 %v1810_v19, %v1791_v53  ;;  %v4515_v58 = vpop.f32.mrf.mxu0  ;;  %v4517_v59 = vpop.f32.mrf.mxu1 }
 0x323   :  { %v4519_v48 = vpop.f32.mrf.mxu2  ;;  %v4521_v37 = vpop.f32.mrf.mxu3 }
 0x324   :  { %v2002_v1 = vpop.f32.mrf.mxu0  ;;  %v2021_v56 = vpop.f32.mrf.mxu1 }
 0x325   :  { %v2003_v9 = vadd.f32 %v2002_v1, %v1768_v60 }
 0x327   :  { %v2022_v44 = vadd.f32 %v2021_v56, %v2003_v9  ;;  %v2488_v56 = vld [vmem:[%s4769_s4 + $0x38] sm:$0xff] }
 0x328   :  { %2521 = vmatpush.msrb.mxu0 %v2488_v56 }
 0x32b   :  { %v2040_v2 = vpop.f32.mrf.mxu2  ;;  %v2059_v24 = vpop.f32.mrf.mxu3 }
 0x32c   :  { %v2004_v13 = vpop.f32.mrf.mxu0  ;;  %v2023_v61 = vpop.f32.mrf.mxu1  ;;  %v2041_v5 = vadd.f32 %v2040_v2, %v4509_v45  ;;  %v2506_v2 = vld [vmem:[%s4769_s4 + $0xc8] sm:$0xff] }
 0x32d   :  { %v2005_v29 = vadd.f32 %v2004_v13, %v1770_v17  ;;  %2539 = vmatpush.msrb.mxu1 %v2506_v2 }
 0x32f   :  { %v2024_v4 = vadd.f32 %v2023_v61, %v2005_v29  ;;  %v4600_v61 = vperm.slane %v2746_v12, 1  ;;  %v2485_v29 = vld [vmem:[%s4769_s4 + $0x20] sm:$0xff] }
 0x333   :  { %v2042_v25 = vpop.f32.mrf.mxu2  ;;  %v2061_v41 = vpop.f32.mrf.mxu3 }
 0x334   :  { %v2007_v52 = vpop.f32.mrf.mxu0  ;;  %v4523_v3 = vpop.f32.mrf.mxu1  ;;  %v2043_v49 = vadd.f32 %v2042_v25, %v1808_v32  ;;  %v2060_v32 = vadd.f32 %v2059_v24, %v2041_v5  ;;  %v2487_v25 = vld [vmem:[%s4769_s4 + $0x30] sm:$0xff] }
 0x335   :  { %v2008_v47 = vadd.f32 %v2007_v52, %v4511_v38  ;;  %v1775_v52 = vadd.f32 %v4517_v59, %v4515_v58  ;;  %2522 = vmatpush.msrb.mxu0 %v2487_v25  ;;  %v2483_v5 = vld [vmem:[%s4769_s4 + $0x10] sm:$0xff]  ;;  %v2498_v25 = vld [vmem:[%s4769_s4 + $0x88] sm:$0xff] }
 0x336   :  { %v2062_v22 = vadd.f32 %v2061_v41, %v2043_v49  ;;  %v2505_v41 = vld [vmem:[%s4769_s4 + $0xc0] sm:$0xff] }
 0x337   :  { %v2027_v43 = vadd.f32 %v4523_v3, %v2008_v47  ;;  %2540 = vmatpush.msrb.mxu1 %v2505_v41  ;;  %v2501_v49 = vld [vmem:[%s4769_s4 + $0xa0] sm:$0xff]  ;;  %v2499_v47 = vld [vmem:[%s4769_s4 + $0x90] sm:$0xff] }
 0x339   :  { %2541 = vmatpush.msrb.mxu1 %v2504_v8 }
 0x33b   :  { %v4525_v0 = vpop.f32.mrf.mxu2  ;;  %v4527_v51 = vpop.f32.mrf.mxu3 }
 0x33c   :  { %v4529_v18 = vpop.f32.mrf.mxu0  ;;  %v4531_v33 = vpop.f32.mrf.mxu1  ;;  %v2046_v11 = vadd.f32 %v4525_v0, %v4513_v57 }
 0x33d   :  { %v2010_v58 = vadd.f32 %v4529_v18, %v1775_v52 }
 0x343   :  { %v4539_v63 = vpop.f32.mrf.mxu2  ;;  %v4541_v26 = vpop.f32.mrf.mxu3 }
 0x344   :  { %v2311_v7 = vpop.f32.mrf.mxu0  ;;  %v2330_v23 = vpop.f32.mrf.mxu1 }
 0x345   :  { %v2331_v55 = vadd.f32 %v2330_v23, %v2311_v7  ;;  %v2486_v23 = vld [vmem:[%s4769_s4 + $0x28] sm:$0xff] }
 0x346   :  { %2523 = vmatpush.msrb.mxu0 %v2486_v23 }
 0x347   :  { %v2378_v21 = vadd.f32 %v2331_v55, %v2022_v44  ;;  %v2503_v55 = vld [vmem:[%s4769_s4 + $0xb0] sm:$0xff] }
 0x348   :  { %v2555_v44 = vld [vmem:[%s4770_s5 + $0x10] sm:$0xff]  ;;  %2524 = vmatpush.msrb.mxu0 %v2485_v29  ;;  %2542 = vmatpush.msrb.mxu1 %v2503_v55 }
 0x349   :  { %v4586_v45 = vadd.f32 %v4570_v27, %v2378_v21  ;;  %v1813_v21 = vadd.f32 %v4521_v37, %v4519_v48  ;;  %2574 = vmatpush.msrb.mxu2 %v2555_v44  ;;  %v2065_v37 = vadd.f32 %v4527_v51, %v2046_v11 }
 0x34a   :  { %2525 = vmatpush.msrb.mxu0 %v2484_v35 }
 0x34b   :  { %v2349_v50 = vpop.f32.mrf.mxu2  ;;  %v2368_v10 = vpop.f32.mrf.mxu3  ;;  %v2427_v40 = vmul.f32 %v4586_v45, %v4586_v45  ;;  %v2048_v36 = vadd.f32 %v4539_v63, %v1813_v21  ;;  %2575 = vmatpush.msrb.mxu2 %v2553_v54  ;;  %v2481_v63 = vld [vmem:[%s4769_s4] sm:$0xff] }
 0x34c   :  { %v2313_v15 = vpop.f32.mrf.mxu0  ;;  %v2332_v16 = vpop.f32.mrf.mxu1  ;;  %v2369_v6 = vadd.f32 %v2368_v10, %v2349_v50  ;;  %2526 = vmatpush.msrb.mxu0 %v2483_v5 }
 0x34d   :  { %v2333_v46 = vadd.f32 %v2332_v16, %v2313_v15  ;;  %v2502_v16 = vld [vmem:[%s4769_s4 + $0xa8] sm:$0xff] }
 0x34e   :  { %v2379_v24 = vadd.f32 %v2369_v6, %v2060_v32  ;;  %2543 = vmatpush.msrb.mxu1 %v2502_v16 }
 0x34f   :  { %v2380_v28 = vadd.f32 %v2333_v46, %v2024_v4  ;;  %v2029_v4 = vadd.f32 %v4531_v33, %v2010_v58 }
 0x350   :  { %v4626_v3 = vadd.f32 %v4600_v61, %v2379_v24  ;;  %2544 = vmatpush.msrb.mxu1 %v2501_v49 }
 0x351   :  { %v4574_v60 = vadd.f32 %v4570_v27, %v2380_v28 }
 0x352   :  { %v2428_v28 = vmul.f32 %v4626_v3, %v4626_v3 }
 0x353   :  { %v2351_v17 = vpop.f32.mrf.mxu2  ;;  %v2370_v42 = vpop.f32.mrf.mxu3  ;;  %v2429_v13 = vmul.f32 %v4574_v60, %v4574_v60  ;;  %v2399_v59 = vadd.f32 %v4574_v60, %v4586_v45 }
 0x354   :  { %v2371_v53 = vadd.f32 %v2370_v42, %v2351_v17  ;;  %v2316_v19 = vpop.f32.mrf.mxu0  ;;  %v2335_v1 = vpop.f32.mrf.mxu1  ;;  %v2482_v17 = vld [vmem:[%s4769_s4 + $0x8] sm:$0xff]  ;;  %v2500_v42 = vld [vmem:[%s4769_s4 + $0x98] sm:$0xff] }
 0x355   :  { %v2336_v34 = vadd.f32 %v2335_v1, %v2316_v19  ;;  %v2435_v9 = vadd.f32 %v2429_v13, %v2427_v40  ;;  %v2400_v57 = vrot.slane %v2399_v59, 4  ;;  %2527 = vmatpush.msrb.mxu0 %v2482_v17  ;;  %2545 = vmatpush.msrb.mxu1 %v2500_v42  ;;  %v2067_v13 = vadd.f32 %v4541_v26, %v2048_v36  ;;  %v2497_v26 = vld [vmem:[%s4769_s4 + $0x80] sm:$0xff] }
 0x356   :  { %v2381_v38 = vadd.f32 %v2371_v53, %v2062_v22 }
 0x357   :  { %v2382_v50 = vadd.f32 %v2336_v34, %v2027_v43  ;;  %v2436_v0 = vrot.slane %v2435_v9, 4  ;;  %v2401_v31 = vadd.f32 %v2400_v57, %v2399_v59  ;;  %2528 = vmatpush.msrb.mxu0 %v2481_v63  ;;  %2546 = vmatpush.msrb.mxu1 %v2499_v47 }
 0x358   :  { %v4614_v7 = vadd.f32 %v4600_v61, %v2381_v38 }
 0x359   :  { %v4670_v30 = vadd.f32 %v4570_v27, %v2382_v50  ;;  %v2437_v32 = vadd.f32 %v2436_v0, %v2435_v9  ;;  %v2402_v41 = vrot.slane %v2401_v31, 2  ;;  %2547 = vmatpush.msrb.mxu1 %v2498_v25 }
 0x35a   :  { %v2430_v39 = vmul.f32 %v4614_v7, %v4614_v7  ;;  %v2406_v6 = vadd.f32 %v4614_v7, %v4626_v3 }
 0x35b   :  { %v2354_v10 = vpop.f32.mrf.mxu2  ;;  %v2373_v18 = vpop.f32.mrf.mxu3  ;;  %v2431_v19 = vmul.f32 %v4670_v30, %v4670_v30  ;;  %v2438_v52 = vrot.slane %v2437_v32, 2  ;;  %v2403_v55 = vadd.f32 %v2402_v41, %v2401_v31  ;;  %2548 = vmatpush.msrb.mxu1 %v2497_v26 }
 0x35c   :  { %v2318_v12 = vpop.f32.mrf.mxu0  ;;  %v2337_v15 = vpop.f32.mrf.mxu1  ;;  %v2374_v33 = vadd.f32 %v2373_v18, %v2354_v10  ;;  %v2442_v14 = vadd.f32 %v2430_v39, %v2428_v28  ;;  %v2407_v53 = vrot.slane %v2406_v6, 4 }
 0x35d   :  { %v2338_v46 = vadd.f32 %v2337_v15, %v2318_v12  ;;  %v2439_v18 = vadd.f32 %v2438_v52, %v2437_v32 }
 0x35e   :  { %v2383_v51 = vadd.f32 %v2374_v33, %v2065_v37  ;;  %v2443_v24 = vrot.slane %v2442_v14, 4  ;;  %v2408_v8 = vadd.f32 %v2407_v53, %v2406_v6 }
 0x35f   :  { %v2384_v48 = vadd.f32 %v2338_v46, %v2029_v4  ;;  %v2404_v4 = vrot.slane %v2403_v55, 1  ;;  %v2440_v0 = vrot.slane %v2439_v18, 1 }
 0x360   :  { %v4700_v43 = vadd.f32 %v4600_v61, %v2383_v51  ;;  %v2444_v9 = vadd.f32 %v2443_v24, %v2442_v14  ;;  %v2409_v12 = vrot.slane %v2408_v8, 2 }
 0x361   :  { %v4681_v22 = vadd.f32 %v4570_v27, %v2384_v48  ;;  %v2405_v48 = vadd.f32 %v2404_v4, %v2403_v55  ;;  %v2441_v37 = vadd.f32 %v2440_v0, %v2439_v18 }
 0x362   :  { %v2432_v35 = vmul.f32 %v4700_v43, %v4700_v43  ;;  %v2445_v20 = vrot.slane %v2444_v9, 2  ;;  %v2410_v21 = vadd.f32 %v2409_v12, %v2408_v8 }
 0x363   :  { %v2413_v1 = vadd.f32 %v4681_v22, %v4670_v30  ;;  %v2433_v27 = vmul.f32 %v4681_v22, %v4681_v22  ;;  %v2356_v56 = vpop.f32.mrf.mxu2  ;;  %v2375_v2 = vpop.f32.mrf.mxu3 }
 0x364   :  { %v2376_v38 = vadd.f32 %v2375_v2, %v2356_v56  ;;  %v2446_v6 = vadd.f32 %v2445_v20, %v2444_v9  ;;  %v2411_v32 = vrot.slane %v2410_v21, 1  ;;  %v2747_v20 = vld [vmem:[%s4768_s3 + $0x4] ss:$8 sm:$0x3] }
 0x365   :  { %v2414_v40 = vrot.slane %v2413_v1, 4  ;;  %v2449_v34 = vadd.f32 %v2433_v27, %v2431_v19 }
 0x366   :  { %v2385_v23 = vadd.f32 %v2376_v38, %v2067_v13  ;;  %v2447_v47 = vrot.slane %v2446_v6, 1  ;;  %v2412_v27 = vadd.f32 %v2411_v32, %v2410_v21 }
 0x367   :  { %v2415_v58 = vadd.f32 %v2414_v40, %v2413_v1  ;;  %v2450_v59 = vrot.slane %v2449_v34, 4 }
 0x368   :  { %v4706_v29 = vadd.f32 %v4600_v61, %v2385_v23  ;;  %v2448_v56 = vadd.f32 %v2447_v47, %v2446_v6 }
 0x369   :  { %v2416_v50 = vrot.slane %v2415_v58, 2  ;;  %v2451_v10 = vadd.f32 %v2450_v59, %v2449_v34 }
 0x36a   :  { %v2420_v11 = vadd.f32 %v4706_v29, %v4700_v43  ;;  %v2434_v39 = vmul.f32 %v4706_v29, %v4706_v29 }
 0x36b   :  { %v2417_v15 = vadd.f32 %v2416_v50, %v2415_v58  ;;  %v2452_v16 = vrot.slane %v2451_v10, 2 }
 0x36c   :  { %v2421_v61 = vrot.slane %v2420_v11, 4  ;;  %v2456_v44 = vadd.f32 %v2434_v39, %v2432_v35 }
 0x36d   :  { %v2418_v57 = vrot.slane %v2417_v15, 1  ;;  %v2453_v46 = vadd.f32 %v2452_v16, %v2451_v10 }
 0x36e   :  { %v2422_v62 = vadd.f32 %v2421_v61, %v2420_v11  ;;  %v2457_v54 = vrot.slane %v2456_v44, 4 }
 0x36f   :  { %v2419_v28 = vadd.f32 %v2418_v57, %v2417_v15  ;;  %v2454_v33 = vrot.slane %v2453_v46, 1  ;;  %v2635_v57 = vperm.slane %v2747_v20, 0 }
 0x370   :  { %v2423_v5 = vrot.slane %v2422_v62, 2  ;;  %v2458_v49 = vadd.f32 %v2457_v54, %v2456_v44 }
 0x371   :  { %v2455_v36 = vadd.f32 %v2454_v33, %v2453_v46  ;;  %v2467_v42 = vsel %vm1190_vm11, %v2419_v28, %v2405_v48  ;;  %v2748_v28 = vld [vmem:[%s4768_s3 + $0x5] ss:$8 sm:$0x3] }
 0x372   :  { %v2424_v14 = vadd.f32 %v2423_v5, %v2422_v62  ;;  %v2459_v17 = vrot.slane %v2458_v49, 2  ;;  %v2636_v62 = vperm.slane %v2747_v20, 1  ;;  %v3781_v20 = vld [vmem:[%s4765_s0 + $0x30] sm:$0xff] }
 0x373   :  { %v2475_v31 = vsel %vm1199_vm12, %v2455_v36, %v2441_v37  ;;  %v2651_v37 = vperm.slane %v2748_v28, 1 }
 0x374   :  { %v2479_v51 = vsel %vm1204_vm13, %v2467_v42, %v2475_v31  ;;  %v2425_v63 = vrot.slane %v2424_v14, 1  ;;  %v2460_v53 = vadd.f32 %v2459_v17, %v2458_v49  ;;  %v2650_v17 = vperm.slane %v2748_v28, 0 }
 0x375   :  { %2529 = vmatmul.f32.vlgmr.msrb.gmra.mxu0 %v2479_v51 }
 0x376   :  { %v2426_v19 = vadd.f32 %v2425_v63, %v2424_v14  ;;  %v2461_v1 = vrot.slane %v2460_v53, 1 }
 0x378   :  { %v2462_v2 = vadd.f32 %v2461_v1, %v2460_v53  ;;  %v2468_v13 = vsel %vm1190_vm11, %v2426_v19, %v2412_v27 }
 0x37a   :  { %v2476_v24 = vsel %vm1199_vm12, %v2462_v2, %v2448_v56 }
 0x37b   :  { %v2480_v38 = vsel %vm1204_vm13, %v2468_v13, %v2476_v24 }
 0x37c   :  { %2549 = vmatmul.f32.vlgmr.msrb.gmra.mxu1 %v2480_v38 }
 0x3f2   :  { %v2530_v25 = vpop.f32.mrf.mxu0 }
 0x3f9   :  { %v2550_v41 = vpop.f32.mrf.mxu1 }
 0x3fa   :  { %v2551_v52 = vadd.f32 %v2550_v41, %v2530_v25 }
 0x3fc   :  { %3557 = vmatmul.msk.f32.vlgmr.msrb.gmra.mxu2 %vm1283_vm14, %v2551_v52  ;;  %3558 = vmatmul.msk.f32.vlgmr.msrb.gmra.mxu3 %vm1283_vm14, %v2551_v52 }
 0x47f   :  { %v2577_v40 = vpop.f32.mrf.mxu2  ;;  %v2597_v34 = vpop.f32.mrf.mxu3 }
 0x480   :  { %v2600_v23 = vmul.f32 %v2577_v40, %v2577_v40  ;;  %v2601_v26 = vmul.f32 %v2597_v34, %v2597_v34 }
 0x482   :  { %v2604_v8 = vrot.slane %v2600_v23, 6  ;;  %v2605_v58 = vrot.slane %v2601_v26, 6 }
 0x484   :  { %v2608_v59 = vsub.f32 %v2577_v40, %v2604_v8  ;;  %v2609_v9 = vsub.f32 %v2597_v34, %v2605_v58 }
 0x486   :  { %v2610_v55 = vmax.f32 %v2608_v59, 0.0  ;;  %v2611_v50 = vmax.f32 %v2609_v9, 0.0 }
 0x488   :  { %v2612_v10 = vadd.f32 1e-05, %v2610_v55  ;;  %v2613_v18 = vadd.f32 1e-05, %v2611_v50 }
 0x48a   :  { %3771 = vrsqrt.f32 %v2612_v10  ;;  %vm2620_vm12 = vweird.f32 %v2612_v10  ;;  %vm2630_vm14 = vweird.f32 %v2613_v18 }
 0x48b   :  { %3773 = vrsqrt.f32 %v2613_v18 }
 0x490   :  { %v3772_v35 = vpop.eup %3771 }
 0x491   :  { %v3774_v11 = vpop.eup %3773  ;;  %v2615_v39 = vmul.f32 %v3772_v35, %v2612_v10  ;;  %vm2621_vm9 = vweird.f32 %v3772_v35  ;;  %v3777_v10 = vld [vmem:[%s4765_s0 + $0x10] sm:$0xff] }
 0x492   :  { %v2625_v12 = vmul.f32 %v3774_v11, %v2613_v18  ;;  %vm2631_vm10 = vweird.f32 %v3774_v11  ;;  %vm2622_vm13 = vmor %vm2620_vm12, %vm2621_vm9 }
 0x493   :  { %v2616_v15 = vmul.f32 %v3772_v35, %v2615_v39  ;;  %vm2632_vm15 = vmor %vm2630_vm14, %vm2631_vm10  ;;  %v3779_v39 = vld [vmem:[%s4765_s0 + $0x20] sm:$0xff] }
 0x494   :  { %v2626_v16 = vmul.f32 %v3774_v11, %v2625_v12 }
 0x495   :  { %v2617_v61 = vmul.f32 0.5, %v2616_v15  ;;  %v3780_v15 = vld [vmem:[%s4765_s0 + $0x28] sm:$0xff] }
 0x496   :  { %v2627_v44 = vmul.f32 0.5, %v2626_v16 }
 0x497   :  { %v2618_v4 = vsub.f32 1.5, %v2617_v61 }
 0x498   :  { %v2628_v0 = vsub.f32 1.5, %v2627_v44 }
 0x499   :  { %v2619_v46 = vmul.f32 %v3772_v35, %v2618_v4 }
 0x49a   :  { %v2629_v54 = vmul.f32 %v3774_v11, %v2628_v0  ;;  %v3782_v0 = vld [vmem:[%s4765_s0 + $0x38] sm:$0xff] }
 0x49b   :  { %v2623_v21 = vsel %vm2622_vm13, %v3772_v35, %v2619_v46  ;;  %v3778_v35 = vld [vmem:[%s4765_s0 + $0x18] sm:$0xff] }
 0x49c   :  { %v2639_v33 = vmul.f32 %v2635_v57, %v2623_v21  ;;  %v2633_v5 = vsel %vm2632_vm15, %v3774_v11, %v2629_v54 }
 0x49d   :  { %v2640_v49 = vmul.f32 %v2636_v62, %v2633_v5 }
 0x49e   :  { %v2643_v6 = vrot.slane %v2639_v33, 2  ;;  %2656 = vst [vmem:[#allocation1] sm:$0xff] %v2639_v33 }
 0x49f   :  { %v2644_v48 = vrot.slane %v2640_v49, 2  ;;  %2657 = vst [vmem:[#allocation1 + $0x9] sm:$0xff] %v2640_v49 }
 0x4a0   :  { %v2647_v14 = vmul.f32 %v2643_v6, %v2577_v40 }
 0x4a1   :  { %v2648_v36 = vmul.f32 %v2644_v48, %v2597_v34 }
 0x4a2   :  { %v2654_v32 = vsub.f32 %v2650_v17, %v2647_v14 }
 0x4a3   :  { %v2655_v42 = vsub.f32 %v2651_v37, %v2648_v36 }
 0x4a5   :  { %v2680_v31 = vrot.slane %v2655_v42, 7 }
 0x4a6   :  { %v2659_v51 = vld [vmem:[#allocation1 + $0x2] ss:$9 sm:$0xff] }
 0x4a7   :  { %v2661_v63 = vld [vmem:[#allocation1 + $0x3] ss:$9 sm:$0xff]  ;;  %v2662_v47 = vperm.slane %v2659_v51, 0  ;;  %v2663_v53 = vperm.slane %v2659_v51, 1  ;;  %v2681_v27 = vsel %vm76_vm1, %v2654_v32, %v2680_v31  ;;  %v2682_v56 = vsel %vm1190_vm11, %v2654_v32, %v2680_v31 }
 0x4a8   :  { %v2664_v19 = vperm.slane %v2661_v63, 0  ;;  %v2665_v1 = vperm.slane %v2661_v63, 1  ;;  %v2683_v34 = vrot.slane %v2682_v56, 1  ;;  %v2684_v23 = vperm.slane %v2681_v27, 0 }
 0x4a9   :  { %v2670_v2 = vmul.f32 %v2662_v47, %v4586_v45  ;;  %v2671_v13 = vmul.f32 %v2663_v53, %v4626_v3  ;;  %v2672_v24 = vmul.f32 %v2662_v47, %v4574_v60  ;;  %v2673_v38 = vmul.f32 %v2663_v53, %v4614_v7 }
 0x4aa   :  { %v2674_v25 = vmul.f32 %v2664_v19, %v4670_v30  ;;  %v2675_v41 = vmul.f32 %v2665_v1, %v4700_v43  ;;  %v2676_v52 = vmul.f32 %v2664_v19, %v4681_v22  ;;  %v2677_v40 = vmul.f32 %v2665_v1, %v4706_v29  ;;  %v3775_v30 = vld [vmem:[%s4765_s0] sm:$0xff]  ;;  %v3776_v43 = vld [vmem:[%s4765_s0 + $0x8] sm:$0xff]  ;;  %s3867_s0 = smov 256  }
 0x4ab   :  { %v2685_v26 = vperm.slane %v2681_v27, 1  ;;  %v2686_v8 = vperm.slane %v2683_v34, 0  ;;  %v2687_v58 = vperm.slane %v2683_v34, 1  ;;  %v2692_v45 = vadd.f32 %v2684_v23, %v2670_v2 }
 0x4ac   :  { %v2694_v3 = vadd.f32 %v2684_v23, %v2672_v24 }
 0x4ad   :  { %v2693_v59 = vadd.f32 %v2685_v26, %v2671_v13  ;;  %v2695_v9 = vadd.f32 %v2685_v26, %v2673_v38  ;;  %v2696_v60 = vadd.f32 %v2686_v8, %v2674_v25  ;;  %v2697_v55 = vadd.f32 %v2687_v58, %v2675_v41 }
 0x4ae   :  { %v2698_v7 = vadd.f32 %v2686_v8, %v2676_v52  ;;  %v2699_v50 = vadd.f32 %v2687_v58, %v2677_v40  ;;  %v2700_v22 = vadd.f32 %v3775_v30, %v2692_v45  ;;  %v2702_v18 = vadd.f32 %v3777_v10, %v2694_v3 }
 0x4af   :  { %v2701_v29 = vadd.f32 %v3776_v43, %v2693_v59  ;;  %v2703_v11 = vadd.f32 %v3778_v35, %v2695_v9  ;;  %v2704_v12 = vadd.f32 %v3779_v39, %v2696_v60  ;;  %v2705_v16 = vadd.f32 %v3780_v15, %v2697_v55 }
 0x4b0   :  { %v2706_v61 = vadd.f32 %v3781_v20, %v2698_v7  ;;  %v2708_v44 = vmax.f32 %v2700_v22, 0.0  ;;  %v2710_v57 = vmax.f32 %v2702_v18, 0.0  ;;  %v2707_v46 = vadd.f32 %v3782_v0, %v2699_v50 }
 0x4b1   :  { %v2709_v4 = vmax.f32 %v2701_v29, 0.0  ;;  %v2711_v62 = vmax.f32 %v2703_v11, 0.0  ;;  %v2712_v54 = vmax.f32 %v2704_v12, 0.0  ;;  %v2713_v21 = vmax.f32 %v2705_v16, 0.0 }
 0x4b2   :  { %2716 = vst [vmem:[#allocation8] sm:$0xff] %v2708_v44  ;;  %v2714_v28 = vmax.f32 %v2706_v61, 0.0  ;;  %v2715_v33 = vmax.f32 %v2707_v46, 0.0 }
 0x4b3   :  { %2717 = vst [vmem:[#allocation8 + $0x8] sm:$0xff] %v2709_v4 }
 0x4b4   :  { %2718 = vst [vmem:[#allocation8 + $0x10] sm:$0xff] %v2710_v57 }
 0x4b5   :  { %2719 = vst [vmem:[#allocation8 + $0x18] sm:$0xff] %v2711_v62 }
 0x4b6   :  { %2720 = vst [vmem:[#allocation8 + $0x20] sm:$0xff] %v2712_v54 }
 0x4b7   :  { %2721 = vst [vmem:[#allocation8 + $0x28] sm:$0xff] %v2713_v21 }
 0x4b8   :  { %2722 = vst [vmem:[#allocation8 + $0x30] sm:$0xff] %v2714_v28 }
 0x4b9   :  { %2723 = vst [vmem:[#allocation8 + $0x38] sm:$0xff] %v2715_v33 }
 0x4ba   :  { %2736 = dma.vmem_to_hbm [thread:$0]  %s2729_s10, 1024, %s2731_s13, [#allocation5], %s3867_s0, %s3867_s0, %s3868_s14  }
 0x4bb   :  { %3859 = dma.done.wait [#allocation5], 1024  }
 0x4bc   :  { %3860 = vsyncadd [#allocation5], 4294966272 }
 0x4bd   :  { %2741 = vsyncpa [#allocation4], 1 }
 0x4be   :  { %2742 = vsyncpa [#allocation7], 1 }
 0x4bf   :  { %2743 = vsyncpa [#allocation5], 1 }

</bundles_post_ra>
